<compile_context>
chip_gen: v5e
topology: v5e:2x2
jax: 0.10.0
libtpu: 0.0.40
codegen_flags: <defaults>
</compile_context>

<pallas_src>
import functools

import jax
import jax.numpy as jnp
from jax.experimental import pallas as pl
from jax.experimental.pallas import tpu as pltpu

LANES = 128  # lane-dense padding target for every matmul axis


def _round_up(x, m):
    return (x + m - 1) // m * m


# ----------------------------------------------------------------------------
# Fused Pallas kernel: all GraphConv layers + mean readout + fc head
# ----------------------------------------------------------------------------
def _gcn_fused_kernel(*refs, n_layers, n_nodes, feat_dims):
    """refs = [a, h0, (w_i, b_i) x n_layers, w_fc, b_fc, out].

    All arrays are zero-padded to lane-dense shapes; padded rows/cols are
    zero, so the math on the valid region is exact.
    """
    a_ref = refs[0]
    h_ref = refs[1]
    wb_refs = refs[2:2 + 2 * n_layers]
    wfc_ref = refs[2 + 2 * n_layers]
    bfc_ref = refs[3 + 2 * n_layers]
    out_ref = refs[4 + 2 * n_layers]

    hi = jax.lax.Precision.HIGHEST

    a = a_ref[...]
    h = h_ref[...]
    for i in range(n_layers):
        w = wb_refs[2 * i][...]
        b = wb_refs[2 * i + 1][...]
        in_f, out_f = feat_dims[i], feat_dims[i + 1]
        # Associate so the dominant N x N aggregation sees the smaller dim.
        if out_f < in_f:
            hw = jnp.dot(h, w, preferred_element_type=jnp.float32, precision=hi)
            h = jnp.dot(a, hw, preferred_element_type=jnp.float32, precision=hi) + b
        else:
            ah = jnp.dot(a, h, preferred_element_type=jnp.float32, precision=hi)
            h = jnp.dot(ah, w, preferred_element_type=jnp.float32, precision=hi) + b
        if i < n_layers - 1:  # final conv (conv2) has no relu
            h = jnp.maximum(h, 0.0)

    # Mean readout over the *real* nodes only (padded rows pick up bias terms
    # and must be masked), then Linear(E, 1) as a VPU multiply + lane reduce.
    n_pad = h.shape[0]
    row_ids = jax.lax.broadcasted_iota(jnp.int32, (n_pad, 1), 0)
    mask = (row_ids < n_nodes).astype(jnp.float32)
    mean = jnp.sum(h * mask, axis=0, keepdims=True) * (1.0 / n_nodes)   # (1, F_pad)
    total = jnp.sum(mean * wfc_ref[...], axis=-1, keepdims=True)        # (1, 1)
    # Lane-dense store; b_fc lives only in lane 0, wrapper slices [:, :1].
    out_ref[...] = jnp.broadcast_to(total, out_ref.shape) + bfc_ref[...]


# ----------------------------------------------------------------------------
# Wrapper: pad operands, build specs, call the fused kernel once
# ----------------------------------------------------------------------------
def _gcn_forward_impl(a_hat, in_feat, params):
    """params: list of (W, b) for conv1, convs..., conv2, then (W_fc, b_fc)."""
    *conv_params, (w_fc, b_fc) = params
    f32 = jnp.float32

    n = a_hat.shape[0]
    in_feats = in_feat.shape[1]
    feat_dims = [in_feats] + [w.shape[1] for (w, _) in conv_params]

    n_pad = _round_up(n, LANES)                 # node axis is a contraction axis
    f_pad = _round_up(max(feat_dims), LANES)    # single feature padding width

    # Zero-pad adjacency and input features.
    a_p = jnp.zeros((n_pad, n_pad), f32).at[:n, :n].set(a_hat.astype(f32))
    h_p = jnp.zeros((n_pad, f_pad), f32).at[:n, :in_feats].set(in_feat.astype(f32))

    vmem = pl.BlockSpec(memory_space=pltpu.MemorySpace.VMEM)

    args = [a_p, h_p]
    in_specs = [vmem, vmem]
    for (w, b) in conv_params:
        in_f, out_f = w.shape
        w_p = jnp.zeros((f_pad, f_pad), f32).at[:in_f, :out_f].set(w.astype(f32))
        b_p = jnp.zeros((1, f_pad), f32).at[0, :out_f].set(b.astype(f32))
        args += [w_p, b_p]
        in_specs += [vmem, vmem]

    e = w_fc.shape[0]
    wfc_p = jnp.zeros((1, f_pad), f32).at[0, :e].set(w_fc.reshape(-1).astype(f32))
    bfc_p = jnp.zeros((1, LANES), f32).at[0, 0].set(b_fc.reshape(()).astype(f32))
    args += [wfc_p, bfc_p]
    in_specs += [vmem, vmem]

    kernel = functools.partial(
        _gcn_fused_kernel,
        n_layers=len(conv_params),
        n_nodes=n,
        feat_dims=tuple(feat_dims),
    )

    # Single invocation (no grid): every operand fits comfortably in VMEM.
    out_row = pl.pallas_call(
        kernel,
        out_shape=jax.ShapeDtypeStruct((1, LANES), f32),
        in_specs=in_specs,
        out_specs=vmem,
    )(*args)
    return out_row[:, :1]   # (1, 1), matching nn.Linear(E, 1) on one graph


gcn_embedding_forward = jax.jit(_gcn_forward_impl)


# ----------------------------------------------------------------------------
# Host-side helpers
# ----------------------------------------------------------------------------
def normalize_adjacency(adj):
    """DGL GraphConv norm='both': D_dst^{-1/2} A D_src^{-1/2}, adj[dst, src]."""
    adj = adj.astype(jnp.float32)
    deg_out = jnp.maximum(adj.sum(axis=0), 1.0)  # out-degree of src nodes
    deg_in = jnp.maximum(adj.sum(axis=1), 1.0)   # in-degree of dst nodes
    norm_src = jax.lax.rsqrt(deg_out)
    norm_dst = jax.lax.rsqrt(deg_in)
    return norm_dst[:, None] * adj * norm_src[None, :]


def init_params(key, in_feats, h_feats, embedding_size):
    sizes = [in_feats] + list(h_feats) + [embedding_size]
    params = []
    for i in range(len(sizes) - 1):
        key, kw, kb = jax.random.split(key, 3)
        w = jax.random.normal(kw, (sizes[i], sizes[i + 1]), jnp.float32) * 0.1
        b = jax.random.normal(kb, (sizes[i + 1],), jnp.float32) * 0.01
        params.append((w, b))
    key, kw, kb = jax.random.split(key, 3)
    w_fc = jax.random.normal(kw, (embedding_size, 1), jnp.float32) * 0.1
    b_fc = jax.random.normal(kb, (1,), jnp.float32) * 0.01
    params.append((w_fc, b_fc))
    return params


if __name__ == "__main__":
    key = jax.random.PRNGKey(0)

    # Small graph: N nodes, in_feats node features.
    N = 16
    in_feats = 8
    h_feats = [32, 32]
    embedding_size = 16

    key, k_adj, k_feat, k_param = jax.random.split(key, 4)

    # Deterministic random directed adjacency adj[dst, src] + self loops.
    adj = (jax.random.uniform(k_adj, (N, N)) < 0.25).astype(jnp.float32)
    adj = jnp.maximum(adj, jnp.eye(N, dtype=jnp.float32))
    a_hat = normalize_adjacency(adj)

    in_feat = jax.random.normal(k_feat, (N, in_feats), jnp.float32)
    params = init_params(k_param, in_feats, h_feats, embedding_size)

    out = gcn_embedding_forward(a_hat, in_feat, params)
    out = jax.block_until_ready(out)
    assert out.shape == (1, 1), out.shape

    # Pure-JAX reference of the same math (highest matmul precision).
    with jax.default_matmul_precision("highest"):
        h = in_feat
        n_conv = len(params) - 1
        for i, (w, b) in enumerate(params[:-1]):
            h = a_hat @ h @ w + b
            if i < n_conv - 1:
                h = jnp.maximum(h, 0.0)
        ref = h.mean(axis=0, keepdims=True) @ params[-1][0] + params[-1][1]
    assert jnp.allclose(out, ref, atol=1e-3, rtol=1e-3), (out, ref)

    print("KERNEL_OK")
</pallas_src>

<mosaic_0001>
module attributes {stable_mosaic.version = 11 : i64} {
  func.func @_gcn_fused_kernel(%arg0: memref<128x128xf32, #tpu.memory_space<vmem>>, %arg1: memref<128x128xf32, #tpu.memory_space<vmem>>, %arg2: memref<128x128xf32, #tpu.memory_space<vmem>>, %arg3: memref<1x128xf32, #tpu.memory_space<vmem>>, %arg4: memref<128x128xf32, #tpu.memory_space<vmem>>, %arg5: memref<1x128xf32, #tpu.memory_space<vmem>>, %arg6: memref<128x128xf32, #tpu.memory_space<vmem>>, %arg7: memref<1x128xf32, #tpu.memory_space<vmem>>, %arg8: memref<1x128xf32, #tpu.memory_space<vmem>>, %arg9: memref<1x128xf32, #tpu.memory_space<vmem>>, %arg10: memref<1x128xf32, #tpu.memory_space<vmem>>) attributes {dimension_semantics = [], scalar_prefetch = 0 : i64, scratch_operands = 0 : i64, tpu.core_type = #tpu.core_type<tc>} {
    %c0 = arith.constant 0 : index
    %c0_0 = arith.constant 0 : index
    %0 = vector.load %arg0[%c0, %c0_0] : memref<128x128xf32, #tpu.memory_space<vmem>>, vector<128x128xf32>
    %c0_1 = arith.constant 0 : index
    %c0_2 = arith.constant 0 : index
    %1 = vector.load %arg1[%c0_1, %c0_2] : memref<128x128xf32, #tpu.memory_space<vmem>>, vector<128x128xf32>
    %c0_3 = arith.constant 0 : index
    %c0_4 = arith.constant 0 : index
    %2 = vector.load %arg2[%c0_3, %c0_4] : memref<128x128xf32, #tpu.memory_space<vmem>>, vector<128x128xf32>
    %c0_5 = arith.constant 0 : index
    %c0_6 = arith.constant 0 : index
    %3 = vector.load %arg3[%c0_5, %c0_6] : memref<1x128xf32, #tpu.memory_space<vmem>>, vector<1x128xf32>
    %cst = arith.constant dense<0.000000e+00> : vector<128x128xf32>
    %4 = tpu.matmul %0, %1, %cst {dimension_numbers = #tpu.dot_dimension_numbers<[1], [0], [0], [1], [0, 0, 1, 1], [], []>, precision = #tpu.contract_precision<fp32>} : vector<128x128xf32>, vector<128x128xf32>, vector<128x128xf32> -> vector<128x128xf32>
    %cst_7 = arith.constant dense<0.000000e+00> : vector<128x128xf32>
    %5 = tpu.matmul %4, %2, %cst_7 {dimension_numbers = #tpu.dot_dimension_numbers<[1], [0], [0], [1], [0, 0, 1, 1], [], []>, precision = #tpu.contract_precision<fp32>} : vector<128x128xf32>, vector<128x128xf32>, vector<128x128xf32> -> vector<128x128xf32>
    %6 = vector.broadcast %3 : vector<1x128xf32> to vector<128x128xf32>
    %7 = arith.addf %5, %6 : vector<128x128xf32>
    %cst_8 = arith.constant 0.000000e+00 : f32
    %8 = vector.broadcast %cst_8 : f32 to vector<128x128xf32>
    %9 = arith.maximumf %7, %8 : vector<128x128xf32>
    %c0_9 = arith.constant 0 : index
    %c0_10 = arith.constant 0 : index
    %10 = vector.load %arg4[%c0_9, %c0_10] : memref<128x128xf32, #tpu.memory_space<vmem>>, vector<128x128xf32>
    %c0_11 = arith.constant 0 : index
    %c0_12 = arith.constant 0 : index
    %11 = vector.load %arg5[%c0_11, %c0_12] : memref<1x128xf32, #tpu.memory_space<vmem>>, vector<1x128xf32>
    %cst_13 = arith.constant dense<0.000000e+00> : vector<128x128xf32>
    %12 = tpu.matmul %0, %9, %cst_13 {dimension_numbers = #tpu.dot_dimension_numbers<[1], [0], [0], [1], [0, 0, 1, 1], [], []>, precision = #tpu.contract_precision<fp32>} : vector<128x128xf32>, vector<128x128xf32>, vector<128x128xf32> -> vector<128x128xf32>
    %cst_14 = arith.constant dense<0.000000e+00> : vector<128x128xf32>
    %13 = tpu.matmul %12, %10, %cst_14 {dimension_numbers = #tpu.dot_dimension_numbers<[1], [0], [0], [1], [0, 0, 1, 1], [], []>, precision = #tpu.contract_precision<fp32>} : vector<128x128xf32>, vector<128x128xf32>, vector<128x128xf32> -> vector<128x128xf32>
    %14 = vector.broadcast %11 : vector<1x128xf32> to vector<128x128xf32>
    %15 = arith.addf %13, %14 : vector<128x128xf32>
    %cst_15 = arith.constant 0.000000e+00 : f32
    %16 = vector.broadcast %cst_15 : f32 to vector<128x128xf32>
    %17 = arith.maximumf %15, %16 : vector<128x128xf32>
    %c0_16 = arith.constant 0 : index
    %c0_17 = arith.constant 0 : index
    %18 = vector.load %arg6[%c0_16, %c0_17] : memref<128x128xf32, #tpu.memory_space<vmem>>, vector<128x128xf32>
    %c0_18 = arith.constant 0 : index
    %c0_19 = arith.constant 0 : index
    %19 = vector.load %arg7[%c0_18, %c0_19] : memref<1x128xf32, #tpu.memory_space<vmem>>, vector<1x128xf32>
    %cst_20 = arith.constant dense<0.000000e+00> : vector<128x128xf32>
    %20 = tpu.matmul %17, %18, %cst_20 {dimension_numbers = #tpu.dot_dimension_numbers<[1], [0], [0], [1], [0, 0, 1, 1], [], []>, precision = #tpu.contract_precision<fp32>} : vector<128x128xf32>, vector<128x128xf32>, vector<128x128xf32> -> vector<128x128xf32>
    %cst_21 = arith.constant dense<0.000000e+00> : vector<128x128xf32>
    %21 = tpu.matmul %0, %20, %cst_21 {dimension_numbers = #tpu.dot_dimension_numbers<[1], [0], [0], [1], [0, 0, 1, 1], [], []>, precision = #tpu.contract_precision<fp32>} : vector<128x128xf32>, vector<128x128xf32>, vector<128x128xf32> -> vector<128x128xf32>
    %22 = vector.broadcast %19 : vector<1x128xf32> to vector<128x128xf32>
    %23 = arith.addf %21, %22 : vector<128x128xf32>
    %24 = tpu.iota {dimensions = array<i32: 0>} : vector<128x1xi32>
    %c16_i32 = arith.constant 16 : i32
    %25 = vector.broadcast %c16_i32 : i32 to vector<128x1xi32>
    %26 = arith.cmpi slt, %24, %25 : vector<128x1xi32>
    %27 = arith.extui %26 : vector<128x1xi1> to vector<128x1xi32>
    %28 = arith.sitofp %27 : vector<128x1xi32> to vector<128x1xf32>
    %29 = vector.broadcast %28 : vector<128x1xf32> to vector<128x128xf32>
    %30 = arith.mulf %23, %29 : vector<128x128xf32>
    %cst_22 = arith.constant dense<0.000000e+00> : vector<128xf32>
    %31 = vector.multi_reduction <add>, %30, %cst_22 [0] : vector<128x128xf32> to vector<128xf32>
    %32 = vector.shape_cast %31 : vector<128xf32> to vector<1x128xf32>
    %cst_23 = arith.constant 6.250000e-02 : f32
    %33 = vector.broadcast %cst_23 : f32 to vector<1x128xf32>
    %34 = arith.mulf %32, %33 : vector<1x128xf32>
    %c0_24 = arith.constant 0 : index
    %c0_25 = arith.constant 0 : index
    %35 = vector.load %arg8[%c0_24, %c0_25] : memref<1x128xf32, #tpu.memory_space<vmem>>, vector<1x128xf32>
    %36 = arith.mulf %34, %35 : vector<1x128xf32>
    %cst_26 = arith.constant dense<0.000000e+00> : vector<1xf32>
    %37 = vector.multi_reduction <add>, %36, %cst_26 [1] : vector<1x128xf32> to vector<1xf32>
    %38 = vector.shape_cast %37 : vector<1xf32> to vector<1x1xf32>
    %39 = vector.shape_cast %38 : vector<1x1xf32> to vector<1x1xf32>
    %40 = vector.broadcast %39 : vector<1x1xf32> to vector<1x128xf32>
    %c0_27 = arith.constant 0 : index
    %c0_28 = arith.constant 0 : index
    %41 = vector.load %arg9[%c0_27, %c0_28] : memref<1x128xf32, #tpu.memory_space<vmem>>, vector<1x128xf32>
    %42 = arith.addf %40, %41 : vector<1x128xf32>
    %c0_29 = arith.constant 0 : index
    %c0_30 = arith.constant 0 : index
    %43 = vector.load %arg10[%c0_29, %c0_30] : memref<1x128xf32, #tpu.memory_space<vmem>>, vector<1x128xf32>
    tpu.vector_store %arg10[%c0_29, %c0_30], %42 {strides = array<i32>} : memref<1x128xf32, #tpu.memory_space<vmem>>, vector<1x128xf32>,
    return
  }
}

</mosaic_0001>

<bundles_post_ra>
// kernel: _gcn_forward_impl.1
= control target key start
LH: loop header
LB: loop body
LE: loop exit
PB: predicated region body
PF: predicated region fallthrough
CT: control target
= control target key end

     0   :  { %s8473_s0 = inlined_call_operand.vmem [shape: f32[128,128], index: 0, kind: input, shape index: {}]   ;;  %s8474_s1 = inlined_call_operand.vmem [shape: f32[128,128], index: 1, kind: input, shape index: {}]   ;;  %s8475_s2 = inlined_call_operand.vmem [shape: f32[128,128], index: 2, kind: input, shape index: {}]   ;;  %s8476_s3 = inlined_call_operand.vmem [shape: f32[1,128], index: 3, kind: input, shape index: {}]   ;;  %s8477_s4 = inlined_call_operand.vmem [shape: f32[128,128], index: 4, kind: input, shape index: {}]   ;;  %s8478_s5 = inlined_call_operand.vmem [shape: f32[1,128], index: 5, kind: input, shape index: {}]   ;;  %s8479_s6 = inlined_call_operand.vmem [shape: f32[128,128], index: 6, kind: input, shape index: {}]   ;;  %s8480_s7 = inlined_call_operand.vmem [shape: f32[1,128], index: 7, kind: input, shape index: {}]   ;;  %s8481_s8 = inlined_call_operand.vmem [shape: f32[1,128], index: 8, kind: input, shape index: {}]   ;;  %s8482_s9 = inlined_call_operand.vmem [shape: f32[1,128], index: 9, kind: input, shape index: {}]   ;;  %s8483_s10 = inlined_call_operand.hbm [shape: f32[1,128], index: 10, kind: output, shape index: {}]  }
   0x1   :  { %v67_v0 = vld [vmem:[%s8474_s1 + $0x78] sm:$0xff]  ;;  %v66_v1 = vld [vmem:[%s8474_s1 + $0x70] sm:$0xff]  ;;  %v65_v2 = vld [vmem:[%s8474_s1 + $0x68] sm:$0xff] }
   0x2   :  { %v5220_v3 = vand.u32 4294901760, %v67_v0  ;;  %v5222_v4 = vand.u32 4294901760, %v66_v1  ;;  %v5224_v5 = vand.u32 4294901760, %v65_v2  ;;  %v64_v6 = vld [vmem:[%s8474_s1 + $0x60] sm:$0xff]  ;;  %v63_v7 = vld [vmem:[%s8474_s1 + $0x58] sm:$0xff]  ;;  %v62_v8 = vld [vmem:[%s8474_s1 + $0x50] sm:$0xff] }
   0x3   :  { %v5235_v9 = vand.u32 4294901760, %v64_v6  ;;  %v5237_v10 = vand.u32 4294901760, %v63_v7  ;;  %v5239_v11 = vand.u32 4294901760, %v62_v8  ;;  %v61_v12 = vld [vmem:[%s8474_s1 + $0x48] sm:$0xff]  ;;  %v60_v13 = vld [vmem:[%s8474_s1 + $0x40] sm:$0xff]  ;;  %v59_v18 = vld [vmem:[%s8474_s1 + $0x38] sm:$0xff] }
   0x4   :  { %86 = vmatpush.msra.mxu0 %v5220_v3  ;;  %v5249_v14 = vsub.f32 %v67_v0, %v5220_v3  ;;  %v5252_v15 = vsub.f32 %v66_v1, %v5222_v4  ;;  %537 = vmatpush.msra.mxu3 %v5220_v3  ;;  %v5256_v16 = vsub.f32 %v65_v2, %v5224_v5  ;;  %v5258_v17 = vand.u32 4294901760, %v61_v12  ;;  %v58_v29 = vld [vmem:[%s8474_s1 + $0x30] sm:$0xff]  ;;  %v57_v36 = vld [vmem:[%s8474_s1 + $0x28] sm:$0xff] }
   0x5   :  { %v5264_v19 = vsub.f32 %v64_v6, %v5235_v9  ;;  %v5267_v20 = vsub.f32 %v63_v7, %v5237_v10  ;;  %v5269_v21 = vand.u32 4294901760, %v60_v13  ;;  %v5272_v22 = vsub.f32 %v62_v8, %v5239_v11 }
   0x6   :  { %88 = vmatpush.msra.mxu0 %v5222_v4  ;;  %409 = vmatpush.msra.mxu2 %v5249_v14  ;;  %v248_v23 = vand.u32 4294901760, %v5249_v14  ;;  %v254_v24 = vand.u32 4294901760, %v5252_v15  ;;  %v260_v25 = vand.u32 4294901760, %v5256_v16  ;;  %v5281_v27 = vand.u32 4294901760, %v59_v18 }
   0x7   :  { %539 = vmatpush.msra.mxu3 %v5222_v4  ;;  %v266_v26 = vand.u32 4294901760, %v5264_v19  ;;  %v5284_v28 = vsub.f32 %v61_v12, %v5258_v17  ;;  %v272_v33 = vand.u32 4294901760, %v5267_v20  ;;  %v278_v34 = vand.u32 4294901760, %v5272_v22 }
   0x8   :  { %90 = vmatpush.msra.mxu0 %v5224_v5  ;;  %412 = vmatpush.msra.mxu2 %v5252_v15  ;;  %v249_v30 = vsub.f32 %v5249_v14, %v248_v23  ;;  %v255_v31 = vsub.f32 %v5252_v15, %v254_v24  ;;  %v261_v32 = vsub.f32 %v5256_v16, %v260_v25 }
   0x9   :  { %541 = vmatpush.msra.mxu3 %v5224_v5  ;;  %v5304_v35 = vsub.f32 %v60_v13, %v5269_v21 }
   0xa   :  { %15 = vsyncpa [#allocation3], 0  ;;  %92 = vmatpush.msra.mxu0 %v5235_v9  ;;  %v250_v37 = vand.u32 4294901760, %v249_v30  ;;  %415 = vmatpush.msra.mxu2 %v5256_v16  ;;  %v256_v38 = vand.u32 4294901760, %v255_v31  ;;  %v267_v39 = vsub.f32 %v5264_v19, %v266_v26  ;;  %v5314_v40 = vand.u32 4294901760, %v58_v29  ;;  %v56_v43 = vld [vmem:[%s8474_s1 + $0x20] sm:$0xff] }
   0xb   :  { %543 = vmatpush.msra.mxu3 %v5235_v9  ;;  %v284_v41 = vand.u32 4294901760, %v5284_v28  ;;  %v5319_v42 = vsub.f32 %v59_v18, %v5281_v27  ;;  %v262_v44 = vand.u32 4294901760, %v261_v32  ;;  %v273_v45 = vsub.f32 %v5267_v20, %v272_v33  ;;  %v55_v49 = vld [vmem:[%s8474_s1 + $0x18] sm:$0xff]  ;;  %v54_v55 = vld [vmem:[%s8474_s1 + $0x10] sm:$0xff]  ;;  %v36_v56 = vld [vmem:[%s8473_s0] sm:$0xff]  ;;  %s5155_s23 = smov [#allocation2]  }
   0xc   :  { %94 = vmatpush.msra.mxu0 %v5237_v10  ;;  %251 = vmatpush.msra.mxu1 %v250_v37  ;;  %v5328_v46 = vand.u32 4294901760, %v57_v36  ;;  %v279_v47 = vsub.f32 %v5272_v22, %v278_v34  ;;  %v290_v48 = vand.u32 4294901760, %v5304_v35  ;;  %v268_v50 = vand.u32 4294901760, %v267_v39  ;;  %v53_v62 = vld [vmem:[%s8474_s1 + $0x8] sm:$0xff]  ;;  %v52_v8 = vld [vmem:[%s8474_s1] sm:$0xff]  ;;  %s5115_s25 = sshll.u32 %s8483_s10, 4  ;;  %s5116_s25 = int_to_ptr.hbm [resolvable:$true] %s5115_s25 }
   0xd   :  { %418 = vmatpush.msra.mxu2 %v5264_v19  ;;  %545 = vmatpush.msra.mxu3 %v5237_v10  ;;  %v5340_v51 = vand.u32 4294901760, %v56_v43  ;;  %v5343_v52 = vsub.f32 %v58_v29, %v5314_v40  ;;  %v285_v53 = vsub.f32 %v5284_v28, %v284_v41  ;;  %v296_v54 = vand.u32 4294901760, %v5319_v42  ;;  %v37_v30 = vld [vmem:[%s8473_s0 + $0x8] sm:$0xff]  ;;  %v40_v14 = vld [vmem:[%s8473_s0 + $0x20] sm:$0xff] }
   0xe   :  { %96 = vmatpush.msra.mxu0 %v5239_v11  ;;  %257 = vmatpush.msra.mxu1 %v256_v38  ;;  %v274_v57 = vand.u32 4294901760, %v273_v45  ;;  %v5358_v58 = vand.u32 4294901760, %v55_v49  ;;  %v5361_v59 = vsub.f32 %v57_v36, %v5328_v46  ;;  %v280_v60 = vand.u32 4294901760, %v279_v47 }
   0xf   :  { %421 = vmatpush.msra.mxu2 %v5267_v20  ;;  %547 = vmatpush.msra.mxu3 %v5239_v11  ;;  %v291_v61 = vsub.f32 %v5304_v35, %v290_v48  ;;  %v5372_v63 = vand.u32 4294901760, %v54_v55  ;;  %v302_v0 = vand.u32 4294901760, %v5343_v52  ;;  %v5376_v1 = vsub.f32 %v56_v43, %v5340_v51 }
  0x10   :  { %98 = vmatpush.msra.mxu0 %v5258_v17  ;;  %263 = vmatpush.msra.mxu1 %v262_v44  ;;  %v5378_v2 = vand.u32 4294901760, %v36_v56  ;;  %v286_v6 = vand.u32 4294901760, %v285_v53  ;;  %v297_v7 = vsub.f32 %v5319_v42, %v296_v54  ;;  %v5389_v12 = vand.u32 4294901760, %v53_v62 }
  0x11   :  { %424 = vmatpush.msra.mxu2 %v5272_v22  ;;  %549 = vmatpush.msra.mxu3 %v5258_v17  ;;  %v308_v13 = vand.u32 4294901760, %v5361_v59  ;;  %v5393_v18 = vsub.f32 %v55_v49, %v5358_v58  ;;  %v292_v31 = vand.u32 4294901760, %v291_v61  ;;  %v303_v32 = vsub.f32 %v5343_v52, %v302_v0 }
  0x12   :  { %100 = vmatpush.msra.mxu0 %v5269_v21  ;;  %269 = vmatpush.msra.mxu1 %v268_v50  ;;  %8675 = vst [vmem:[#allocation5_spill] sm:$0xff] %v5378_v2  ;;  %v5396_v29 = vsub.f32 %v36_v56, %v5378_v2  ;;  %v5407_v36 = vand.u32 4294901760, %v52_v8  ;;  %v314_v37 = vand.u32 4294901760, %v5376_v1  ;;  %v5411_v38 = vsub.f32 %v54_v55, %v5372_v63 }
  0x13   :  { %427 = vmatpush.msra.mxu2 %v5284_v28  ;;  %551 = vmatpush.msra.mxu3 %v5269_v21  ;;  %v5418_v43 = vand.u32 4294901760, %v37_v30  ;;  %v298_v44 = vand.u32 4294901760, %v297_v7  ;;  %v309_v45 = vsub.f32 %v5361_v59, %v308_v13  ;;  %v320_v47 = vand.u32 4294901760, %v5393_v18  ;;  %v38_v7 = vld [vmem:[%s8473_s0 + $0x10] sm:$0xff] }
  0x14   :  { %102 = vmatpush.msra.mxu0 %v5281_v27  ;;  %275 = vmatpush.msra.mxu1 %v274_v57  ;;  %8676 = vst [vmem:[#allocation6_spill] sm:$0xff] %v5396_v29  ;;  %v5416_v39 = vand.u32 4294901760, %v5396_v29  ;;  %v5426_v49 = vsub.f32 %v53_v62, %v5389_v12  ;;  %v304_v50 = vand.u32 4294901760, %v303_v32  ;;  %v315_v53 = vsub.f32 %v5376_v1, %v314_v37 }
  0x15   :  { %430 = vmatpush.msra.mxu2 %v5304_v35  ;;  %553 = vmatpush.msra.mxu3 %v5281_v27  ;;  %8678 = vst [vmem:[#allocation8_spill] sm:$0xff] %v5418_v43  ;;  %v8484_v55 = vand.u32 4294901760, %v5411_v38  ;;  %v5436_v56 = vsub.f32 %v52_v8, %v5407_v36  ;;  %v310_v61 = vand.u32 4294901760, %v309_v45  ;;  %v321_v62 = vsub.f32 %v5393_v18, %v320_v47 }
  0x16   :  { %104 = vmatpush.msra.mxu0 %v5314_v40  ;;  %281 = vmatpush.msra.mxu1 %v280_v60  ;;  %8677 = vst [vmem:[#allocation7_spill] sm:$0xff] %v5416_v39  ;;  %v120_v57 = vsub.f32 %v5396_v29, %v5416_v39  ;;  %v5443_v60 = vsub.f32 %v37_v30, %v5418_v43  ;;  %v316_v8 = vand.u32 4294901760, %v315_v53  ;;  %v5467_v45 = vand.u32 4294901760, %v38_v7 }
  0x17   :  { %433 = vmatpush.msra.mxu2 %v5319_v42  ;;  %555 = vmatpush.msra.mxu3 %v5314_v40  ;;  %v327_v30 = vsub.f32 %v5411_v38, %v8484_v55  ;;  %v8705_v42 = vand.u32 4294901760, %v5436_v56  ;;  %vm5101_vm0 = vcmask 1040384  }
  0x18   :  { %106 = vmatpush.msra.mxu0 %v5328_v46  ;;  %287 = vmatpush.msra.mxu1 %v286_v6  ;;  %8679 = vst [vmem:[#allocation9_spill] sm:$0xff] %v5443_v60  ;;  %v8485_v6 = vand.u32 4294901760, %v5426_v49  ;;  %v5461_v32 = vand.u32 4294901760, %v120_v57 }
  0x19   :  { %436 = vmatpush.msra.mxu2 %v5343_v52  ;;  %557 = vmatpush.msra.mxu3 %v5328_v46  ;;  %8682 = vst [vmem:[#allocation12_spill] sm:$0xff] %v5467_v45  ;;  %v328_v57 = vand.u32 4294901760, %v327_v30 }
  0x1a   :  { %108 = vmatpush.msra.mxu0 %v5340_v51  ;;  %293 = vmatpush.msra.mxu1 %v292_v31  ;;  %v8486_v31 = vand.u32 4294901760, %v5436_v56  ;;  %8680 = vst [vmem:[#allocation10_spill] sm:$0xff] %v5461_v32  ;;  %v333_v53 = vsub.f32 %v5426_v49, %v8485_v6 }
  0x1b   :  { %439 = vmatpush.msra.mxu2 %v5361_v59  ;;  %559 = vmatpush.msra.mxu3 %v5340_v51 }
  0x1c   :  { %110 = vmatpush.msra.mxu0 %v5358_v58  ;;  %299 = vmatpush.msra.mxu1 %v298_v44  ;;  %v5465_v44 = vand.u32 4294901760, %v5443_v60  ;;  %v339_v55 = vsub.f32 %v5436_v56, %v8486_v31  ;;  %v334_v6 = vand.u32 4294901760, %v333_v53 }
  0x1d   :  { %442 = vmatpush.msra.mxu2 %v5376_v1  ;;  %561 = vmatpush.msra.mxu3 %v5358_v58 }
  0x1e   :  { %112 = vmatpush.msra.mxu0 %v5372_v63  ;;  %305 = vmatpush.msra.mxu1 %v304_v50  ;;  %8681 = vst [vmem:[#allocation11_spill] sm:$0xff] %v5465_v44  ;;  %v322_v50 = vand.u32 4294901760, %v321_v62  ;;  %v5484_v62 = vsub.f32 %v38_v7, %v5467_v45  ;;  %v340_v30 = vand.u32 4294901760, %v339_v55 }
  0x1f   :  { %445 = vmatpush.msra.mxu2 %v5393_v18  ;;  %563 = vmatpush.msra.mxu3 %v5372_v63 }
  0x20   :  { %114 = vmatpush.msra.mxu0 %v5389_v12  ;;  %311 = vmatpush.msra.mxu1 %v310_v61  ;;  %v128_v61 = vsub.f32 %v5443_v60, %v5465_v44  ;;  %8683 = vst [vmem:[#allocation13_spill] sm:$0xff] %v5484_v62  ;;  %v5496_v7 = vand.u32 4294901760, %v5484_v62 }
  0x21   :  { %448 = vmatpush.msra.mxu2 %v5411_v38  ;;  %565 = vmatpush.msra.mxu3 %v5389_v12 }
  0x22   :  { %116 = vmatpush.msra.mxu0 %v5407_v36  ;;  %317 = vmatpush.msra.mxu1 %v316_v8  ;;  %v39_v8 = vld [vmem:[%s8473_s0 + $0x18] sm:$0xff]  ;;  %v5493_v31 = vand.u32 4294901760, %v128_v61  ;;  %8685 = vst [vmem:[#allocation15_spill] sm:$0xff] %v5496_v7  ;;  %v136_v55 = vsub.f32 %v5484_v62, %v5496_v7 }
  0x23   :  { %122 = vmatmul.f32.vlgmr.msra.gmra.mxu0 %v5461_v32  ;;  %451 = vmatpush.msra.mxu2 %v5426_v49 }
  0x24   :  { %323 = vmatpush.msra.mxu1 %v322_v50  ;;  %567 = vmatpush.msra.mxu3 %v5407_v36  ;;  %8684 = vst [vmem:[#allocation14_spill] sm:$0xff] %v5493_v31  ;;  %v5498_v50 = vand.u32 4294901760, %v39_v8  ;;  %v5521_v15 = vand.u32 4294901760, %v136_v55 }
  0x25   :  { %454 = vmatpush.msra.mxu2 %v5436_v56  ;;  %571 = vmatmul.f32.vlgmr.msra.gmra.mxu3 %v5416_v39 }
  0x26   :  { %329 = vmatpush.msra.mxu1 %v328_v57  ;;  %457 = vmatmul.f32.vlgmr.msra.gmra.mxu2 %v5396_v29  ;;  %8686 = vst [vmem:[#allocation16_spill] sm:$0xff] %v5498_v50  ;;  %v5509_v53 = vsub.f32 %v39_v8, %v5498_v50 }
  0x27   :  { %668 = vmatpush.msrb.mxu0 %v248_v23  ;;  %8688 = vst [vmem:[#allocation18_spill] sm:$0xff] %v5521_v15 }
  0x28   :  { %335 = vmatpush.msra.mxu1 %v334_v6  ;;  %8687 = vst [vmem:[#allocation17_spill] sm:$0xff] %v5509_v53  ;;  %v5524_v23 = vand.u32 4294901760, %v5509_v53  ;;  %v47_v6 = vld [vmem:[%s8473_s0 + $0x58] sm:$0xff] }
  0x29   :  { %672 = vmatpush.msrb.mxu0 %v254_v24  ;;  %v5526_v24 = vand.u32 4294901760, %v40_v14  ;;  %v5698_v8 = vand.u32 4294901760, %v47_v6 }
  0x2a   :  { %341 = vmatpush.msra.mxu1 %v340_v30  ;;  %8689 = vst [vmem:[#allocation19_spill] sm:$0xff] %v5524_v23 }
  0x2b   :  { %130 = vmatmul.f32.gmra.mxu0 %v5493_v31  ;;  %343 = vmatmul.f32.vlgmr.msra.gmra.mxu1 %v5378_v2  ;;  %8690 = vst [vmem:[#allocation20_spill] sm:$0xff] %v5526_v24  ;;  %v5539_v16 = vsub.f32 %v40_v14, %v5526_v24  ;;  %v5705_v55 = vsub.f32 %v47_v6, %v5698_v8  ;;  %v48_v14 = vld [vmem:[%s8473_s0 + $0x60] sm:$0xff] }
  0x2c   :  { %676 = vmatpush.msrb.mxu0 %v260_v25  ;;  %795 = vmatpush.msrb.mxu1 %v5220_v3  ;;  %v144_v3 = vsub.f32 %v5509_v53, %v5524_v23  ;;  %8721 = vst [vmem:[#allocation48_spill] sm:$0xff] %v5698_v8 }
  0x2d   :  { %577 = vmatmul.f32.gmra.mxu3 %v5465_v44  ;;  %8691 = vst [vmem:[#allocation21_spill] sm:$0xff] %v5539_v16  ;;  %v5554_v19 = vand.u32 4294901760, %v5539_v16 }
  0x2e   :  { %462 = vmatmul.f32.gmra.mxu2 %v5443_v60  ;;  %680 = vmatpush.msrb.mxu0 %v266_v26  ;;  %8722 = vst [vmem:[#allocation49_spill] sm:$0xff] %v5705_v55 }
  0x2f   :  { %797 = vmatpush.msrb.mxu1 %v5222_v4  ;;  %v41_v4 = vld [vmem:[%s8473_s0 + $0x28] sm:$0xff]  ;;  %8693 = vst [vmem:[#allocation23_spill] sm:$0xff] %v5554_v19 }
  0x30   :  { %684 = vmatpush.msrb.mxu0 %v272_v33  ;;  %v5556_v20 = vand.u32 4294901760, %v41_v4 }
  0x31   :  { %799 = vmatpush.msrb.mxu1 %v5224_v5  ;;  %v5551_v5 = vand.u32 4294901760, %v144_v3 }
  0x32   :  { %688 = vmatpush.msrb.mxu0 %v278_v34  ;;  %8694 = vst [vmem:[#allocation24_spill] sm:$0xff] %v5556_v20  ;;  %v5569_v22 = vsub.f32 %v41_v4, %v5556_v20  ;;  %v5715_v4 = vand.u32 4294901760, %v5705_v55 }
  0x33   :  { %138 = vmatmul.f32.gmra.mxu0 %v5521_v15  ;;  %347 = vmatmul.f32.gmra.mxu1 %v5418_v43  ;;  %8692 = vst [vmem:[#allocation22_spill] sm:$0xff] %v5551_v5 }
  0x34   :  { %692 = vmatpush.msrb.mxu0 %v284_v41  ;;  %801 = vmatpush.msrb.mxu1 %v5235_v9  ;;  %v152_v9 = vsub.f32 %v5539_v16, %v5554_v19  ;;  %8695 = vst [vmem:[#allocation25_spill] sm:$0xff] %v5569_v22  ;;  %v5584_v25 = vand.u32 4294901760, %v5569_v22 }
  0x35   :  { %583 = vmatmul.f32.gmra.mxu3 %v5496_v7  ;;  %8724 = vst [vmem:[#allocation51_spill] sm:$0xff] %v5715_v4 }
  0x36   :  { %467 = vmatmul.f32.gmra.mxu2 %v5484_v62  ;;  %696 = vmatpush.msrb.mxu0 %v290_v48  ;;  %8697 = vst [vmem:[#allocation27_spill] sm:$0xff] %v5584_v25  ;;  %v160_v28 = vsub.f32 %v5569_v22, %v5584_v25  ;;  %v44_v48 = vld [vmem:[%s8473_s0 + $0x40] sm:$0xff] }
  0x37   :  { %803 = vmatpush.msrb.mxu1 %v5237_v10  ;;  %v42_v10 = vld [vmem:[%s8473_s0 + $0x30] sm:$0xff] }
  0x38   :  { %700 = vmatpush.msrb.mxu0 %v296_v54  ;;  %v5586_v26 = vand.u32 4294901760, %v42_v10  ;;  %v5610_v34 = vand.u32 4294901760, %v160_v28  ;;  %v5640_v54 = vand.u32 4294901760, %v44_v48  ;;  %v49_v28 = vld [vmem:[%s8473_s0 + $0x68] sm:$0xff] }
  0x39   :  { %805 = vmatpush.msrb.mxu1 %v5239_v11  ;;  %v5581_v11 = vand.u32 4294901760, %v152_v9  ;;  %v5717_v9 = vand.u32 4294901760, %v48_v14 }
  0x3a   :  { %704 = vmatpush.msrb.mxu0 %v302_v0  ;;  %8698 = vst [vmem:[#allocation28_spill] sm:$0xff] %v5586_v26  ;;  %v5599_v33 = vsub.f32 %v42_v10, %v5586_v26  ;;  %v5648_v59 = vsub.f32 %v44_v48, %v5640_v54  ;;  %v208_v10 = vsub.f32 %v5705_v55, %v5715_v4 }
  0x3b   :  { %146 = vmatmul.f32.gmra.mxu0 %v5551_v5  ;;  %351 = vmatmul.f32.gmra.mxu1 %v5467_v45  ;;  %8696 = vst [vmem:[#allocation26_spill] sm:$0xff] %v5581_v11 }
  0x3c   :  { %708 = vmatpush.msrb.mxu0 %v308_v13  ;;  %807 = vmatpush.msrb.mxu1 %v5258_v17  ;;  %v8699_v17 = vand.u32 4294901760, %v5411_v38  ;;  %8700 = vst [vmem:[#allocation29_spill] sm:$0xff] %v5599_v33  ;;  %v5613_v35 = vand.u32 4294901760, %v5599_v33  ;;  %v5658_v1 = vand.u32 4294901760, %v5648_v59 }
  0x3d   :  { %589 = vmatmul.f32.gmra.mxu3 %v5524_v23  ;;  %8702 = vst [vmem:[#allocation30_spill] sm:$0xff] %v5610_v34  ;;  %v76_v23 = vld [vmem:[%s8475_s2 + $0x40] sm:$0xff] }
  0x3e   :  { %472 = vmatmul.f32.gmra.mxu2 %v5509_v53  ;;  %712 = vmatpush.msrb.mxu0 %v314_v37  ;;  %8703 = vst [vmem:[#allocation31_spill] sm:$0xff] %v5613_v35  ;;  %v184_v13 = vsub.f32 %v5648_v59, %v5658_v1 }
  0x3f   :  { %809 = vmatpush.msrb.mxu1 %v5269_v21  ;;  %v43_v21 = vld [vmem:[%s8473_s0 + $0x38] sm:$0xff]  ;;  %8709 = vst [vmem:[#allocation36_spill] sm:$0xff] %v5640_v54 }
  0x40   :  { %716 = vmatpush.msrb.mxu0 %v320_v47  ;;  %v5615_v41 = vand.u32 4294901760, %v43_v21  ;;  %8710 = vst [vmem:[#allocation37_spill] sm:$0xff] %v5648_v59  ;;  %v5674_v37 = vand.u32 4294901760, %v184_v13 }
  0x41   :  { %811 = vmatpush.msrb.mxu1 %v5281_v27  ;;  %v8701_v27 = vand.u32 4294901760, %v5426_v49  ;;  %8712 = vst [vmem:[#allocation39_spill] sm:$0xff] %v5658_v1 }
  0x42   :  { %720 = vmatpush.msrb.mxu0 %v8699_v17  ;;  %8704 = vst [vmem:[#allocation32_spill] sm:$0xff] %v5615_v41  ;;  %v5724_v17 = vsub.f32 %v48_v14, %v5717_v9 }
  0x43   :  { %154 = vmatmul.f32.gmra.mxu0 %v5581_v11  ;;  %355 = vmatmul.f32.gmra.mxu1 %v5498_v50  ;;  %8715 = vst [vmem:[#allocation42_spill] sm:$0xff] %v5674_v37 }
  0x44   :  { %813 = vmatpush.msrb.mxu1 %v5314_v40  ;;  %724 = vmatpush.msrb.mxu0 %v8701_v27  ;;  %v168_v40 = vsub.f32 %v5599_v33, %v5613_v35  ;;  %8725 = vst [vmem:[#allocation52_spill] sm:$0xff] %v5717_v9  ;;  %v5734_v27 = vand.u32 4294901760, %v5724_v17 }
  0x45   :  { %595 = vmatmul.f32.gmra.mxu3 %v5554_v19  ;;  %8726 = vst [vmem:[#allocation53_spill] sm:$0xff] %v5724_v17  ;;  %v77_v19 = vld [vmem:[%s8475_s2 + $0x48] sm:$0xff] }
  0x46   :  { %477 = vmatmul.f32.gmra.mxu2 %v5539_v16  ;;  %815 = vmatpush.msrb.mxu1 %v5328_v46  ;;  %v5626_v46 = vsub.f32 %v43_v21, %v5615_v41  ;;  %v5731_v21 = vand.u32 4294901760, %v208_v10  ;;  %8728 = vst [vmem:[#allocation55_spill] sm:$0xff] %v5734_v27  ;;  %v5944_v11 = vand.u32 4294901760, %v77_v19 }
  0x47   :  { %728 = vmatpush.msrb.mxu0 %v8705_v42  ;;  %v5736_v42 = vand.u32 4294901760, %v49_v28 }
  0x48   :  { %817 = vmatpush.msrb.mxu1 %v5340_v51  ;;  %8706 = vst [vmem:[#allocation33_spill] sm:$0xff] %v5626_v46  ;;  %v5635_v51 = vand.u32 4294901760, %v168_v40  ;;  %v5638_v52 = vand.u32 4294901760, %v5626_v46  ;;  %v216_v40 = vsub.f32 %v5724_v17, %v5734_v27 }
  0x49   :  { %8727 = vst [vmem:[#allocation54_spill] sm:$0xff] %v5731_v21  ;;  %v5743_v48 = vsub.f32 %v49_v28, %v5736_v42 }
  0x4a   :  { %819 = vmatpush.msrb.mxu1 %v5358_v58  ;;  %8707 = vst [vmem:[#allocation34_spill] sm:$0xff] %v5635_v51  ;;  %v176_v58 = vsub.f32 %v5626_v46, %v5638_v52 }
  0x4b   :  { %162 = vmatmul.f32.gmra.mxu0 %v5610_v34  ;;  %359 = vmatmul.f32.gmra.mxu1 %v5526_v24  ;;  %8708 = vst [vmem:[#allocation35_spill] sm:$0xff] %v5638_v52  ;;  %v5753_v13 = vand.u32 4294901760, %v5743_v48 }
  0x4c   :  { %821 = vmatpush.msrb.mxu1 %v5372_v63  ;;  %v45_v63 = vld [vmem:[%s8473_s0 + $0x48] sm:$0xff]  ;;  %v5655_v0 = vand.u32 4294901760, %v176_v58  ;;  %8729 = vst [vmem:[#allocation56_spill] sm:$0xff] %v5736_v42  ;;  %v50_v58 = vld [vmem:[%s8473_s0 + $0x70] sm:$0xff] }
  0x4d   :  { %601 = vmatmul.f32.gmra.mxu3 %v5584_v25  ;;  %8730 = vst [vmem:[#allocation57_spill] sm:$0xff] %v5743_v48 }
  0x4e   :  { %482 = vmatmul.f32.gmra.mxu2 %v5569_v22  ;;  %823 = vmatpush.msrb.mxu1 %v5389_v12  ;;  %8711 = vst [vmem:[#allocation38_spill] sm:$0xff] %v5655_v0  ;;  %v5660_v12 = vand.u32 4294901760, %v45_v63 }
  0x4f   :  { %8732 = vst [vmem:[#allocation59_spill] sm:$0xff] %v5753_v13 }
  0x50   :  { %825 = vmatpush.msrb.mxu1 %v5407_v36  ;;  %8713 = vst [vmem:[#allocation40_spill] sm:$0xff] %v5660_v12  ;;  %v5667_v18 = vsub.f32 %v45_v63, %v5660_v12  ;;  %v46_v36 = vld [vmem:[%s8473_s0 + $0x50] sm:$0xff]  ;;  %v5750_v63 = vand.u32 4294901760, %v216_v40 }
  0x51   :  { %v5679_v47 = vand.u32 4294901760, %v46_v36 }
  0x52   :  { %8714 = vst [vmem:[#allocation41_spill] sm:$0xff] %v5667_v18  ;;  %v5677_v38 = vand.u32 4294901760, %v5667_v18 }
  0x53   :  { %170 = vmatmul.f32.gmra.mxu0 %v5635_v51  ;;  %363 = vmatmul.f32.gmra.mxu1 %v5556_v20  ;;  %8717 = vst [vmem:[#allocation44_spill] sm:$0xff] %v5679_v47  ;;  %v5686_v56 = vsub.f32 %v46_v36, %v5679_v47  ;;  %v5755_v36 = vand.u32 4294901760, %v50_v58  ;;  %v79_v51 = vld [vmem:[%s8475_s2 + $0x58] sm:$0xff] }
  0x54   :  { %8716 = vst [vmem:[#allocation43_spill] sm:$0xff] %v5677_v38  ;;  %v192_v49 = vsub.f32 %v5667_v18, %v5677_v38  ;;  %v5913_v22 = vand.u32 4294901760, %v79_v51 }
  0x55   :  { %607 = vmatmul.f32.gmra.mxu3 %v5613_v35  ;;  %8718 = vst [vmem:[#allocation45_spill] sm:$0xff] %v5686_v56  ;;  %v5696_v61 = vand.u32 4294901760, %v5686_v56  ;;  %v5762_v6 = vsub.f32 %v50_v58, %v5755_v36 }
  0x56   :  { %487 = vmatmul.f32.gmra.mxu2 %v5599_v33  ;;  %v5693_v57 = vand.u32 4294901760, %v192_v49  ;;  %8731 = vst [vmem:[#allocation58_spill] sm:$0xff] %v5750_v63  ;;  %v224_v49 = vsub.f32 %v5743_v48, %v5753_v13 }
  0x57   :  { %8720 = vst [vmem:[#allocation47_spill] sm:$0xff] %v5696_v61  ;;  %v200_v30 = vsub.f32 %v5686_v56, %v5696_v61  ;;  %v5772_v10 = vand.u32 4294901760, %v5762_v6 }
  0x58   :  { %8719 = vst [vmem:[#allocation46_spill] sm:$0xff] %v5693_v57  ;;  %v5769_v14 = vand.u32 4294901760, %v224_v49 }
  0x59   :  { %v5712_v3 = vand.u32 4294901760, %v200_v30  ;;  %8733 = vst [vmem:[#allocation60_spill] sm:$0xff] %v5755_v36  ;;  %v51_v30 = vld [vmem:[%s8473_s0 + $0x78] sm:$0xff]  ;;  %v232_v40 = vsub.f32 %v5762_v6, %v5772_v10 }
  0x5a   :  { %8734 = vst [vmem:[#allocation61_spill] sm:$0xff] %v5762_v6  ;;  %v5774_v28 = vand.u32 4294901760, %v51_v30 }
  0x5b   :  { %178 = vmatmul.f32.gmra.mxu0 %v5655_v0  ;;  %367 = vmatmul.f32.gmra.mxu1 %v5586_v26  ;;  %8723 = vst [vmem:[#allocation50_spill] sm:$0xff] %v5712_v3  ;;  %v5785_v49 = vand.u32 4294901760, %v232_v40  ;;  %v80_v0 = vld [vmem:[%s8475_s2 + $0x60] sm:$0xff] }
  0x5c   :  { %8735 = vst [vmem:[#allocation62_spill] sm:$0xff] %v5769_v14  ;;  %v5781_v58 = vsub.f32 %v51_v30, %v5774_v28  ;;  %v5896_v33 = vand.u32 4294901760, %v80_v0 }
  0x5d   :  { %613 = vmatmul.f32.gmra.mxu3 %v5638_v52  ;;  %8736 = vst [vmem:[#allocation63_spill] sm:$0xff] %v5772_v10 }
  0x5e   :  { %492 = vmatmul.f32.gmra.mxu2 %v5626_v46  ;;  %8737 = vst [vmem:[#allocation64_spill] sm:$0xff] %v5774_v28  ;;  %v5909_v25 = vsub.f32 %v80_v0, %v5896_v33 }
  0x5f   :  { %8738 = vst [vmem:[#allocation65_spill] sm:$0xff] %v5781_v58 }
  0x60   :  { %8739 = vst [vmem:[#allocation66_spill] sm:$0xff] %v5785_v49  ;;  %v8576_v0 = vand.u32 4294901760, %v5909_v25 }
  0x62   :  { %v1076_v16 = vsub.f32 %v5909_v25, %v8576_v0  ;;  %v5954_v0 = vsub.f32 %v77_v19, %v5944_v11 }
  0x63   :  { %186 = vmatmul.f32.gmra.mxu0 %v5674_v37  ;;  %371 = vmatmul.f32.gmra.mxu1 %v5615_v41 }
  0x65   :  { %619 = vmatmul.f32.gmra.mxu3 %v5658_v1 }
  0x66   :  { %497 = vmatmul.f32.gmra.mxu2 %v5648_v59  ;;  %v81_v59 = vld [vmem:[%s8475_s2 + $0x68] sm:$0xff] }
  0x6b   :  { %194 = vmatmul.f32.gmra.mxu0 %v5693_v57  ;;  %375 = vmatmul.f32.gmra.mxu1 %v5640_v54 }
  0x6d   :  { %625 = vmatmul.f32.gmra.mxu3 %v5677_v38 }
  0x6e   :  { %502 = vmatmul.f32.gmra.mxu2 %v5667_v18  ;;  %v82_v18 = vld [vmem:[%s8475_s2 + $0x70] sm:$0xff] }
  0x6f   :  { %v5865_v1 = vand.u32 4294901760, %v82_v18 }
  0x71   :  { %v5878_v46 = vsub.f32 %v82_v18, %v5865_v1 }
  0x73   :  { %202 = vmatmul.f32.gmra.mxu0 %v5712_v3  ;;  %379 = vmatmul.f32.gmra.mxu1 %v5660_v12  ;;  %v83_v3 = vld [vmem:[%s8475_s2 + $0x78] sm:$0xff]  ;;  %v8560_v35 = vand.u32 4294901760, %v5878_v46 }
  0x74   :  { %v5857_v38 = vand.u32 4294901760, %v83_v3 }
  0x75   :  { %631 = vmatmul.f32.gmra.mxu3 %v5696_v61 }
  0x76   :  { %507 = vmatmul.f32.gmra.mxu2 %v5686_v56  ;;  %v5863_v57 = vsub.f32 %v83_v3, %v5857_v38  ;;  %1346 = vmatpush.msra.mxu1 %v5857_v38  ;;  %v5881_v3 = vand.u32 4294901760, %v81_v59 }
  0x77   :  { %895 = vmatpush.msrb.mxu2 %v5857_v38 }
  0x78   :  { %v8551_v52 = vand.u32 4294901760, %v5863_v57  ;;  %1218 = vmatpush.msra.mxu0 %v5863_v57  ;;  %1348 = vmatpush.msra.mxu1 %v5865_v1  ;;  %v5893_v18 = vsub.f32 %v81_v59, %v5881_v3  ;;  %v1064_v59 = vsub.f32 %v5878_v46, %v8560_v35 }
  0x79   :  { %897 = vmatpush.msrb.mxu2 %v5865_v1 }
  0x7a   :  { %1221 = vmatpush.msra.mxu0 %v5878_v46  ;;  %1350 = vmatpush.msra.mxu1 %v5881_v3 }
  0x7b   :  { %210 = vmatmul.f32.gmra.mxu0 %v5731_v21  ;;  %383 = vmatmul.f32.gmra.mxu1 %v5679_v47 }
  0x7c   :  { %1224 = vmatpush.msra.mxu0 %v5893_v18  ;;  %1352 = vmatpush.msra.mxu1 %v5896_v33 }
  0x7d   :  { %637 = vmatmul.f32.gmra.mxu3 %v5715_v4  ;;  %899 = vmatpush.msrb.mxu2 %v5881_v3 }
  0x7e   :  { %512 = vmatmul.f32.gmra.mxu2 %v5705_v55  ;;  %1227 = vmatpush.msra.mxu0 %v5909_v25 }
  0x7f   :  { %1354 = vmatpush.msra.mxu1 %v5913_v22  ;;  %901 = vmatpush.msrb.mxu2 %v5896_v33 }
  0x81   :  { %903 = vmatpush.msrb.mxu2 %v5913_v22 }
  0x83   :  { %218 = vmatmul.f32.gmra.mxu0 %v5750_v63  ;;  %387 = vmatmul.f32.gmra.mxu1 %v5698_v8 }
  0x85   :  { %643 = vmatmul.f32.gmra.mxu3 %v5734_v27  ;;  %v5788_v27 = vand.u32 4294901760, %v5781_v58 }
  0x86   :  { %517 = vmatmul.f32.gmra.mxu2 %v5724_v17 }
  0x87   :  { %8740 = vst [vmem:[#allocation67_spill] sm:$0xff] %v5788_v27 }
  0x8b   :  { %226 = vmatmul.f32.gmra.mxu0 %v5769_v14  ;;  %391 = vmatmul.f32.gmra.mxu1 %v5717_v9  ;;  %v240_v14 = vsub.f32 %v5781_v58, %v5788_v27 }
  0x8d   :  { %649 = vmatmul.f32.gmra.mxu3 %v5753_v13  ;;  %v5796_v30 = vand.u32 4294901760, %v240_v14 }
  0x8e   :  { %522 = vmatmul.f32.gmra.mxu2 %v5743_v48 }
  0x8f   :  { %8741 = vst [vmem:[#allocation68_spill] sm:$0xff] %v5796_v30 }
  0x93   :  { %234 = vmatmul.f32.gmra.mxu0 %v5785_v49  ;;  %395 = vmatmul.f32.gmra.mxu1 %v5736_v42 }
  0x95   :  { %655 = vmatmul.f32.gmra.mxu3 %v5772_v10 }
  0x96   :  { %527 = vmatmul.f32.gmra.mxu2 %v5762_v6 }
  0x9b   :  { %242 = vmatmul.f32.gmra.mxu0 %v5796_v30  ;;  %399 = vmatmul.f32.gmra.mxu1 %v5755_v36 }
  0x9d   :  { %661 = vmatmul.f32.gmra.mxu3 %v5788_v27 }
  0x9e   :  { %532 = vmatmul.f32.gmra.mxu2 %v5781_v58 }
  0xa0   :  { %v5802_v40 = vpop.f32.mrf.mxu0 }
  0xa3   :  { %403 = vmatmul.f32.gmra.mxu1 %v5774_v28  ;;  %730 = vmatmul.f32.vlgmr.msrb.gmra.mxu0 %v5378_v2 }
  0xa8   :  { %v5806_v49 = vpop.f32.mrf.mxu0  ;;  %v5808_v10 = vpop.f32.mrf.mxu1 }
  0xa9   :  { %v6056_v32 = vpop.f32.mrf.mxu2 }
  0xab   :  { %734 = vmatmul.f32.gmra.mxu0 %v5418_v43  ;;  %827 = vmatmul.f32.vlgmr.msrb.gmra.mxu1 %v5378_v2 }
  0xb0   :  { %v5812_v14 = vpop.f32.mrf.mxu0  ;;  %v5814_v30 = vpop.f32.mrf.mxu1 }
  0xb3   :  { %738 = vmatmul.f32.gmra.mxu0 %v5467_v45  ;;  %831 = vmatmul.f32.gmra.mxu1 %v5418_v43 }
  0xb8   :  { %v5818_v27 = vpop.f32.mrf.mxu0  ;;  %v5820_v58 = vpop.f32.mrf.mxu1 }
  0xbb   :  { %742 = vmatmul.f32.gmra.mxu0 %v5498_v50  ;;  %835 = vmatmul.f32.gmra.mxu1 %v5467_v45 }
  0xc0   :  { %v5824_v6 = vpop.f32.mrf.mxu0  ;;  %v5826_v13 = vpop.f32.mrf.mxu1 }
  0xc3   :  { %746 = vmatmul.f32.gmra.mxu0 %v5526_v24  ;;  %839 = vmatmul.f32.gmra.mxu1 %v5498_v50 }
  0xc8   :  { %v5830_v48 = vpop.f32.mrf.mxu0  ;;  %v5832_v17 = vpop.f32.mrf.mxu1 }
  0xcb   :  { %750 = vmatmul.f32.gmra.mxu0 %v5556_v20  ;;  %843 = vmatmul.f32.gmra.mxu1 %v5526_v24  ;;  %v5927_v24 = vsub.f32 %v79_v51, %v5913_v22 }
  0xcd   :  { %v8585_v50 = vand.u32 4294901760, %v5927_v24  ;;  %1230 = vmatpush.msra.mxu0 %v5927_v24 }
  0xcf   :  { %v1082_v53 = vsub.f32 %v5927_v24, %v8585_v50 }
  0xd0   :  { %v5836_v63 = vpop.f32.mrf.mxu0  ;;  %v5838_v4 = vpop.f32.mrf.mxu1 }
  0xd1   :  { %v1083_v45 = vand.u32 4294901760, %v1082_v53 }
  0xd3   :  { %754 = vmatmul.f32.gmra.mxu0 %v5586_v26  ;;  %847 = vmatmul.f32.gmra.mxu1 %v5556_v20  ;;  %v8567_v20 = vand.u32 4294901760, %v5893_v18 }
  0xd5   :  { %v1070_v35 = vsub.f32 %v5893_v18, %v8567_v20 }
  0xd7   :  { %v1071_v20 = vand.u32 4294901760, %v1070_v35  ;;  %v1077_v35 = vand.u32 4294901760, %v1076_v16  ;;  %v75_v16 = vld [vmem:[%s8475_s2 + $0x38] sm:$0xff] }
  0xd8   :  { %v5842_v55 = vpop.f32.mrf.mxu0  ;;  %v5844_v21 = vpop.f32.mrf.mxu1 }
  0xdb   :  { %758 = vmatmul.f32.gmra.mxu0 %v5615_v41  ;;  %851 = vmatmul.f32.gmra.mxu1 %v5586_v26  ;;  %v1058_v26 = vsub.f32 %v5863_v57, %v8551_v52 }
  0xdd   :  { %v1059_v52 = vand.u32 4294901760, %v1058_v26  ;;  %v1065_v26 = vand.u32 4294901760, %v1064_v59 }
  0xdf   :  { %1060 = vmatpush.msrb.mxu3 %v1059_v52 }
  0xe0   :  { %v5848_v61 = vpop.f32.mrf.mxu0  ;;  %v5850_v56 = vpop.f32.mrf.mxu1 }
  0xe1   :  { %8742 = vst [vmem:[#allocation69_spill] sm:$0xff] %v5848_v61  ;;  %1066 = vmatpush.msrb.mxu3 %v1065_v26 }
  0xe3   :  { %762 = vmatmul.f32.gmra.mxu0 %v5640_v54  ;;  %855 = vmatmul.f32.gmra.mxu1 %v5615_v41 }
  0xe4   :  { %1072 = vmatpush.msrb.mxu3 %v1071_v20  ;;  %v8593_v20 = vand.u32 4294901760, %v5954_v0 }
  0xe6   :  { %1078 = vmatpush.msrb.mxu3 %v1077_v35  ;;  %v74_v35 = vld [vmem:[%s8475_s2 + $0x30] sm:$0xff] }
  0xe7   :  { %v5990_v53 = vand.u32 4294901760, %v74_v35 }
  0xe8   :  { %v5872_v37 = vpop.f32.mrf.mxu0  ;;  %v5874_v41 = vpop.f32.mrf.mxu1  ;;  %1084 = vmatpush.msrb.mxu3 %v1083_v45 }
  0xe9   :  { %8743 = vst [vmem:[#allocation70_spill] sm:$0xff] %v5872_v37  ;;  %v6009_v44 = vsub.f32 %v74_v35, %v5990_v53  ;;  %v6089_v37 = vpop.f32.mrf.mxu3 }
  0xea   :  { %8744 = vst [vmem:[#allocation71_spill] sm:$0xff] %v5874_v41 }
  0xeb   :  { %766 = vmatmul.f32.gmra.mxu0 %v5660_v12  ;;  %859 = vmatmul.f32.gmra.mxu1 %v5640_v54  ;;  %v78_v54 = vld [vmem:[%s8475_s2 + $0x50] sm:$0xff]  ;;  %v8612_v35 = vand.u32 4294901760, %v6009_v44 }
  0xec   :  { %v5924_v34 = vand.u32 4294901760, %v78_v54 }
  0xee   :  { %v5942_v51 = vsub.f32 %v78_v54, %v5924_v34  ;;  %1356 = vmatpush.msra.mxu1 %v5924_v34  ;;  %v5956_v54 = vand.u32 4294901760, %v76_v23  ;;  %905 = vmatpush.msrb.mxu2 %v5924_v34 }
  0xf0   :  { %v5934_v52 = vpop.f32.mrf.mxu0  ;;  %v5936_v59 = vpop.f32.mrf.mxu1  ;;  %v8586_v26 = vand.u32 4294901760, %v5942_v51  ;;  %1233 = vmatpush.msra.mxu0 %v5942_v51  ;;  %v5973_v5 = vsub.f32 %v76_v23, %v5956_v54  ;;  %1358 = vmatpush.msra.mxu1 %v5944_v11 }
  0xf1   :  { %8745 = vst [vmem:[#allocation72_spill] sm:$0xff] %v5934_v52  ;;  %907 = vmatpush.msrb.mxu2 %v5944_v11 }
  0xf2   :  { %8746 = vst [vmem:[#allocation73_spill] sm:$0xff] %v5936_v59  ;;  %v1088_v19 = vsub.f32 %v5942_v51, %v8586_v26  ;;  %v1094_v26 = vsub.f32 %v5954_v0, %v8593_v20  ;;  %v8600_v7 = vand.u32 4294901760, %v5973_v5  ;;  %1236 = vmatpush.msra.mxu0 %v5954_v0  ;;  %1360 = vmatpush.msra.mxu1 %v5956_v54 }
  0xf3   :  { %770 = vmatmul.f32.gmra.mxu0 %v5679_v47  ;;  %863 = vmatmul.f32.gmra.mxu1 %v5660_v12  ;;  %v5975_v12 = vand.u32 4294901760, %v75_v16 }
  0xf4   :  { %v1089_v50 = vand.u32 4294901760, %v1088_v19  ;;  %v73_v19 = vld [vmem:[%s8475_s2 + $0x28] sm:$0xff]  ;;  %v1095_v20 = vand.u32 4294901760, %v1094_v26  ;;  %v1100_v43 = vsub.f32 %v5973_v5, %v8600_v7  ;;  %1239 = vmatpush.msra.mxu0 %v5973_v5  ;;  %v72_v26 = vld [vmem:[%s8475_s2 + $0x20] sm:$0xff]  ;;  %909 = vmatpush.msrb.mxu2 %v5956_v54 }
  0xf5   :  { %v5988_v23 = vsub.f32 %v75_v16, %v5975_v12  ;;  %v6006_v45 = vand.u32 4294901760, %v73_v19  ;;  %1362 = vmatpush.msra.mxu1 %v5975_v12 }
  0xf6   :  { %1090 = vmatpush.msrb.mxu3 %v1089_v50  ;;  %v1101_v60 = vand.u32 4294901760, %v1100_v43  ;;  %v6023_v50 = vand.u32 4294901760, %v72_v26  ;;  %v71_v43 = vld [vmem:[%s8475_s2 + $0x18] sm:$0xff]  ;;  %911 = vmatpush.msrb.mxu2 %v5975_v12 }
  0xf7   :  { %v8603_v16 = vand.u32 4294901760, %v5988_v23  ;;  %1242 = vmatpush.msra.mxu0 %v5988_v23  ;;  %v6020_v31 = vsub.f32 %v73_v19, %v6006_v45  ;;  %v6036_v39 = vand.u32 4294901760, %v71_v43  ;;  %1364 = vmatpush.msra.mxu1 %v5990_v53 }
  0xf8   :  { %v5996_v62 = vpop.f32.mrf.mxu0  ;;  %v5998_v15 = vpop.f32.mrf.mxu1  ;;  %1096 = vmatpush.msrb.mxu3 %v1095_v20  ;;  %v6034_v19 = vsub.f32 %v72_v26, %v6023_v50  ;;  %913 = vmatpush.msrb.mxu2 %v5990_v53 }
  0xf9   :  { %8747 = vst [vmem:[#allocation74_spill] sm:$0xff] %v5996_v62  ;;  %v1106_v7 = vsub.f32 %v5988_v23, %v8603_v16  ;;  %v8615_v2 = vand.u32 4294901760, %v6020_v31  ;;  %1245 = vmatpush.msra.mxu0 %v6009_v44  ;;  %v6052_v29 = vsub.f32 %v71_v43, %v6036_v39  ;;  %1366 = vmatpush.msra.mxu1 %v6006_v45 }
  0xfa   :  { %8748 = vst [vmem:[#allocation75_spill] sm:$0xff] %v5998_v15  ;;  %1102 = vmatpush.msrb.mxu3 %v1101_v60  ;;  %v69_v60 = vld [vmem:[%s8475_s2 + $0x8] sm:$0xff]  ;;  %v8751_v15 = vand.u32 4294901760, %v6034_v19  ;;  %915 = vmatpush.msrb.mxu2 %v6006_v45 }
  0xfb   :  { %774 = vmatmul.f32.gmra.mxu0 %v5698_v8  ;;  %867 = vmatmul.f32.gmra.mxu1 %v5679_v47  ;;  %v1107_v16 = vand.u32 4294901760, %v1106_v7  ;;  %v1112_v47 = vsub.f32 %v6009_v44, %v8612_v35  ;;  %v70_v7 = vld [vmem:[%s8475_s2 + $0x10] sm:$0xff]  ;;  %v1118_v20 = vsub.f32 %v6020_v31, %v8615_v2 }
  0xfc   :  { %1248 = vmatpush.msra.mxu0 %v6020_v31  ;;  %v6054_v35 = vand.u32 4294901760, %v70_v7  ;;  %v1124_v52 = vsub.f32 %v6034_v19, %v8751_v15  ;;  %1368 = vmatpush.msra.mxu1 %v6023_v50 }
  0xfd   :  { %v1113_v62 = vand.u32 4294901760, %v1112_v47  ;;  %1108 = vmatpush.msrb.mxu3 %v1107_v16  ;;  %v1119_v43 = vand.u32 4294901760, %v1118_v20  ;;  %v8616_v47 = vand.u32 4294901760, %v6052_v29  ;;  %v68_v16 = vld [vmem:[%s8475_s2] sm:$0xff]  ;;  %917 = vmatpush.msrb.mxu2 %v6023_v50  ;;  %s5113_s2 = sshll.u32 %s5155_s23, 4  ;;  %s5114_s2 = int_to_ptr.vmem [resolvable:$true] %s5113_s2 }
  0xfe   :  { %1251 = vmatpush.msra.mxu0 %v6034_v19  ;;  %v6073_v59 = vsub.f32 %v70_v7, %v6054_v35  ;;  %v1125_v20 = vand.u32 4294901760, %v1124_v52  ;;  %v6087_v7 = vand.u32 4294901760, %v68_v16  ;;  %1370 = vmatpush.msra.mxu1 %v6036_v39 }
  0xff   :  { %1114 = vmatpush.msrb.mxu3 %v1113_v62  ;;  %v1130_v15 = vsub.f32 %v6052_v29, %v8616_v47  ;;  %919 = vmatpush.msrb.mxu2 %v6036_v39 }
 0x100   :  { %v6063_v2 = vpop.f32.mrf.mxu0  ;;  %v6065_v26 = vpop.f32.mrf.mxu1  ;;  %1254 = vmatpush.msra.mxu0 %v6052_v29  ;;  %v6101_v47 = vsub.f32 %v68_v16, %v6087_v7  ;;  %1372 = vmatpush.msra.mxu1 %v6054_v35 }
 0x101   :  { %8749 = vst [vmem:[#allocation76_spill] sm:$0xff] %v6063_v2  ;;  %v6077_v2 = vand.u32 4294901760, %v69_v60  ;;  %1120 = vmatpush.msrb.mxu3 %v1119_v43  ;;  %v1131_v62 = vand.u32 4294901760, %v1130_v15  ;;  %921 = vmatpush.msrb.mxu2 %v6054_v35 }
 0x102   :  { %8750 = vst [vmem:[#allocation77_spill] sm:$0xff] %v6065_v26  ;;  %v8617_v26 = vand.u32 4294901760, %v6073_v59  ;;  %1257 = vmatpush.msra.mxu0 %v6073_v59  ;;  %v8621_v43 = vand.u32 4294901760, %v6101_v47 }
 0x103   :  { %778 = vmatmul.f32.gmra.mxu0 %v5717_v9  ;;  %871 = vmatmul.f32.gmra.mxu1 %v5698_v8  ;;  %v6094_v41 = vsub.f32 %v69_v60, %v6077_v2 }
 0x104   :  { %v1136_v52 = vsub.f32 %v6073_v59, %v8617_v26  ;;  %1126 = vmatpush.msrb.mxu3 %v1125_v20  ;;  %v1148_v20 = vsub.f32 %v6101_v47, %v8621_v43  ;;  %1374 = vmatpush.msra.mxu1 %v6077_v2 }
 0x105   :  { %v8620_v61 = vand.u32 4294901760, %v6094_v41  ;;  %1260 = vmatpush.msra.mxu0 %v6094_v41  ;;  %923 = vmatpush.msrb.mxu2 %v6077_v2 }
 0x106   :  { %v1137_v60 = vand.u32 4294901760, %v1136_v52  ;;  %1132 = vmatpush.msrb.mxu3 %v1131_v62  ;;  %v6121_v52 = vpop.f32.mrf.mxu2  ;;  %1376 = vmatpush.msra.mxu1 %v6087_v7  ;;  %v578_v62 = vpop.f32.mrf.mxu3 }
 0x107   :  { %v1142_v15 = vsub.f32 %v6094_v41, %v8620_v61  ;;  %1263 = vmatpush.msra.mxu0 %v6101_v47  ;;  %v1149_v61 = vand.u32 4294901760, %v1148_v20  ;;  %925 = vmatpush.msrb.mxu2 %v6087_v7 }
 0x108   :  { %v6113_v16 = vpop.f32.mrf.mxu0  ;;  %v6115_v26 = vpop.f32.mrf.mxu1  ;;  %1138 = vmatpush.msrb.mxu3 %v1137_v60  ;;  %v8752_v60 = vand.u32 4294901760, %v5863_v57  ;;  %v8755_v57 = vand.u32 4294901760, %v5909_v25  ;;  %v8758_v25 = vand.u32 4294901760, %v5954_v0 }
 0x109   :  { %v1143_v8 = vand.u32 4294901760, %v1142_v15 }
 0x10a   :  { %1477 = vmatpush.msra.mxu2 %v8752_v60  ;;  %v8756_v60 = vand.u32 4294901760, %v5927_v24  ;;  %v8759_v24 = vand.u32 4294901760, %v5973_v5  ;;  %v8762_v5 = vand.u32 4294901760, %v6020_v31 }
 0x10b   :  { %782 = vmatmul.f32.gmra.mxu0 %v5736_v42  ;;  %875 = vmatmul.f32.gmra.mxu1 %v5717_v9 }
 0x10c   :  { %1144 = vmatpush.msrb.mxu3 %v1143_v8  ;;  %v8753_v8 = vand.u32 4294901760, %v5878_v46 }
 0x10e   :  { %1150 = vmatpush.msrb.mxu3 %v1149_v61  ;;  %1481 = vmatpush.msra.mxu2 %v8753_v8  ;;  %v468_v20 = vpop.f32.mrf.mxu2  ;;  %v584_v61 = vpop.f32.mrf.mxu3 }
 0x110   :  { %1604 = vmatpush.msra.mxu3 %v5857_v38  ;;  %v6131_v15 = vpop.f32.mrf.mxu0  ;;  %v6133_v43 = vpop.f32.mrf.mxu1  ;;  %v8754_v38 = vand.u32 4294901760, %v5893_v18 }
 0x112   :  { %1606 = vmatpush.msra.mxu3 %v5865_v1  ;;  %1485 = vmatpush.msra.mxu2 %v8754_v38 }
 0x113   :  { %786 = vmatmul.f32.gmra.mxu0 %v5755_v36  ;;  %879 = vmatmul.f32.gmra.mxu1 %v5736_v42 }
 0x114   :  { %1608 = vmatpush.msra.mxu3 %v5881_v3  ;;  %1489 = vmatpush.msra.mxu2 %v8755_v57  ;;  %v8757_v3 = vand.u32 4294901760, %v5942_v51  ;;  %v8760_v51 = vand.u32 4294901760, %v5988_v23 }
 0x116   :  { %1610 = vmatpush.msra.mxu3 %v5896_v33  ;;  %1493 = vmatpush.msra.mxu2 %v8756_v60  ;;  %v473_v33 = vpop.f32.mrf.mxu2  ;;  %v590_v0 = vpop.f32.mrf.mxu3 }
 0x118   :  { %v6148_v1 = vpop.f32.mrf.mxu0  ;;  %v6150_v46 = vpop.f32.mrf.mxu1  ;;  %1612 = vmatpush.msra.mxu3 %v5913_v22  ;;  %1497 = vmatpush.msra.mxu2 %v8757_v3  ;;  %v345_v22 = vadd.f32 %v5808_v10, %v5802_v40  ;;  %v8761_v10 = vand.u32 4294901760, %v6009_v44  ;;  %v349_v40 = vadd.f32 %v5814_v30, %v5806_v49  ;;  %v8765_v49 = vand.u32 4294901760, %v6073_v59 }
 0x119   :  { %v8767_v59 = vand.u32 4294901760, %v6101_v47 }
 0x11a   :  { %1614 = vmatpush.msra.mxu3 %v5924_v34  ;;  %1501 = vmatpush.msra.mxu2 %v8758_v25  ;;  %v464_v31 = vadd.f32 %v6121_v52, %v349_v40 }
 0x11b   :  { %790 = vmatmul.f32.gmra.mxu0 %v5774_v28  ;;  %883 = vmatmul.f32.gmra.mxu1 %v5755_v36 }
 0x11c   :  { %1616 = vmatpush.msra.mxu3 %v5944_v11  ;;  %1505 = vmatpush.msra.mxu2 %v8759_v24  ;;  %v459_v11 = vadd.f32 %v6056_v32, %v345_v22  ;;  %v8763_v32 = vand.u32 4294901760, %v6034_v19  ;;  %v8766_v19 = vand.u32 4294901760, %v6094_v41 }
 0x11e   :  { %1618 = vmatpush.msra.mxu3 %v5956_v54  ;;  %1509 = vmatpush.msra.mxu2 %v8760_v51  ;;  %v478_v54 = vpop.f32.mrf.mxu2  ;;  %v596_v30 = vpop.f32.mrf.mxu3 }
 0x120   :  { %v6168_v34 = vpop.f32.mrf.mxu1  ;;  %v731_v18 = vpop.f32.mrf.mxu0  ;;  %1620 = vmatpush.msra.mxu3 %v5975_v12  ;;  %1513 = vmatpush.msra.mxu2 %v8761_v10  ;;  %v573_v12 = vadd.f32 %v6089_v37, %v459_v11 }
 0x122   :  { %1622 = vmatpush.msra.mxu3 %v5990_v53  ;;  %1517 = vmatpush.msra.mxu2 %v8762_v5  ;;  %v732_v44 = vadd.f32 %v731_v18, %v573_v12 }
 0x123   :  { %887 = vmatmul.f32.gmra.mxu1 %v5774_v28 }
 0x124   :  { %1624 = vmatpush.msra.mxu3 %v6006_v45  ;;  %1521 = vmatpush.msra.mxu2 %v8763_v32  ;;  %v8764_v45 = vand.u32 4294901760, %v6052_v29  ;;  %v353_v29 = vadd.f32 %v5820_v58, %v5812_v14 }
 0x126   :  { %1626 = vmatpush.msra.mxu3 %v6023_v50  ;;  %1525 = vmatpush.msra.mxu2 %v8764_v45  ;;  %v469_v41 = vadd.f32 %v468_v20, %v353_v29  ;;  %v483_v57 = vpop.f32.mrf.mxu2  ;;  %v602_v25 = vpop.f32.mrf.mxu3 }
 0x128   :  { %v735_v23 = vpop.f32.mrf.mxu0  ;;  %v828_v53 = vpop.f32.mrf.mxu1  ;;  %1628 = vmatpush.msra.mxu3 %v6036_v39  ;;  %1529 = vmatpush.msra.mxu2 %v8765_v49  ;;  %v579_v39 = vadd.f32 %v578_v62, %v464_v31  ;;  %v585_v3 = vadd.f32 %v584_v61, %v469_v41 }
 0x129   :  { %v829_v37 = vadd.f32 %v828_v53, %v732_v44 }
 0x12a   :  { %1630 = vmatpush.msra.mxu3 %v6054_v35  ;;  %1533 = vmatpush.msra.mxu2 %v8766_v19  ;;  %v736_v35 = vadd.f32 %v735_v23, %v579_v39 }
 0x12b   :  { %v6194_v50 = vand.u32 4294901760, %v829_v37 }
 0x12c   :  { %1632 = vmatpush.msra.mxu3 %v6077_v2  ;;  %1537 = vmatpush.msra.mxu2 %v8767_v59 }
 0x12d   :  { %v927_v52 = vsub.f32 %v829_v37, %v6194_v50  ;;  %1152 = vmatmul.f32.vlgmr.msrb.gmra.mxu3 %v6194_v50 }
 0x12e   :  { %1634 = vmatpush.msra.mxu3 %v6087_v7  ;;  %v357_v7 = vadd.f32 %v5826_v13, %v5818_v27  ;;  %v488_v5 = vpop.f32.mrf.mxu2  ;;  %v361_v13 = vadd.f32 %v5832_v17, %v5824_v6  ;;  %v608_v32 = vpop.f32.mrf.mxu3  ;;  %v365_v17 = vadd.f32 %v5838_v4, %v5830_v48  ;;  %v369_v48 = vadd.f32 %v5844_v21, %v5836_v63 }
 0x12f   :  { %v928_v8 = vand.u32 4294901760, %v927_v52  ;;  %1266 = vmatmul.f32.vlgmr.msra.gmra.mxu0 %v927_v52  ;;  %v373_v63 = vadd.f32 %v5850_v56, %v5842_v55  ;;  %v8768_v56 = vld [vmem:[#allocation69_spill] sm:$0xff]  ;;  %v8769_v55 = vld [vmem:[#allocation71_spill] sm:$0xff] }
 0x130   :  { %v739_v2 = vpop.f32.mrf.mxu0  ;;  %v832_v38 = vpop.f32.mrf.mxu1  ;;  %v474_v51 = vadd.f32 %v473_v33, %v357_v7  ;;  %v479_v45 = vadd.f32 %v478_v54, %v361_v13 }
 0x131   :  { %v833_v62 = vadd.f32 %v832_v38, %v736_v35  ;;  %1380 = vmatmul.f32.vlgmr.msra.gmra.mxu1 %v928_v8  ;;  %v929_v60 = vsub.f32 %v927_v52, %v928_v8  ;;  %v740_v22 = vadd.f32 %v739_v2, %v585_v3  ;;  %v484_v35 = vadd.f32 %v483_v57, %v365_v17 }
 0x132   :  { %v591_v27 = vadd.f32 %v590_v0, %v474_v51  ;;  %v597_v19 = vadd.f32 %v596_v30, %v479_v45 }
 0x133   :  { %v6206_v58 = vand.u32 4294901760, %v833_v62  ;;  %v930_v14 = vand.u32 4294901760, %v929_v60  ;;  %v603_v4 = vadd.f32 %v602_v25, %v484_v35 }
 0x135   :  { %v935_v47 = vsub.f32 %v833_v62, %v6206_v58  ;;  %931 = vmatmul.f32.vlgmr.msrb.gmra.mxu2 %v930_v14  ;;  %1156 = vmatmul.f32.gmra.mxu3 %v6206_v58 }
 0x136   :  { %v493_v6 = vpop.f32.mrf.mxu2  ;;  %v614_v8 = vpop.f32.mrf.mxu3 }
 0x137   :  { %1271 = vmatmul.f32.gmra.mxu0 %v935_v47  ;;  %v936_v20 = vand.u32 4294901760, %v935_v47 }
 0x138   :  { %v743_v24 = vpop.f32.mrf.mxu0  ;;  %v836_v18 = vpop.f32.mrf.mxu1 }
 0x139   :  { %v837_v11 = vadd.f32 %v836_v18, %v740_v22  ;;  %1386 = vmatmul.f32.gmra.mxu1 %v936_v20  ;;  %v937_v10 = vsub.f32 %v935_v47, %v936_v20  ;;  %v744_v44 = vadd.f32 %v743_v24, %v591_v27  ;;  %v489_v47 = vadd.f32 %v488_v5, %v369_v48 }
 0x13a   :  { %v494_v27 = vadd.f32 %v493_v6, %v373_v63 }
 0x13b   :  { %v6212_v61 = vand.u32 4294901760, %v837_v11  ;;  %v938_v12 = vand.u32 4294901760, %v937_v10  ;;  %v609_v21 = vadd.f32 %v608_v32, %v489_v47 }
 0x13d   :  { %v943_v40 = vsub.f32 %v837_v11, %v6212_v61  ;;  %939 = vmatmul.f32.gmra.mxu2 %v938_v12  ;;  %1160 = vmatmul.f32.gmra.mxu3 %v6212_v61 }
 0x13e   :  { %v498_v60 = vpop.f32.mrf.mxu2  ;;  %v620_v24 = vpop.f32.mrf.mxu3 }
 0x13f   :  { %1276 = vmatmul.f32.gmra.mxu0 %v943_v40  ;;  %v944_v33 = vand.u32 4294901760, %v943_v40 }
 0x140   :  { %v747_v23 = vpop.f32.mrf.mxu0  ;;  %v840_v53 = vpop.f32.mrf.mxu1 }
 0x141   :  { %v841_v31 = vadd.f32 %v840_v53, %v744_v44  ;;  %1392 = vmatmul.f32.gmra.mxu1 %v944_v33  ;;  %v945_v37 = vsub.f32 %v943_v40, %v944_v33  ;;  %v748_v29 = vadd.f32 %v747_v23, %v597_v19  ;;  %v615_v23 = vadd.f32 %v614_v8, %v494_v27  ;;  %v8770_v8 = vld [vmem:[#allocation70_spill] sm:$0xff] }
 0x142   :  { %v377_v53 = vadd.f32 %v8769_v55, %v8768_v56  ;;  %v8774_v55 = vld [vmem:[#allocation74_spill] sm:$0xff] }
 0x143   :  { %v6218_v49 = vand.u32 4294901760, %v841_v31  ;;  %v946_v0 = vand.u32 4294901760, %v945_v37 }
 0x144   :  { %v499_v6 = vadd.f32 %v498_v60, %v377_v53  ;;  %v8775_v53 = vld [vmem:[#allocation77_spill] sm:$0xff] }
 0x145   :  { %v951_v39 = vsub.f32 %v841_v31, %v6218_v49  ;;  %947 = vmatmul.f32.gmra.mxu2 %v946_v0  ;;  %1164 = vmatmul.f32.gmra.mxu3 %v6218_v49 }
 0x146   :  { %v503_v13 = vpop.f32.mrf.mxu2  ;;  %v626_v45 = vpop.f32.mrf.mxu3  ;;  %v621_v35 = vadd.f32 %v620_v24, %v499_v6  ;;  %v8772_v24 = vld [vmem:[#allocation72_spill] sm:$0xff] }
 0x147   :  { %1281 = vmatmul.f32.gmra.mxu0 %v951_v39  ;;  %v952_v52 = vand.u32 4294901760, %v951_v39 }
 0x148   :  { %v751_v54 = vpop.f32.mrf.mxu0  ;;  %v844_v59 = vpop.f32.mrf.mxu1 }
 0x149   :  { %v845_v2 = vadd.f32 %v844_v59, %v748_v29  ;;  %1398 = vmatmul.f32.gmra.mxu1 %v952_v52  ;;  %v953_v38 = vsub.f32 %v951_v39, %v952_v52  ;;  %v752_v14 = vadd.f32 %v751_v54, %v603_v4 }
 0x14b   :  { %v6224_v30 = vand.u32 4294901760, %v845_v2  ;;  %v954_v41 = vand.u32 4294901760, %v953_v38 }
 0x14d   :  { %v959_v62 = vsub.f32 %v845_v2, %v6224_v30  ;;  %955 = vmatmul.f32.gmra.mxu2 %v954_v41  ;;  %1168 = vmatmul.f32.gmra.mxu3 %v6224_v30  ;;  %v8771_v2 = vld [vmem:[#allocation73_spill] sm:$0xff] }
 0x14e   :  { %v508_v52 = vpop.f32.mrf.mxu2  ;;  %v381_v38 = vadd.f32 %v8771_v2, %v8770_v8  ;;  %v632_v4 = vpop.f32.mrf.mxu3 }
 0x14f   :  { %1286 = vmatmul.f32.gmra.mxu0 %v959_v62  ;;  %v960_v57 = vand.u32 4294901760, %v959_v62 }
 0x150   :  { %v755_v3 = vpop.f32.mrf.mxu0  ;;  %v848_v7 = vpop.f32.mrf.mxu1 }
 0x151   :  { %v849_v22 = vadd.f32 %v848_v7, %v752_v14  ;;  %1404 = vmatmul.f32.gmra.mxu1 %v960_v57  ;;  %v961_v20 = vsub.f32 %v959_v62, %v960_v57  ;;  %v756_v11 = vadd.f32 %v755_v3, %v609_v21  ;;  %v504_v57 = vadd.f32 %v503_v13, %v381_v38  ;;  %v8776_v38 = vld [vmem:[#allocation76_spill] sm:$0xff] }
 0x153   :  { %v6230_v25 = vand.u32 4294901760, %v849_v22  ;;  %v962_v18 = vand.u32 4294901760, %v961_v20  ;;  %v627_v20 = vadd.f32 %v626_v45, %v504_v57  ;;  %v389_v45 = vadd.f32 %v8775_v53, %v8774_v55 }
 0x155   :  { %v967_v51 = vsub.f32 %v849_v22, %v6230_v25  ;;  %963 = vmatmul.f32.gmra.mxu2 %v962_v18  ;;  %1172 = vmatmul.f32.gmra.mxu3 %v6230_v25  ;;  %v8773_v18 = vld [vmem:[#allocation75_spill] sm:$0xff] }
 0x156   :  { %v385_v21 = vadd.f32 %v8773_v18, %v8772_v24  ;;  %v513_v63 = vpop.f32.mrf.mxu2 }
 0x157   :  { %1291 = vmatmul.f32.gmra.mxu0 %v967_v51  ;;  %v968_v10 = vand.u32 4294901760, %v967_v51 }
 0x158   :  { %v759_v5 = vpop.f32.mrf.mxu0  ;;  %v852_v12 = vpop.f32.mrf.mxu1  ;;  %v509_v27 = vadd.f32 %v508_v52, %v385_v21 }
 0x159   :  { %v853_v40 = vadd.f32 %v852_v12, %v756_v11  ;;  %1410 = vmatmul.f32.gmra.mxu1 %v968_v10  ;;  %v969_v44 = vsub.f32 %v967_v51, %v968_v10  ;;  %v760_v37 = vadd.f32 %v759_v5, %v615_v23 }
 0x15a   :  { %v633_v56 = vadd.f32 %v632_v4, %v509_v27 }
 0x15b   :  { %v6236_v33 = vand.u32 4294901760, %v853_v40  ;;  %v970_v32 = vand.u32 4294901760, %v969_v44  ;;  %v638_v44 = vpop.f32.mrf.mxu3 }
 0x15d   :  { %v975_v31 = vsub.f32 %v853_v40, %v6236_v33  ;;  %971 = vmatmul.f32.gmra.mxu2 %v970_v32  ;;  %1176 = vmatmul.f32.gmra.mxu3 %v6236_v33 }
 0x15f   :  { %1296 = vmatmul.f32.gmra.mxu0 %v975_v31  ;;  %v976_v0 = vand.u32 4294901760, %v975_v31 }
 0x160   :  { %v763_v19 = vpop.f32.mrf.mxu0  ;;  %v856_v17 = vpop.f32.mrf.mxu1 }
 0x161   :  { %v857_v39 = vadd.f32 %v856_v17, %v760_v37  ;;  %1416 = vmatmul.f32.gmra.mxu1 %v976_v0  ;;  %v977_v29 = vsub.f32 %v975_v31, %v976_v0  ;;  %v764_v48 = vadd.f32 %v763_v19, %v621_v35  ;;  %v518_v37 = vpop.f32.mrf.mxu2 }
 0x163   :  { %v6242_v54 = vand.u32 4294901760, %v857_v39  ;;  %v978_v59 = vand.u32 4294901760, %v977_v29  ;;  %v644_v8 = vpop.f32.mrf.mxu3 }
 0x165   :  { %v983_v41 = vsub.f32 %v857_v39, %v6242_v54  ;;  %979 = vmatmul.f32.gmra.mxu2 %v978_v59  ;;  %1180 = vmatmul.f32.gmra.mxu3 %v6242_v54  ;;  %v514_v39 = vadd.f32 %v513_v63, %v389_v45 }
 0x167   :  { %1301 = vmatmul.f32.gmra.mxu0 %v983_v41  ;;  %v984_v62 = vand.u32 4294901760, %v983_v41  ;;  %v639_v2 = vadd.f32 %v638_v44, %v514_v39 }
 0x168   :  { %v767_v60 = vpop.f32.mrf.mxu0  ;;  %v860_v14 = vpop.f32.mrf.mxu1 }
 0x169   :  { %v861_v3 = vadd.f32 %v860_v14, %v764_v48  ;;  %1422 = vmatmul.f32.gmra.mxu1 %v984_v62  ;;  %v985_v7 = vsub.f32 %v983_v41, %v984_v62  ;;  %v768_v11 = vadd.f32 %v767_v60, %v627_v20  ;;  %v393_v41 = vadd.f32 %v6115_v26, %v8776_v38 }
 0x16a   :  { %v397_v26 = vadd.f32 %v6133_v43, %v6113_v16  ;;  %v401_v16 = vadd.f32 %v6150_v46, %v6131_v15  ;;  %v405_v15 = vadd.f32 %v6168_v34, %v6148_v1 }
 0x16b   :  { %v6248_v47 = vand.u32 4294901760, %v861_v3  ;;  %v986_v22 = vand.u32 4294901760, %v985_v7  ;;  %v519_v57 = vadd.f32 %v518_v37, %v393_v41  ;;  %v650_v63 = vpop.f32.mrf.mxu3 }
 0x16d   :  { %v991_v51 = vsub.f32 %v861_v3, %v6248_v47  ;;  %987 = vmatmul.f32.gmra.mxu2 %v986_v22  ;;  %1184 = vmatmul.f32.gmra.mxu3 %v6248_v47  ;;  %v523_v22 = vpop.f32.mrf.mxu2  ;;  %v645_v18 = vadd.f32 %v644_v8, %v519_v57 }
 0x16f   :  { %1306 = vmatmul.f32.gmra.mxu0 %v991_v51  ;;  %v992_v10 = vand.u32 4294901760, %v991_v51 }
 0x170   :  { %v771_v5 = vpop.f32.mrf.mxu0  ;;  %v864_v12 = vpop.f32.mrf.mxu1 }
 0x171   :  { %v865_v13 = vadd.f32 %v864_v12, %v768_v11  ;;  %1428 = vmatmul.f32.gmra.mxu1 %v992_v10  ;;  %v993_v40 = vsub.f32 %v991_v51, %v992_v10  ;;  %v772_v0 = vadd.f32 %v771_v5, %v633_v56  ;;  %v524_v12 = vadd.f32 %v523_v22, %v397_v26 }
 0x173   :  { %v6254_v32 = vand.u32 4294901760, %v865_v13  ;;  %v994_v23 = vand.u32 4294901760, %v993_v40  ;;  %v651_v43 = vadd.f32 %v650_v63, %v524_v12  ;;  %v656_v45 = vpop.f32.mrf.mxu3 }
 0x175   :  { %v999_v31 = vsub.f32 %v865_v13, %v6254_v32  ;;  %995 = vmatmul.f32.gmra.mxu2 %v994_v23  ;;  %1188 = vmatmul.f32.gmra.mxu3 %v6254_v32  ;;  %v528_v23 = vpop.f32.mrf.mxu2 }
 0x176   :  { %v529_v37 = vadd.f32 %v528_v23, %v401_v16 }
 0x177   :  { %1311 = vmatmul.f32.gmra.mxu0 %v999_v31  ;;  %v1000_v19 = vand.u32 4294901760, %v999_v31 }
 0x178   :  { %v775_v17 = vpop.f32.mrf.mxu0  ;;  %v868_v6 = vpop.f32.mrf.mxu1 }
 0x179   :  { %v869_v29 = vadd.f32 %v868_v6, %v772_v0  ;;  %1434 = vmatmul.f32.gmra.mxu1 %v1000_v19  ;;  %v1001_v52 = vsub.f32 %v999_v31, %v1000_v19  ;;  %v776_v48 = vadd.f32 %v775_v17, %v639_v2 }
 0x17b   :  { %v6260_v59 = vand.u32 4294901760, %v869_v29  ;;  %v1002_v35 = vand.u32 4294901760, %v1001_v52 }
 0x17d   :  { %v1007_v4 = vsub.f32 %v869_v29, %v6260_v59  ;;  %1003 = vmatmul.f32.gmra.mxu2 %v1002_v35  ;;  %1192 = vmatmul.f32.gmra.mxu3 %v6260_v59  ;;  %v657_v29 = vadd.f32 %v656_v45, %v529_v37  ;;  %v533_v52 = vpop.f32.mrf.mxu2 }
 0x17e   :  { %v534_v38 = vadd.f32 %v533_v52, %v405_v15 }
 0x17f   :  { %1316 = vmatmul.f32.gmra.mxu0 %v1007_v4  ;;  %v1008_v62 = vand.u32 4294901760, %v1007_v4 }
 0x180   :  { %v779_v60 = vpop.f32.mrf.mxu0  ;;  %v872_v14 = vpop.f32.mrf.mxu1 }
 0x181   :  { %v873_v3 = vadd.f32 %v872_v14, %v776_v48  ;;  %1440 = vmatmul.f32.gmra.mxu1 %v1008_v62  ;;  %v1009_v7 = vsub.f32 %v1007_v4, %v1008_v62  ;;  %v780_v51 = vadd.f32 %v779_v60, %v645_v18  ;;  %v662_v48 = vpop.f32.mrf.mxu3 }
 0x182   :  { %v663_v1 = vadd.f32 %v662_v48, %v534_v38 }
 0x183   :  { %v6266_v20 = vand.u32 4294901760, %v873_v3  ;;  %v1010_v24 = vand.u32 4294901760, %v1009_v7 }
 0x185   :  { %v1015_v21 = vsub.f32 %v873_v3, %v6266_v20  ;;  %1011 = vmatmul.f32.gmra.mxu2 %v1010_v24  ;;  %1196 = vmatmul.f32.gmra.mxu3 %v6266_v20 }
 0x187   :  { %1321 = vmatmul.f32.gmra.mxu0 %v1015_v21  ;;  %v1016_v11 = vand.u32 4294901760, %v1015_v21 }
 0x188   :  { %v783_v10 = vpop.f32.mrf.mxu0  ;;  %v876_v5 = vpop.f32.mrf.mxu1 }
 0x189   :  { %v877_v27 = vadd.f32 %v876_v5, %v780_v51  ;;  %1446 = vmatmul.f32.gmra.mxu1 %v1016_v11  ;;  %v1017_v13 = vsub.f32 %v1015_v21, %v1016_v11  ;;  %v784_v55 = vadd.f32 %v783_v10, %v651_v43  ;;  %v6298_v5 = vld [vmem:[%s8476_s3] ss:$0 sm:$0xff] }
 0x18b   :  { %v6272_v40 = vand.u32 4294901760, %v877_v27  ;;  %v1018_v44 = vand.u32 4294901760, %v1017_v13 }
 0x18d   :  { %v1023_v56 = vsub.f32 %v877_v27, %v6272_v40  ;;  %1019 = vmatmul.f32.gmra.mxu2 %v1018_v44  ;;  %1200 = vmatmul.f32.gmra.mxu3 %v6272_v40 }
 0x18f   :  { %1326 = vmatmul.f32.gmra.mxu0 %v1023_v56  ;;  %v1024_v53 = vand.u32 4294901760, %v1023_v56 }
 0x190   :  { %v880_v31 = vpop.f32.mrf.mxu1  ;;  %v787_v17 = vpop.f32.mrf.mxu0 }
 0x191   :  { %v881_v0 = vadd.f32 %v880_v31, %v784_v55  ;;  %1452 = vmatmul.f32.gmra.mxu1 %v1024_v53  ;;  %v1025_v19 = vsub.f32 %v1023_v56, %v1024_v53  ;;  %v788_v35 = vadd.f32 %v787_v17, %v657_v29 }
 0x193   :  { %v6278_v6 = vand.u32 4294901760, %v881_v0  ;;  %v1026_v39 = vand.u32 4294901760, %v1025_v19 }
 0x195   :  { %v1031_v46 = vsub.f32 %v881_v0, %v6278_v6  ;;  %1027 = vmatmul.f32.gmra.mxu2 %v1026_v39  ;;  %1204 = vmatmul.f32.gmra.mxu3 %v6278_v6 }
 0x197   :  { %1331 = vmatmul.f32.gmra.mxu0 %v1031_v46  ;;  %v1032_v8 = vand.u32 4294901760, %v1031_v46 }
 0x198   :  { %v884_v2 = vpop.f32.mrf.mxu1  ;;  %v791_v14 = vpop.f32.mrf.mxu0 }
 0x199   :  { %v885_v41 = vadd.f32 %v884_v2, %v788_v35  ;;  %1458 = vmatmul.f32.gmra.mxu1 %v1032_v8  ;;  %v1033_v4 = vsub.f32 %v1031_v46, %v1032_v8  ;;  %v792_v57 = vadd.f32 %v791_v14, %v663_v1 }
 0x19b   :  { %v6284_v62 = vand.u32 4294901760, %v885_v41  ;;  %v1034_v60 = vand.u32 4294901760, %v1033_v4 }
 0x19d   :  { %v1039_v34 = vsub.f32 %v885_v41, %v6284_v62  ;;  %1035 = vmatmul.f32.gmra.mxu2 %v1034_v60  ;;  %1208 = vmatmul.f32.gmra.mxu3 %v6284_v62 }
 0x19f   :  { %1336 = vmatmul.f32.gmra.mxu0 %v1039_v34  ;;  %v1040_v3 = vand.u32 4294901760, %v1039_v34 }
 0x1a0   :  { %v888_v7 = vpop.f32.mrf.mxu1 }
 0x1a1   :  { %v889_v22 = vadd.f32 %v888_v7, %v792_v57  ;;  %1464 = vmatmul.f32.gmra.mxu1 %v1040_v3  ;;  %v1041_v24 = vsub.f32 %v1039_v34, %v1040_v3 }
 0x1a3   :  { %v6288_v18 = vand.u32 4294901760, %v889_v22  ;;  %v1042_v26 = vand.u32 4294901760, %v1041_v24 }
 0x1a5   :  { %v1047_v21 = vsub.f32 %v889_v22, %v6288_v18  ;;  %1043 = vmatmul.f32.gmra.mxu2 %v1042_v26  ;;  %1212 = vmatmul.f32.gmra.mxu3 %v6288_v18 }
 0x1a7   :  { %1341 = vmatmul.f32.gmra.mxu0 %v1047_v21  ;;  %v1048_v63 = vand.u32 4294901760, %v1047_v21 }
 0x1a9   :  { %1470 = vmatmul.f32.gmra.mxu1 %v1048_v63  ;;  %v1049_v51 = vsub.f32 %v1047_v21, %v1048_v63 }
 0x1ab   :  { %v1050_v11 = vand.u32 4294901760, %v1049_v51 }
 0x1ac   :  { %v6364_v1 = vpop.f32.mrf.mxu0 }
 0x1ad   :  { %1051 = vmatmul.f32.gmra.mxu2 %v1050_v11  ;;  %1636 = vmatmul.f32.vlgmr.msra.gmra.mxu3 %v6194_v50 }
 0x1b0   :  { %v1153_v10 = vpop.f32.mrf.mxu3 }
 0x1b4   :  { %v6374_v3 = vpop.f32.mrf.mxu0 }
 0x1b5   :  { %1539 = vmatmul.f32.vlgmr.msra.gmra.mxu2 %v6194_v50  ;;  %1640 = vmatmul.f32.gmra.mxu3 %v6206_v58 }
 0x1b8   :  { %v932_v12 = vpop.f32.mrf.mxu2  ;;  %v1157_v27 = vpop.f32.mrf.mxu3 }
 0x1b9   :  { %v933_v13 = vadd.f32 %v6298_v5, %v932_v12 }
 0x1bb   :  { %v6301_v44 = vadd.f32 %v1153_v10, %v933_v13 }
 0x1bd   :  { %1543 = vmatmul.f32.gmra.mxu2 %v6206_v58  ;;  %1644 = vmatmul.f32.gmra.mxu3 %v6212_v61 }
 0x1c0   :  { %v940_v23 = vpop.f32.mrf.mxu2  ;;  %v1161_v43 = vpop.f32.mrf.mxu3 }
 0x1c1   :  { %v941_v50 = vadd.f32 %v6298_v5, %v940_v23 }
 0x1c3   :  { %v6306_v16 = vadd.f32 %v1157_v27, %v941_v50 }
 0x1c5   :  { %1547 = vmatmul.f32.gmra.mxu2 %v6212_v61  ;;  %1648 = vmatmul.f32.gmra.mxu3 %v6218_v49 }
 0x1c8   :  { %v948_v56 = vpop.f32.mrf.mxu2  ;;  %v1165_v55 = vpop.f32.mrf.mxu3 }
 0x1c9   :  { %v949_v53 = vadd.f32 %v6298_v5, %v948_v56 }
 0x1cb   :  { %v6311_v45 = vadd.f32 %v1161_v43, %v949_v53 }
 0x1cd   :  { %8777 = vst [vmem:[#allocation69_spill] sm:$0xff] %v6311_v45  ;;  %1551 = vmatmul.f32.gmra.mxu2 %v6218_v49  ;;  %1652 = vmatmul.f32.gmra.mxu3 %v6224_v30 }
 0x1d0   :  { %v956_v58 = vpop.f32.mrf.mxu2  ;;  %v1169_v31 = vpop.f32.mrf.mxu3 }
 0x1d1   :  { %v957_v37 = vadd.f32 %v6298_v5, %v956_v58 }
 0x1d3   :  { %v6316_v0 = vadd.f32 %v1165_v55, %v957_v37 }
 0x1d5   :  { %8778 = vst [vmem:[#allocation71_spill] sm:$0xff] %v6316_v0  ;;  %1555 = vmatmul.f32.gmra.mxu2 %v6224_v30  ;;  %1656 = vmatmul.f32.gmra.mxu3 %v6230_v25 }
 0x1d8   :  { %v964_v61 = vpop.f32.mrf.mxu2  ;;  %v1173_v19 = vpop.f32.mrf.mxu3 }
 0x1d9   :  { %v965_v17 = vadd.f32 %v6298_v5, %v964_v61 }
 0x1db   :  { %v6321_v39 = vadd.f32 %v1169_v31, %v965_v17 }
 0x1dd   :  { %8779 = vst [vmem:[#allocation70_spill] sm:$0xff] %v6321_v39  ;;  %1559 = vmatmul.f32.gmra.mxu2 %v6230_v25  ;;  %1660 = vmatmul.f32.gmra.mxu3 %v6236_v33 }
 0x1e0   :  { %v972_v49 = vpop.f32.mrf.mxu2  ;;  %v1177_v29 = vpop.f32.mrf.mxu3 }
 0x1e1   :  { %v973_v15 = vadd.f32 %v6298_v5, %v972_v49 }
 0x1e3   :  { %v6326_v46 = vadd.f32 %v1173_v19, %v973_v15 }
 0x1e5   :  { %1563 = vmatmul.f32.gmra.mxu2 %v6236_v33  ;;  %1664 = vmatmul.f32.gmra.mxu3 %v6242_v54 }
 0x1e8   :  { %v980_v30 = vpop.f32.mrf.mxu2  ;;  %v1181_v52 = vpop.f32.mrf.mxu3 }
 0x1e9   :  { %v981_v35 = vadd.f32 %v6298_v5, %v980_v30 }
 0x1eb   :  { %v6331_v8 = vadd.f32 %v1177_v29, %v981_v35 }
 0x1ed   :  { %1567 = vmatmul.f32.gmra.mxu2 %v6242_v54  ;;  %1668 = vmatmul.f32.gmra.mxu3 %v6248_v47 }
 0x1f0   :  { %v988_v25 = vpop.f32.mrf.mxu2  ;;  %v6335_v2 = vpop.f32.mrf.mxu3 }
 0x1f1   :  { %v989_v38 = vadd.f32 %v6298_v5, %v988_v25 }
 0x1f3   :  { %v6338_v41 = vadd.f32 %v1181_v52, %v989_v38 }
 0x1f5   :  { %1571 = vmatmul.f32.gmra.mxu2 %v6248_v47  ;;  %1672 = vmatmul.f32.gmra.mxu3 %v6254_v32 }
 0x1f8   :  { %v6342_v33 = vpop.f32.mrf.mxu2  ;;  %v6344_v4 = vpop.f32.mrf.mxu3 }
 0x1fd   :  { %1575 = vmatmul.f32.gmra.mxu2 %v6254_v32  ;;  %1676 = vmatmul.f32.gmra.mxu3 %v6260_v59 }
 0x200   :  { %v6348_v54 = vpop.f32.mrf.mxu2  ;;  %v6350_v48 = vpop.f32.mrf.mxu3 }
 0x205   :  { %1579 = vmatmul.f32.gmra.mxu2 %v6260_v59  ;;  %1680 = vmatmul.f32.gmra.mxu3 %v6266_v20  ;;  %v6368_v59 = vpop.f32.mrf.mxu1 }
 0x208   :  { %v6354_v60 = vpop.f32.mrf.mxu2  ;;  %v6356_v47 = vpop.f32.mrf.mxu3 }
 0x20d   :  { %1583 = vmatmul.f32.gmra.mxu2 %v6266_v20  ;;  %1684 = vmatmul.f32.gmra.mxu3 %v6272_v40  ;;  %v6380_v22 = vpop.f32.mrf.mxu1 }
 0x210   :  { %v6360_v14 = vpop.f32.mrf.mxu2  ;;  %v6362_v32 = vpop.f32.mrf.mxu3 }
 0x211   :  { %v1021_v45 = vadd.f32 %v6298_v5, %v6360_v14  ;;  %v997_v14 = vadd.f32 %v6298_v5, %v6342_v33 }
 0x215   :  { %1587 = vmatmul.f32.gmra.mxu2 %v6272_v40  ;;  %1688 = vmatmul.f32.gmra.mxu3 %v6278_v6  ;;  %v6384_v40 = vpop.f32.mrf.mxu0  ;;  %v6388_v21 = vpop.f32.mrf.mxu1 }
 0x216   :  { %8780 = vst [vmem:[#allocation73_spill] sm:$0xff] %v6384_v40 }
 0x217   :  { %8781 = vst [vmem:[#allocation72_spill] sm:$0xff] %v6388_v21 }
 0x218   :  { %v6370_v34 = vpop.f32.mrf.mxu2  ;;  %v6372_v57 = vpop.f32.mrf.mxu3 }
 0x21d   :  { %1591 = vmatmul.f32.gmra.mxu2 %v6278_v6  ;;  %1692 = vmatmul.f32.gmra.mxu3 %v6284_v62  ;;  %v6395_v51 = vpop.f32.mrf.mxu0  ;;  %v6397_v11 = vpop.f32.mrf.mxu1 }
 0x21e   :  { %8783 = vst [vmem:[#allocation74_spill] sm:$0xff] %v6395_v51 }
 0x21f   :  { %8784 = vst [vmem:[#allocation77_spill] sm:$0xff] %v6397_v11 }
 0x220   :  { %v1036_v20 = vpop.f32.mrf.mxu2  ;;  %v6378_v7 = vpop.f32.mrf.mxu3 }
 0x225   :  { %1595 = vmatmul.f32.gmra.mxu2 %v6284_v62  ;;  %1696 = vmatmul.f32.gmra.mxu3 %v6288_v18  ;;  %v6403_v12 = vpop.f32.mrf.mxu0  ;;  %v6405_v27 = vpop.f32.mrf.mxu1 }
 0x226   :  { %8787 = vst [vmem:[#allocation79_spill] sm:$0xff] %v6403_v12 }
 0x227   :  { %8788 = vst [vmem:[#allocation80_spill] sm:$0xff] %v6405_v27  ;;  %v1029_v27 = vadd.f32 %v6298_v5, %v6370_v34  ;;  %v1005_v34 = vadd.f32 %v6298_v5, %v6348_v54  ;;  %v1186_v54 = vadd.f32 %v6335_v2, %v997_v14  ;;  %v8812_v14 = vld [vmem:[#allocation74_spill] sm:$0xff] }
 0x228   :  { %v1044_v24 = vpop.f32.mrf.mxu2  ;;  %v6386_v26 = vpop.f32.mrf.mxu3 }
 0x229   :  { %v1045_v40 = vadd.f32 %v6298_v5, %v1044_v24  ;;  %v1202_v51 = vadd.f32 %v6362_v32, %v1029_v27  ;;  %v1198_v24 = vadd.f32 %v6356_v47, %v1021_v45 }
 0x22b   :  { %v1210_v0 = vadd.f32 %v6378_v7, %v1045_v40  ;;  %v1190_v7 = vadd.f32 %v6344_v4, %v1005_v34 }
 0x22d   :  { %1599 = vmatmul.f32.gmra.mxu2 %v6288_v18  ;;  %v6411_v18 = vpop.f32.mrf.mxu0  ;;  %v6417_v56 = vpop.f32.mrf.mxu1 }
 0x22e   :  { %8793 = vst [vmem:[#allocation85_spill] sm:$0xff] %v6417_v56 }
 0x230   :  { %v6391_v6 = vpop.f32.mrf.mxu2  ;;  %v6393_v63 = vpop.f32.mrf.mxu3 }
 0x231   :  { %8782 = vst [vmem:[#allocation75_spill] sm:$0xff] %v6393_v63 }
 0x235   :  { %v6419_v55 = vpop.f32.mrf.mxu0  ;;  %v6425_v31 = vpop.f32.mrf.mxu1 }
 0x236   :  { %8796 = vst [vmem:[#allocation88_spill] sm:$0xff] %v6425_v31 }
 0x238   :  { %v6399_v62 = vpop.f32.mrf.mxu2  ;;  %v6401_v10 = vpop.f32.mrf.mxu3 }
 0x239   :  { %8785 = vst [vmem:[#allocation76_spill] sm:$0xff] %v6399_v62 }
 0x23a   :  { %8786 = vst [vmem:[#allocation78_spill] sm:$0xff] %v6401_v10 }
 0x23d   :  { %v6431_v19 = vpop.f32.mrf.mxu0  ;;  %v6433_v17 = vpop.f32.mrf.mxu1 }
 0x23e   :  { %v1303_v2 = vadd.f32 %v6431_v19, %v6338_v41  ;;  %v8806_v19 = vld [vmem:[#allocation70_spill] sm:$0xff] }
 0x240   :  { %v6407_v13 = vpop.f32.mrf.mxu2  ;;  %v6409_v23 = vpop.f32.mrf.mxu3 }
 0x241   :  { %8789 = vst [vmem:[#allocation81_spill] sm:$0xff] %v6407_v13 }
 0x242   :  { %8790 = vst [vmem:[#allocation82_spill] sm:$0xff] %v6409_v23 }
 0x245   :  { %v1307_v15 = vpop.f32.mrf.mxu0  ;;  %v6439_v30 = vpop.f32.mrf.mxu1 }
 0x248   :  { %v6413_v43 = vpop.f32.mrf.mxu2  ;;  %v6415_v50 = vpop.f32.mrf.mxu3 }
 0x249   :  { %8791 = vst [vmem:[#allocation83_spill] sm:$0xff] %v6413_v43 }
 0x24a   :  { %8792 = vst [vmem:[#allocation84_spill] sm:$0xff] %v6415_v50 }
 0x24d   :  { %v1312_v25 = vpop.f32.mrf.mxu0  ;;  %v1435_v36 = vpop.f32.mrf.mxu1 }
 0x250   :  { %v6421_v53 = vpop.f32.mrf.mxu2  ;;  %v6423_v58 = vpop.f32.mrf.mxu3 }
 0x251   :  { %8794 = vst [vmem:[#allocation86_spill] sm:$0xff] %v6421_v53 }
 0x252   :  { %8795 = vst [vmem:[#allocation87_spill] sm:$0xff] %v6423_v58 }
 0x255   :  { %v1317_v42 = vpop.f32.mrf.mxu0  ;;  %v1441_v10 = vpop.f32.mrf.mxu1 }
 0x258   :  { %v6427_v37 = vpop.f32.mrf.mxu2  ;;  %v6429_v61 = vpop.f32.mrf.mxu3 }
 0x259   :  { %8797 = vst [vmem:[#allocation89_spill] sm:$0xff] %v6427_v37 }
 0x25a   :  { %8798 = vst [vmem:[#allocation90_spill] sm:$0xff] %v6429_v61 }
 0x25d   :  { %v1322_v50 = vpop.f32.mrf.mxu0  ;;  %v1447_v13 = vpop.f32.mrf.mxu1 }
 0x25e   :  { %v1323_v40 = vadd.f32 %v1322_v50, %v1198_v24  ;;  %v8811_v24 = vld [vmem:[#allocation71_spill] sm:$0xff] }
 0x260   :  { %v6435_v49 = vpop.f32.mrf.mxu2  ;;  %v6437_v29 = vpop.f32.mrf.mxu3  ;;  %v1448_v39 = vadd.f32 %v1447_v13, %v1323_v40 }
 0x261   :  { %8799 = vst [vmem:[#allocation91_spill] sm:$0xff] %v6435_v49 }
 0x262   :  { %8800 = vst [vmem:[#allocation92_spill] sm:$0xff] %v6437_v29 }
 0x265   :  { %v1327_v61 = vpop.f32.mrf.mxu0  ;;  %v1453_v53 = vpop.f32.mrf.mxu1 }
 0x268   :  { %v6441_v52 = vpop.f32.mrf.mxu2  ;;  %v6443_v35 = vpop.f32.mrf.mxu3 }
 0x269   :  { %8801 = vst [vmem:[#allocation93_spill] sm:$0xff] %v6441_v52  ;;  %v1013_v52 = vadd.f32 %v6298_v5, %v6354_v60  ;;  %v1053_v60 = vadd.f32 %v6298_v5, %v6391_v6 }
 0x26a   :  { %8802 = vst [vmem:[#allocation94_spill] sm:$0xff] %v6443_v35  ;;  %v1037_v35 = vadd.f32 %v6298_v5, %v1036_v20 }
 0x26d   :  { %v1332_v37 = vpop.f32.mrf.mxu0  ;;  %v1459_v49 = vpop.f32.mrf.mxu1 }
 0x270   :  { %v6445_v38 = vpop.f32.mrf.mxu2  ;;  %v6447_v28 = vpop.f32.mrf.mxu3 }
 0x271   :  { %8803 = vst [vmem:[#allocation95_spill] sm:$0xff] %v6445_v38 }
 0x272   :  { %8804 = vst [vmem:[#allocation96_spill] sm:$0xff] %v6447_v28  ;;  %v1206_v28 = vadd.f32 %v6372_v57, %v1037_v35  ;;  %v1194_v57 = vadd.f32 %v6350_v48, %v1013_v52  ;;  %v1328_v35 = vadd.f32 %v1327_v61, %v1202_v51  ;;  %v1313_v52 = vadd.f32 %v1312_v25, %v1190_v7 }
 0x273   :  { %v1308_v51 = vadd.f32 %v1307_v15, %v1186_v54  ;;  %v8808_v15 = vld [vmem:[#allocation88_spill] sm:$0xff] }
 0x274   :  { %v1333_v38 = vadd.f32 %v1332_v37, %v1206_v28  ;;  %v1318_v12 = vadd.f32 %v1317_v42, %v1194_v57  ;;  %v1214_v28 = vadd.f32 %v6386_v26, %v1053_v60  ;;  %v1454_v45 = vadd.f32 %v1453_v53, %v1328_v35  ;;  %v8813_v60 = vld [vmem:[#allocation85_spill] sm:$0xff] }
 0x275   :  { %v1337_v20 = vpop.f32.mrf.mxu0  ;;  %v1465_v27 = vpop.f32.mrf.mxu1  ;;  %v1268_v42 = vadd.f32 %v6364_v1, %v6301_v44  ;;  %v1436_v26 = vadd.f32 %v1435_v36, %v1313_v52  ;;  %v1293_v36 = vadd.f32 %v6411_v18, %v6326_v46  ;;  %v1283_v57 = vadd.f32 %v8812_v14, %v8811_v24  ;;  %v8830_v24 = vld [vmem:[#allocation84_spill] sm:$0xff] }
 0x276   :  { %v1338_v32 = vadd.f32 %v1337_v20, %v1210_v0  ;;  %v1460_v31 = vadd.f32 %v1459_v49, %v1333_v38  ;;  %v1442_v61 = vadd.f32 %v1441_v10, %v1318_v12 }
 0x277   :  { %v6490_v41 = vadd.f32 %v6368_v59, %v1268_v42  ;;  %v1412_v35 = vadd.f32 %v8813_v60, %v1293_v36  ;;  %v8826_v36 = vld [vmem:[#allocation90_spill] sm:$0xff] }
 0x278   :  { %v6449_v9 = vpop.f32.mrf.mxu2  ;;  %v6451_v63 = vpop.f32.mrf.mxu3  ;;  %v1466_v33 = vadd.f32 %v1465_v27, %v1338_v32  ;;  %v8809_v25 = vld [vmem:[#allocation95_spill] sm:$0xff] }
 0x279   :  { %8805 = vst [vmem:[#allocation97_spill] sm:$0xff] %v6451_v63  ;;  %v8815_v27 = vld [vmem:[#allocation96_spill] sm:$0xff] }
 0x27d   :  { %v1342_v0 = vpop.f32.mrf.mxu0  ;;  %v1471_v13 = vpop.f32.mrf.mxu1 }
 0x27e   :  { %v1343_v38 = vadd.f32 %v1342_v0, %v1214_v28  ;;  %v8820_v0 = vld [vmem:[#allocation94_spill] sm:$0xff] }
 0x280   :  { %v6453_v23 = vpop.f32.mrf.mxu2  ;;  %v6455_v62 = vpop.f32.mrf.mxu3  ;;  %v1472_v1 = vadd.f32 %v1471_v13, %v1343_v38  ;;  %v8821_v38 = vld [vmem:[#allocation77_spill] sm:$0xff] }
 0x281   :  { %v1577_v10 = vadd.f32 %v6453_v23, %v1436_v26  ;;  %v1400_v42 = vadd.f32 %v8821_v38, %v1283_v57 }
 0x288   :  { %v1580_v58 = vpop.f32.mrf.mxu2  ;;  %v1681_v43 = vpop.f32.mrf.mxu3 }
 0x290   :  { %v1584_v21 = vpop.f32.mrf.mxu2  ;;  %v1685_v29 = vpop.f32.mrf.mxu3 }
 0x291   :  { %v1585_v4 = vadd.f32 %v1584_v21, %v1448_v39  ;;  %v1298_v39 = vadd.f32 %v6419_v55, %v6331_v8  ;;  %v1430_v21 = vadd.f32 %v6439_v30, %v1308_v51 }
 0x293   :  { %v1682_v12 = vadd.f32 %v1681_v43, %v1585_v4  ;;  %v1418_v30 = vadd.f32 %v8808_v15, %v1298_v39 }
 0x298   :  { %v1588_v11 = vpop.f32.mrf.mxu2  ;;  %v1689_v56 = vpop.f32.mrf.mxu3 }
 0x299   :  { %v1589_v5 = vadd.f32 %v1588_v11, %v1454_v45  ;;  %v1273_v11 = vadd.f32 %v6374_v3, %v6306_v16  ;;  %v1573_v16 = vadd.f32 %v6449_v9, %v1430_v21  ;;  %v1711_v9 = vmax.f32 %v1682_v12, 0.0 }
 0x29b   :  { %v1686_v53 = vadd.f32 %v1685_v29, %v1589_v5  ;;  %v1388_v43 = vadd.f32 %v6380_v22, %v1273_v11  ;;  %v8807_v29 = vld [vmem:[#allocation79_spill] sm:$0xff]  ;;  %v8814_v22 = vld [vmem:[#allocation93_spill] sm:$0xff]  ;;  %v6512_v7 = vadd.f32 %v8815_v27, %v1573_v16  ;;  %v6526_v4 = vand.u32 4294901760, %v1711_v9  ;;  %v8831_v27 = vld [vmem:[#allocation76_spill] sm:$0xff] }
 0x29c   :  { %v1288_v59 = vadd.f32 %v8807_v29, %v8806_v19  ;;  %v1565_v32 = vadd.f32 %v8814_v22, %v1418_v30  ;;  %v8819_v5 = vld [vmem:[#allocation91_spill] sm:$0xff] }
 0x29d   :  { %v1712_v55 = vmax.f32 %v1686_v53, 0.0  ;;  %v8827_v19 = vld [vmem:[#allocation83_spill] sm:$0xff] }
 0x29f   :  { %v6514_v54 = vand.u32 4294901760, %v1712_v55 }
 0x2a0   :  { %v1592_v63 = vpop.f32.mrf.mxu2  ;;  %v1693_v37 = vpop.f32.mrf.mxu3 }
 0x2a1   :  { %v1593_v47 = vadd.f32 %v1592_v63, %v1460_v31  ;;  %v1581_v63 = vadd.f32 %v1580_v58, %v1442_v61  ;;  %v6547_v39 = vsub.f32 %v1712_v55, %v6514_v54  ;;  %v6562_v55 = vsub.f32 %v1711_v9, %v6526_v4  ;;  %v8829_v9 = vld [vmem:[#allocation81_spill] sm:$0xff] }
 0x2a3   :  { %v1690_v50 = vadd.f32 %v1689_v56, %v1593_v47  ;;  %v1424_v56 = vadd.f32 %v6433_v17, %v1303_v2  ;;  %v1678_v8 = vadd.f32 %v6455_v62, %v1581_v63  ;;  %v8810_v17 = vld [vmem:[#allocation97_spill] sm:$0xff]  ;;  %v8823_v63 = vld [vmem:[#allocation92_spill] sm:$0xff] }
 0x2a4   :  { %v1674_v20 = vadd.f32 %v8810_v17, %v1577_v10  ;;  %v8816_v47 = vld [vmem:[#allocation69_spill] sm:$0xff]  ;;  %v6536_v53 = vadd.f32 %v8823_v63, %v1565_v32  ;;  %v8824_v10 = vld [vmem:[#allocation72_spill] sm:$0xff]  ;;  %v1920_v32 = vand.u32 4294901760, %v6562_v55 }
 0x2a5   :  { %v1713_v44 = vmax.f32 %v1690_v50, 0.0  ;;  %v1569_v46 = vadd.f32 %v8809_v25, %v1424_v56  ;;  %v1710_v40 = vmax.f32 %v1678_v8, 0.0  ;;  %v8822_v2 = vld [vmem:[#allocation89_spill] sm:$0xff] }
 0x2a6   :  { %v1709_v61 = vmax.f32 %v1674_v20, 0.0  ;;  %v1706_v30 = vmax.f32 %v6536_v53, 0.0  ;;  %v1914_v20 = vand.u32 4294901760, %v6547_v39  ;;  %v1921_v38 = vsub.f32 %v6562_v55, %v1920_v32 }
 0x2a7   :  { %v6505_v34 = vand.u32 4294901760, %v1713_v44  ;;  %v6524_v51 = vadd.f32 %v8820_v0, %v1569_v46  ;;  %v6539_v13 = vand.u32 4294901760, %v1710_v40 }
 0x2a8   :  { %v1596_v48 = vpop.f32.mrf.mxu2  ;;  %v1697_v18 = vpop.f32.mrf.mxu3 }
 0x2a9   :  { %v1597_v6 = vadd.f32 %v1596_v48, %v1466_v33  ;;  %v8817_v33 = vld [vmem:[#allocation73_spill] sm:$0xff]  ;;  %v8818_v48 = vld [vmem:[#allocation80_spill] sm:$0xff]  ;;  %v1707_v16 = vmax.f32 %v6524_v51, 0.0  ;;  %v6582_v17 = vsub.f32 %v1710_v40, %v6539_v13  ;;  %v8832_v40 = vld [vmem:[#allocation82_spill] sm:$0xff] }
 0x2aa   :  { %v1406_v52 = vadd.f32 %v8818_v48, %v1288_v59  ;;  %v8828_v59 = vld [vmem:[#allocation87_spill] sm:$0xff]  ;;  %v1915_v48 = vsub.f32 %v6547_v39, %v1914_v20 }
 0x2ab   :  { %v1694_v49 = vadd.f32 %v1693_v37, %v1597_v6  ;;  %v1278_v37 = vadd.f32 %v8817_v33, %v8816_v47  ;;  %v1561_v6 = vadd.f32 %v8819_v5, %v1412_v35  ;;  %v6590_v60 = vand.u32 4294901760, %v1707_v16  ;;  %v8833_v5 = vld [vmem:[#allocation78_spill] sm:$0xff] }
 0x2ac   :  { %v1557_v26 = vadd.f32 %v8822_v2, %v1406_v52  ;;  %v6608_v33 = vand.u32 4294901760, %v1706_v30 }
 0x2ad   :  { %v1714_v31 = vmax.f32 %v1694_v49, 0.0  ;;  %v6531_v49 = vsub.f32 %v1713_v44, %v6505_v34  ;;  %v1394_v12 = vadd.f32 %v8824_v10, %v1278_v37  ;;  %v8825_v44 = vld [vmem:[#allocation86_spill] sm:$0xff]  ;;  %v6553_v56 = vadd.f32 %v8826_v36, %v1561_v6 }
 0x2ae   :  { %v6567_v15 = vadd.f32 %v8828_v59, %v1557_v26  ;;  %v8834_v26 = vld [vmem:[#allocation75_spill] sm:$0xff]  ;;  %v1916_v10 = vand.u32 4294901760, %v1915_v48 }
 0x2af   :  { %v6497_v58 = vand.u32 4294901760, %v1714_v31  ;;  %v1549_v29 = vadd.f32 %v8827_v19, %v1394_v12  ;;  %v1705_v57 = vmax.f32 %v6553_v56, 0.0 }
 0x2b0   :  { %v1600_v3 = vpop.f32.mrf.mxu2  ;;  %v1704_v47 = vmax.f32 %v6567_v15, 0.0 }
 0x2b1   :  { %v1601_v23 = vadd.f32 %v1600_v3, %v1472_v1  ;;  %v6517_v45 = vsub.f32 %v1714_v31, %v6497_v58  ;;  %v1708_v31 = vmax.f32 %v6512_v7, 0.0  ;;  %v1553_v1 = vadd.f32 %v8825_v44, %v1400_v42 }
 0x2b2   :  { %v6556_v3 = vand.u32 4294901760, %v1709_v61  ;;  %v1541_v7 = vadd.f32 %v8831_v27, %v6490_v41  ;;  %v1926_v41 = vand.u32 4294901760, %v6582_v17  ;;  %v6623_v51 = vand.u32 4294901760, %v1705_v57 }
 0x2b3   :  { %v1698_v62 = vadd.f32 %v1697_v18, %v1601_v23  ;;  %v1902_v21 = vand.u32 4294901760, %v6517_v45  ;;  %v1908_v23 = vand.u32 4294901760, %v6531_v49  ;;  %v6570_v25 = vand.u32 4294901760, %v1708_v31 }
 0x2b4   :  { %v6587_v14 = vadd.f32 %v8830_v24, %v1553_v1  ;;  %v6632_v42 = vsub.f32 %v1707_v16, %v6590_v60  ;;  %v6636_v63 = vadd.f32 %v8834_v26, %v1541_v7  ;;  %v1927_v12 = vsub.f32 %v6582_v17, %v1926_v41 }
 0x2b5   :  { %v1715_v28 = vmax.f32 %v1698_v62, 0.0  ;;  %v1903_v18 = vsub.f32 %v6517_v45, %v1902_v21  ;;  %v1545_v62 = vadd.f32 %v8829_v9, %v1388_v43  ;;  %v1909_v22 = vsub.f32 %v6531_v49, %v1908_v23 }
 0x2b6   :  { %v6599_v43 = vsub.f32 %v1709_v61, %v6556_v3  ;;  %v6616_v52 = vsub.f32 %v1708_v31, %v6570_v25  ;;  %v1703_v0 = vmax.f32 %v6587_v14, 0.0  ;;  %v6639_v31 = vand.u32 4294901760, %v1704_v47 }
 0x2b7   :  { %v6528_v50 = vand.u32 4294901760, %v1715_v28  ;;  %v1904_v37 = vand.u32 4294901760, %v1903_v18  ;;  %v6620_v6 = vadd.f32 %v8833_v5, %v1545_v62  ;;  %v1910_v61 = vand.u32 4294901760, %v1909_v22 }
 0x2b8   :  { %v1932_v2 = vand.u32 4294901760, %v6599_v43  ;;  %v6648_v44 = vsub.f32 %v1706_v30, %v6608_v33  ;;  %v1938_v1 = vand.u32 4294901760, %v6616_v52  ;;  %v6652_v56 = vand.u32 4294901760, %v1703_v0 }
 0x2b9   :  { %v6542_v11 = vsub.f32 %v1715_v28, %v6528_v50  ;;  %1734 = vmatpush.msrb.mxu0 %v6528_v50  ;;  %2185 = vmatpush.msrb.mxu3 %v6528_v50  ;;  %v6605_v28 = vadd.f32 %v8832_v40, %v1549_v29  ;;  %v1701_v36 = vmax.f32 %v6620_v6, 0.0  ;;  %v1922_v16 = vand.u32 4294901760, %v1921_v38 }
 0x2ba   :  { %v1933_v19 = vsub.f32 %v6599_v43, %v1932_v2  ;;  %v6661_v29 = vsub.f32 %v1705_v57, %v6623_v51  ;;  %v1944_v59 = vand.u32 4294901760, %v6632_v42  ;;  %v1700_v15 = vmax.f32 %v6636_v63, 0.0 }
 0x2bb   :  { %1736 = vmatpush.msrb.mxu0 %v6497_v58  ;;  %2057 = vmatpush.msrb.mxu2 %v6542_v11  ;;  %v1896_v8 = vand.u32 4294901760, %v6542_v11  ;;  %v1702_v53 = vmax.f32 %v6605_v28, 0.0  ;;  %v1939_v18 = vsub.f32 %v6616_v52, %v1938_v1  ;;  %v6674_v9 = vsub.f32 %v1704_v47, %v6639_v31 }
 0x2bc   :  { %2187 = vmatpush.msrb.mxu3 %v6497_v58  ;;  %v1950_v62 = vand.u32 4294901760, %v6648_v44  ;;  %v6677_v24 = vand.u32 4294901760, %v1701_v36  ;;  %v1934_v14 = vand.u32 4294901760, %v1933_v19  ;;  %v1945_v57 = vsub.f32 %v6632_v42, %v1944_v59 }
 0x2bd   :  { %1738 = vmatpush.msrb.mxu0 %v6505_v34  ;;  %2060 = vmatpush.msrb.mxu2 %v6517_v45  ;;  %v1897_v46 = vsub.f32 %v6542_v11, %v1896_v8  ;;  %v6665_v30 = vand.u32 4294901760, %v1702_v53  ;;  %v1956_v22 = vand.u32 4294901760, %v6661_v29  ;;  %v6689_v27 = vand.u32 4294901760, %v1700_v15  ;;  %v8838_v11 = vld [vmem:[#allocation5_spill] sm:$0xff] }
 0x2be   :  { %2189 = vmatpush.msrb.mxu3 %v6505_v34  ;;  %v1940_v7 = vand.u32 4294901760, %v1939_v18  ;;  %v1951_v40 = vsub.f32 %v6648_v44, %v1950_v62  ;;  %v1962_v47 = vand.u32 4294901760, %v6674_v9  ;;  %v6708_v5 = vsub.f32 %v1701_v36, %v6677_v24  ;;  %v8840_v45 = vld [vmem:[#allocation9_spill] sm:$0xff] }
 0x2bf   :  { %1740 = vmatpush.msrb.mxu0 %v6514_v54  ;;  %2063 = vmatpush.msrb.mxu2 %v6531_v49  ;;  %v1898_v35 = vand.u32 4294901760, %v1897_v46  ;;  %v1928_v46 = vand.u32 4294901760, %v1927_v12  ;;  %v6698_v28 = vsub.f32 %v1702_v53, %v6665_v30  ;;  %v1957_v48 = vsub.f32 %v6661_v29, %v1956_v22  ;;  %v8841_v49 = vld [vmem:[#allocation11_spill] sm:$0xff] }
 0x2c0   :  { %2191 = vmatpush.msrb.mxu3 %v6514_v54  ;;  %v6718_v38 = vsub.f32 %v1700_v15, %v6689_v27 }
 0x2c1   :  { %1742 = vmatpush.msrb.mxu0 %v6526_v4  ;;  %1899 = vmatpush.msrb.mxu1 %v1898_v35  ;;  %v6686_v35 = vsub.f32 %v1703_v0, %v6652_v56  ;;  %v1952_v0 = vand.u32 4294901760, %v1951_v40  ;;  %v1974_v26 = vand.u32 4294901760, %v6698_v28  ;;  %v1958_v63 = vand.u32 4294901760, %v1957_v48  ;;  %v8837_v40 = vld [vmem:[#allocation7_spill] sm:$0xff]  ;;  %v8880_v48 = vld [vmem:[#allocation49_spill] sm:$0xff] }
 0x2c2   :  { %2066 = vmatpush.msrb.mxu2 %v6547_v39  ;;  %2193 = vmatpush.msrb.mxu3 %v6526_v4  ;;  %v8848_v39 = vld [vmem:[#allocation17_spill] sm:$0xff] }
 0x2c3   :  { %1744 = vmatpush.msrb.mxu0 %v6539_v13  ;;  %1905 = vmatpush.msrb.mxu1 %v1904_v37  ;;  %v1946_v37 = vand.u32 4294901760, %v1945_v57  ;;  %v1968_v6 = vand.u32 4294901760, %v6686_v35  ;;  %v1975_v36 = vsub.f32 %v6698_v28, %v1974_v26  ;;  %v8836_v57 = vld [vmem:[#allocation6_spill] sm:$0xff] }
 0x2c4   :  { %2069 = vmatpush.msrb.mxu2 %v6562_v55  ;;  %2195 = vmatpush.msrb.mxu3 %v6539_v13  ;;  %v8851_v55 = vld [vmem:[#allocation26_spill] sm:$0xff] }
 0x2c5   :  { %1746 = vmatpush.msrb.mxu0 %v6556_v3  ;;  %1911 = vmatpush.msrb.mxu1 %v1910_v61  ;;  %v1963_v61 = vsub.f32 %v6674_v9, %v1962_v47  ;;  %v1969_v53 = vsub.f32 %v6686_v35, %v1968_v6  ;;  %v1976_v18 = vand.u32 4294901760, %v1975_v36  ;;  %v8891_v36 = vld [vmem:[#allocation66_spill] sm:$0xff] }
 0x2c6   :  { %2072 = vmatpush.msrb.mxu2 %v6582_v17  ;;  %2197 = vmatpush.msrb.mxu3 %v6556_v3  ;;  %v8854_v17 = vld [vmem:[#allocation20_spill] sm:$0xff] }
 0x2c7   :  { %1748 = vmatpush.msrb.mxu0 %v6570_v25  ;;  %1917 = vmatpush.msrb.mxu1 %v1916_v10  ;;  %v1980_v10 = vand.u32 4294901760, %v6708_v5  ;;  %v1964_v12 = vand.u32 4294901760, %v1963_v61  ;;  %v1970_v19 = vand.u32 4294901760, %v1969_v53  ;;  %v8884_v61 = vld [vmem:[#allocation53_spill] sm:$0xff] }
 0x2c8   :  { %2075 = vmatpush.msrb.mxu2 %v6599_v43  ;;  %2199 = vmatpush.msrb.mxu3 %v6570_v25  ;;  %v8857_v43 = vld [vmem:[#allocation27_spill] sm:$0xff]  ;;  %v8888_v53 = vld [vmem:[#allocation57_spill] sm:$0xff] }
 0x2c9   :  { %1750 = vmatpush.msrb.mxu0 %v6590_v60  ;;  %1923 = vmatpush.msrb.mxu1 %v1922_v16  ;;  %v1986_v16 = vand.u32 4294901760, %v6718_v38  ;;  %v1981_v15 = vsub.f32 %v6708_v5, %v1980_v10 }
 0x2ca   :  { %2078 = vmatpush.msrb.mxu2 %v6616_v52  ;;  %2201 = vmatpush.msrb.mxu3 %v6590_v60  ;;  %v8860_v52 = vld [vmem:[#allocation29_spill] sm:$0xff] }
 0x2cb   :  { %1752 = vmatpush.msrb.mxu0 %v6608_v33  ;;  %1929 = vmatpush.msrb.mxu1 %v1928_v46  ;;  %v8835_v46 = vld [vmem:[#allocation10_spill] sm:$0xff] }
 0x2cc   :  { %2081 = vmatpush.msrb.mxu2 %v6632_v42  ;;  %2203 = vmatpush.msrb.mxu3 %v6608_v33  ;;  %v8863_v42 = vld [vmem:[#allocation38_spill] sm:$0xff] }
 0x2cd   :  { %1754 = vmatpush.msrb.mxu0 %v6623_v51  ;;  %1935 = vmatpush.msrb.mxu1 %v1934_v14  ;;  %v1987_v14 = vsub.f32 %v6718_v38, %v1986_v16 }
 0x2ce   :  { %2084 = vmatpush.msrb.mxu2 %v6648_v44  ;;  %2205 = vmatpush.msrb.mxu3 %v6623_v51  ;;  %v8866_v44 = vld [vmem:[#allocation32_spill] sm:$0xff] }
 0x2cf   :  { %1756 = vmatpush.msrb.mxu0 %v6639_v31  ;;  %1941 = vmatpush.msrb.mxu1 %v1940_v7  ;;  %v1982_v7 = vand.u32 4294901760, %v1981_v15  ;;  %v8894_v15 = vld [vmem:[#allocation60_spill] sm:$0xff] }
 0x2d0   :  { %2087 = vmatpush.msrb.mxu2 %v6661_v29  ;;  %2207 = vmatpush.msrb.mxu3 %v6639_v31  ;;  %v8869_v29 = vld [vmem:[#allocation39_spill] sm:$0xff] }
 0x2d1   :  { %1758 = vmatpush.msrb.mxu0 %v6652_v56  ;;  %1947 = vmatpush.msrb.mxu1 %v1946_v37  ;;  %v1988_v37 = vand.u32 4294901760, %v1987_v14  ;;  %v8896_v14 = vld [vmem:[#allocation65_spill] sm:$0xff] }
 0x2d2   :  { %2090 = vmatpush.msrb.mxu2 %v6674_v9  ;;  %2209 = vmatpush.msrb.mxu3 %v6652_v56  ;;  %v8872_v9 = vld [vmem:[#allocation41_spill] sm:$0xff] }
 0x2d3   :  { %1760 = vmatpush.msrb.mxu0 %v6665_v30  ;;  %1953 = vmatpush.msrb.mxu1 %v1952_v0  ;;  %v8883_v0 = vld [vmem:[#allocation58_spill] sm:$0xff] }
 0x2d4   :  { %2093 = vmatpush.msrb.mxu2 %v6686_v35  ;;  %2211 = vmatpush.msrb.mxu3 %v6665_v30  ;;  %v8875_v35 = vld [vmem:[#allocation50_spill] sm:$0xff] }
 0x2d5   :  { %1762 = vmatpush.msrb.mxu0 %v6677_v24  ;;  %1959 = vmatpush.msrb.mxu1 %v1958_v63  ;;  %v8887_v63 = vld [vmem:[#allocation62_spill] sm:$0xff] }
 0x2d6   :  { %2096 = vmatpush.msrb.mxu2 %v6698_v28  ;;  %2213 = vmatpush.msrb.mxu3 %v6677_v24  ;;  %v8878_v28 = vld [vmem:[#allocation44_spill] sm:$0xff] }
 0x2d7   :  { %1764 = vmatpush.msrb.mxu0 %v6689_v27  ;;  %1965 = vmatpush.msrb.mxu1 %v1964_v12  ;;  %v8890_v12 = vld [vmem:[#allocation56_spill] sm:$0xff] }
 0x2d8   :  { %2099 = vmatpush.msrb.mxu2 %v6708_v5  ;;  %2215 = vmatpush.msrb.mxu3 %v6689_v27  ;;  %v8881_v5 = vld [vmem:[#allocation51_spill] sm:$0xff] }
 0x2d9   :  { %1770 = vmatmul.f32.vlgmr.msrb.gmra.mxu0 %v8835_v46  ;;  %1971 = vmatpush.msrb.mxu1 %v1970_v19  ;;  %v8893_v19 = vld [vmem:[#allocation63_spill] sm:$0xff] }
 0x2da   :  { %2316 = vmatpush.msra.mxu0 %v1896_v8  ;;  %2102 = vmatpush.msrb.mxu2 %v6718_v38  ;;  %v8839_v8 = vld [vmem:[#allocation14_spill] sm:$0xff]  ;;  %v8885_v38 = vld [vmem:[#allocation55_spill] sm:$0xff] }
 0x2db   :  { %1977 = vmatpush.msrb.mxu1 %v1976_v18  ;;  %2105 = vmatmul.f32.vlgmr.msrb.gmra.mxu2 %v8836_v57  ;;  %v8895_v18 = vld [vmem:[#allocation68_spill] sm:$0xff] }
 0x2dc   :  { %2320 = vmatpush.msra.mxu0 %v1902_v21  ;;  %2219 = vmatmul.f32.vlgmr.msrb.gmra.mxu3 %v8837_v40  ;;  %v8849_v21 = vld [vmem:[#allocation19_spill] sm:$0xff] }
 0x2dd   :  { %1983 = vmatpush.msrb.mxu1 %v1982_v7  ;;  %v8897_v7 = vld [vmem:[#allocation67_spill] sm:$0xff] }
 0x2de   :  { %2324 = vmatpush.msra.mxu0 %v1908_v23  ;;  %v8852_v23 = vld [vmem:[#allocation21_spill] sm:$0xff] }
 0x2df   :  { %1989 = vmatpush.msrb.mxu1 %v1988_v37 }
 0x2e0   :  { %2328 = vmatpush.msra.mxu0 %v1914_v20  ;;  %1991 = vmatmul.f32.vlgmr.msrb.gmra.mxu1 %v8838_v11  ;;  %v8855_v20 = vld [vmem:[#allocation30_spill] sm:$0xff] }
 0x2e1   :  { %1778 = vmatmul.f32.gmra.mxu0 %v8839_v8  ;;  %2443 = vmatpush.msra.mxu1 %v6528_v50  ;;  %v8842_v50 = vld [vmem:[#allocation8_spill] sm:$0xff] }
 0x2e2   :  { %2332 = vmatpush.msra.mxu0 %v1920_v32  ;;  %v8858_v32 = vld [vmem:[#allocation24_spill] sm:$0xff] }
 0x2e3   :  { %2445 = vmatpush.msra.mxu1 %v6497_v58  ;;  %2110 = vmatmul.f32.gmra.mxu2 %v8840_v45  ;;  %v8843_v58 = vld [vmem:[#allocation18_spill] sm:$0xff] }
 0x2e4   :  { %2336 = vmatpush.msra.mxu0 %v1926_v41  ;;  %2225 = vmatmul.f32.gmra.mxu3 %v8841_v49  ;;  %v8861_v41 = vld [vmem:[#allocation31_spill] sm:$0xff] }
 0x2e5   :  { %2447 = vmatpush.msra.mxu1 %v6505_v34  ;;  %v8844_v34 = vld [vmem:[#allocation13_spill] sm:$0xff] }
 0x2e6   :  { %2340 = vmatpush.msra.mxu0 %v1932_v2  ;;  %v8864_v2 = vld [vmem:[#allocation33_spill] sm:$0xff] }
 0x2e7   :  { %2449 = vmatpush.msra.mxu1 %v6514_v54  ;;  %v8845_v54 = vld [vmem:[#allocation15_spill] sm:$0xff] }
 0x2e8   :  { %2344 = vmatpush.msra.mxu0 %v1938_v1  ;;  %1995 = vmatmul.f32.gmra.mxu1 %v8842_v50  ;;  %v8867_v1 = vld [vmem:[#allocation42_spill] sm:$0xff] }
 0x2e9   :  { %1786 = vmatmul.f32.gmra.mxu0 %v8843_v58  ;;  %2451 = vmatpush.msra.mxu1 %v6526_v4  ;;  %v8846_v4 = vld [vmem:[#allocation12_spill] sm:$0xff] }
 0x2ea   :  { %2348 = vmatpush.msra.mxu0 %v1944_v59  ;;  %v8870_v59 = vld [vmem:[#allocation36_spill] sm:$0xff] }
 0x2eb   :  { %2453 = vmatpush.msra.mxu1 %v6539_v13  ;;  %2115 = vmatmul.f32.gmra.mxu2 %v8844_v34  ;;  %v8847_v13 = vld [vmem:[#allocation22_spill] sm:$0xff] }
 0x2ec   :  { %2352 = vmatpush.msra.mxu0 %v1950_v62  ;;  %2231 = vmatmul.f32.gmra.mxu3 %v8845_v54  ;;  %v8873_v62 = vld [vmem:[#allocation43_spill] sm:$0xff] }
 0x2ed   :  { %2455 = vmatpush.msra.mxu1 %v6556_v3  ;;  %v8850_v3 = vld [vmem:[#allocation16_spill] sm:$0xff] }
 0x2ee   :  { %2356 = vmatpush.msra.mxu0 %v1956_v22  ;;  %v8876_v22 = vld [vmem:[#allocation45_spill] sm:$0xff] }
 0x2ef   :  { %2457 = vmatpush.msra.mxu1 %v6570_v25  ;;  %v8853_v25 = vld [vmem:[#allocation23_spill] sm:$0xff] }
 0x2f0   :  { %2360 = vmatpush.msra.mxu0 %v1962_v47  ;;  %1999 = vmatmul.f32.gmra.mxu1 %v8846_v4  ;;  %v8879_v47 = vld [vmem:[#allocation54_spill] sm:$0xff] }
 0x2f1   :  { %1794 = vmatmul.f32.gmra.mxu0 %v8847_v13  ;;  %2459 = vmatpush.msra.mxu1 %v6590_v60  ;;  %v8856_v60 = vld [vmem:[#allocation25_spill] sm:$0xff] }
 0x2f2   :  { %2364 = vmatpush.msra.mxu0 %v1968_v6  ;;  %v8882_v6 = vld [vmem:[#allocation48_spill] sm:$0xff] }
 0x2f3   :  { %2461 = vmatpush.msra.mxu1 %v6608_v33  ;;  %2120 = vmatmul.f32.gmra.mxu2 %v8848_v39  ;;  %v8859_v33 = vld [vmem:[#allocation34_spill] sm:$0xff] }
 0x2f4   :  { %2368 = vmatpush.msra.mxu0 %v1974_v26  ;;  %2237 = vmatmul.f32.gmra.mxu3 %v8849_v21  ;;  %v8886_v26 = vld [vmem:[#allocation52_spill] sm:$0xff] }
 0x2f5   :  { %2463 = vmatpush.msra.mxu1 %v6623_v51  ;;  %v8862_v51 = vld [vmem:[#allocation28_spill] sm:$0xff] }
 0x2f6   :  { %2372 = vmatpush.msra.mxu0 %v1980_v10  ;;  %v8889_v10 = vld [vmem:[#allocation59_spill] sm:$0xff] }
 0x2f7   :  { %2465 = vmatpush.msra.mxu1 %v6639_v31  ;;  %v8865_v31 = vld [vmem:[#allocation35_spill] sm:$0xff] }
 0x2f8   :  { %2376 = vmatpush.msra.mxu0 %v1986_v16  ;;  %2003 = vmatmul.f32.gmra.mxu1 %v8850_v3  ;;  %v8892_v16 = vld [vmem:[#allocation61_spill] sm:$0xff] }
 0x2f9   :  { %1802 = vmatmul.f32.gmra.mxu0 %v8851_v55  ;;  %2467 = vmatpush.msra.mxu1 %v6652_v56  ;;  %v8868_v56 = vld [vmem:[#allocation37_spill] sm:$0xff] }
 0x2fb   :  { %2469 = vmatpush.msra.mxu1 %v6665_v30  ;;  %2125 = vmatmul.f32.gmra.mxu2 %v8852_v23  ;;  %v8871_v30 = vld [vmem:[#allocation46_spill] sm:$0xff] }
 0x2fc   :  { %2243 = vmatmul.f32.gmra.mxu3 %v8853_v25 }
 0x2fd   :  { %2471 = vmatpush.msra.mxu1 %v6677_v24  ;;  %v8874_v24 = vld [vmem:[#allocation40_spill] sm:$0xff] }
 0x2ff   :  { %2473 = vmatpush.msra.mxu1 %v6689_v27  ;;  %v8877_v27 = vld [vmem:[#allocation47_spill] sm:$0xff] }
 0x300   :  { %2007 = vmatmul.f32.gmra.mxu1 %v8854_v17 }
 0x301   :  { %1810 = vmatmul.f32.gmra.mxu0 %v8855_v20 }
 0x303   :  { %2130 = vmatmul.f32.gmra.mxu2 %v8856_v60  ;;  %v1726_v60 = vld [vmem:[%s8477_s4 + $0x50] sm:$0xff] }
 0x304   :  { %2249 = vmatmul.f32.gmra.mxu3 %v8857_v43 }
 0x308   :  { %2011 = vmatmul.f32.gmra.mxu1 %v8858_v32 }
 0x309   :  { %1818 = vmatmul.f32.gmra.mxu0 %v8859_v33 }
 0x30b   :  { %2135 = vmatmul.f32.gmra.mxu2 %v8860_v52 }
 0x30c   :  { %2255 = vmatmul.f32.gmra.mxu3 %v8861_v41 }
 0x310   :  { %2015 = vmatmul.f32.gmra.mxu1 %v8862_v51 }
 0x311   :  { %1826 = vmatmul.f32.gmra.mxu0 %v8863_v42  ;;  %v1728_v42 = vld [vmem:[%s8477_s4 + $0x60] sm:$0xff] }
 0x312   :  { %v6949_v52 = vand.u32 4294901760, %v1728_v42 }
 0x313   :  { %2140 = vmatmul.f32.gmra.mxu2 %v8864_v2 }
 0x314   :  { %2261 = vmatmul.f32.gmra.mxu3 %v8865_v31 }
 0x318   :  { %2019 = vmatmul.f32.gmra.mxu1 %v8866_v44 }
 0x319   :  { %1834 = vmatmul.f32.gmra.mxu0 %v8867_v1 }
 0x31b   :  { %2145 = vmatmul.f32.gmra.mxu2 %v8868_v56 }
 0x31c   :  { %2267 = vmatmul.f32.gmra.mxu3 %v8869_v29 }
 0x320   :  { %2023 = vmatmul.f32.gmra.mxu1 %v8870_v59 }
 0x321   :  { %1842 = vmatmul.f32.gmra.mxu0 %v8871_v30 }
 0x323   :  { %2150 = vmatmul.f32.gmra.mxu2 %v8872_v9  ;;  %v1730_v9 = vld [vmem:[%s8477_s4 + $0x70] sm:$0xff] }
 0x324   :  { %2273 = vmatmul.f32.gmra.mxu3 %v8873_v62  ;;  %v6919_v56 = vand.u32 4294901760, %v1730_v9 }
 0x326   :  { %v6930_v2 = vsub.f32 %v1730_v9, %v6919_v56 }
 0x328   :  { %2027 = vmatmul.f32.gmra.mxu1 %v8874_v24 }
 0x329   :  { %1850 = vmatmul.f32.gmra.mxu0 %v8875_v35  ;;  %v1731_v35 = vld [vmem:[%s8477_s4 + $0x78] sm:$0xff] }
 0x32a   :  { %v6909_v62 = vand.u32 4294901760, %v1731_v35 }
 0x32b   :  { %2155 = vmatmul.f32.gmra.mxu2 %v8876_v22 }
 0x32c   :  { %2279 = vmatmul.f32.gmra.mxu3 %v8877_v27  ;;  %v6917_v29 = vsub.f32 %v1731_v35, %v6909_v62  ;;  %2994 = vmatpush.msrb.mxu1 %v6909_v62 }
 0x32d   :  { %2543 = vmatpush.msra.mxu2 %v6909_v62 }
 0x32e   :  { %v8633_v31 = vand.u32 4294901760, %v6917_v29  ;;  %2866 = vmatpush.msrb.mxu0 %v6917_v29  ;;  %2996 = vmatpush.msrb.mxu1 %v6919_v56 }
 0x32f   :  { %2545 = vmatpush.msra.mxu2 %v6919_v56 }
 0x330   :  { %2031 = vmatmul.f32.gmra.mxu1 %v8878_v28  ;;  %v2706_v9 = vsub.f32 %v6917_v29, %v8633_v31  ;;  %2869 = vmatpush.msrb.mxu0 %v6930_v2 }
 0x331   :  { %1858 = vmatmul.f32.gmra.mxu0 %v8879_v47 }
 0x332   :  { %v2707_v33 = vand.u32 4294901760, %v2706_v9 }
 0x333   :  { %2160 = vmatmul.f32.gmra.mxu2 %v8880_v48 }
 0x334   :  { %2285 = vmatmul.f32.gmra.mxu3 %v8881_v5 }
 0x335   :  { %2708 = vmatpush.msra.mxu3 %v2707_v33  ;;  %v1725_v33 = vld [vmem:[%s8477_s4 + $0x48] sm:$0xff] }
 0x338   :  { %2035 = vmatmul.f32.gmra.mxu1 %v8882_v6 }
 0x339   :  { %1866 = vmatmul.f32.gmra.mxu0 %v8883_v0 }
 0x33b   :  { %2165 = vmatmul.f32.gmra.mxu2 %v8884_v61 }
 0x33c   :  { %2291 = vmatmul.f32.gmra.mxu3 %v8885_v38 }
 0x340   :  { %2039 = vmatmul.f32.gmra.mxu1 %v8886_v26 }
 0x341   :  { %1874 = vmatmul.f32.gmra.mxu0 %v8887_v63 }
 0x343   :  { %2170 = vmatmul.f32.gmra.mxu2 %v8888_v53  ;;  %v8898_v53 = vld [vmem:[#allocation64_spill] sm:$0xff] }
 0x344   :  { %2297 = vmatmul.f32.gmra.mxu3 %v8889_v10 }
 0x348   :  { %2043 = vmatmul.f32.gmra.mxu1 %v8890_v12 }
 0x349   :  { %1882 = vmatmul.f32.gmra.mxu0 %v8891_v36 }
 0x34b   :  { %2175 = vmatmul.f32.gmra.mxu2 %v8892_v16 }
 0x34c   :  { %2303 = vmatmul.f32.gmra.mxu3 %v8893_v19 }
 0x350   :  { %2047 = vmatmul.f32.gmra.mxu1 %v8894_v15 }
 0x351   :  { %1890 = vmatmul.f32.gmra.mxu0 %v8895_v18 }
 0x353   :  { %2180 = vmatmul.f32.gmra.mxu2 %v8896_v14 }
 0x354   :  { %2309 = vmatmul.f32.gmra.mxu3 %v8897_v7 }
 0x356   :  { %v6854_v37 = vpop.f32.mrf.mxu0 }
 0x358   :  { %2051 = vmatmul.f32.gmra.mxu1 %v8898_v53 }
 0x359   :  { %2378 = vmatmul.f32.vlgmr.msra.gmra.mxu0 %v8838_v11 }
 0x35d   :  { %v6858_v10 = vpop.f32.mrf.mxu1 }
 0x35e   :  { %v6860_v36 = vpop.f32.mrf.mxu0 }
 0x360   :  { %2475 = vmatmul.f32.vlgmr.msra.gmra.mxu1 %v8838_v11  ;;  %v7098_v11 = vpop.f32.mrf.mxu2 }
 0x361   :  { %2382 = vmatmul.f32.gmra.mxu0 %v8842_v50 }
 0x365   :  { %v6864_v19 = vpop.f32.mrf.mxu1 }
 0x366   :  { %v6866_v18 = vpop.f32.mrf.mxu0 }
 0x368   :  { %2479 = vmatmul.f32.gmra.mxu1 %v8842_v50 }
 0x369   :  { %2386 = vmatmul.f32.gmra.mxu0 %v8846_v4 }
 0x36d   :  { %v6870_v7 = vpop.f32.mrf.mxu1 }
 0x36e   :  { %v6872_v14 = vpop.f32.mrf.mxu0 }
 0x370   :  { %2483 = vmatmul.f32.gmra.mxu1 %v8846_v4 }
 0x371   :  { %2390 = vmatmul.f32.gmra.mxu0 %v8850_v3 }
 0x375   :  { %v6876_v16 = vpop.f32.mrf.mxu1 }
 0x376   :  { %v6878_v63 = vpop.f32.mrf.mxu0 }
 0x378   :  { %2487 = vmatmul.f32.gmra.mxu1 %v8850_v3  ;;  %v6996_v3 = vand.u32 4294901760, %v1725_v33 }
 0x379   :  { %2394 = vmatmul.f32.gmra.mxu0 %v8854_v17 }
 0x37d   :  { %v6882_v38 = vpop.f32.mrf.mxu1 }
 0x37e   :  { %v6884_v61 = vpop.f32.mrf.mxu0 }
 0x380   :  { %2491 = vmatmul.f32.gmra.mxu1 %v8854_v17  ;;  %v6978_v17 = vand.u32 4294901760, %v1726_v60 }
 0x381   :  { %2398 = vmatmul.f32.gmra.mxu0 %v8858_v32 }
 0x382   :  { %v6994_v55 = vsub.f32 %v1726_v60, %v6978_v17 }
 0x384   :  { %v8643_v60 = vand.u32 4294901760, %v6994_v55 }
 0x385   :  { %v6888_v0 = vpop.f32.mrf.mxu1 }
 0x386   :  { %v6890_v5 = vpop.f32.mrf.mxu0 }
 0x388   :  { %2495 = vmatmul.f32.gmra.mxu1 %v8858_v32  ;;  %v6962_v32 = vsub.f32 %v1728_v42, %v6949_v52 }
 0x389   :  { %2402 = vmatmul.f32.gmra.mxu0 %v8862_v51 }
 0x38a   :  { %v8639_v20 = vand.u32 4294901760, %v6962_v32 }
 0x38d   :  { %v6894_v48 = vpop.f32.mrf.mxu1 }
 0x38e   :  { %v6896_v47 = vpop.f32.mrf.mxu0 }
 0x390   :  { %2499 = vmatmul.f32.gmra.mxu1 %v8862_v51  ;;  %v8635_v51 = vand.u32 4294901760, %v6930_v2 }
 0x391   :  { %2406 = vmatmul.f32.gmra.mxu0 %v8866_v44 }
 0x392   :  { %v2712_v31 = vsub.f32 %v6930_v2, %v8635_v51 }
 0x394   :  { %v2713_v51 = vand.u32 4294901760, %v2712_v31 }
 0x395   :  { %v6900_v27 = vpop.f32.mrf.mxu1 }
 0x396   :  { %v6902_v22 = vpop.f32.mrf.mxu0  ;;  %2714 = vmatpush.msra.mxu3 %v2713_v51  ;;  %v1724_v51 = vld [vmem:[%s8477_s4 + $0x40] sm:$0xff] }
 0x397   :  { %v7010_v21 = vand.u32 4294901760, %v1724_v51 }
 0x398   :  { %2503 = vmatmul.f32.gmra.mxu1 %v8866_v44  ;;  %v1729_v44 = vld [vmem:[%s8477_s4 + $0x68] sm:$0xff] }
 0x399   :  { %2410 = vmatmul.f32.gmra.mxu0 %v8870_v59  ;;  %v6933_v35 = vand.u32 4294901760, %v1729_v44  ;;  %v7025_v39 = vsub.f32 %v1724_v51, %v7010_v21 }
 0x39b   :  { %v6947_v41 = vsub.f32 %v1729_v44, %v6933_v35  ;;  %2998 = vmatpush.msrb.mxu1 %v6933_v35  ;;  %2547 = vmatpush.msra.mxu2 %v6933_v35  ;;  %v8646_v54 = vand.u32 4294901760, %v7025_v39 }
 0x39d   :  { %v6914_v30 = vpop.f32.mrf.mxu1  ;;  %v8637_v44 = vand.u32 4294901760, %v6947_v41  ;;  %3000 = vmatpush.msrb.mxu1 %v6949_v52  ;;  %2872 = vmatpush.msrb.mxu0 %v6947_v41 }
 0x39e   :  { %8899 = vst [vmem:[#allocation70_spill] sm:$0xff] %v6914_v30  ;;  %v6923_v1 = vpop.f32.mrf.mxu0  ;;  %2549 = vmatpush.msra.mxu2 %v6949_v52 }
 0x39f   :  { %8900 = vst [vmem:[#allocation79_spill] sm:$0xff] %v6923_v1  ;;  %v2718_v42 = vsub.f32 %v6947_v41, %v8637_v44  ;;  %2875 = vmatpush.msrb.mxu0 %v6962_v32  ;;  %v2724_v44 = vsub.f32 %v6962_v32, %v8639_v20  ;;  %v7008_v20 = vsub.f32 %v1725_v33, %v6996_v3 }
 0x3a0   :  { %2507 = vmatmul.f32.gmra.mxu1 %v8870_v59  ;;  %v1727_v59 = vld [vmem:[%s8477_s4 + $0x58] sm:$0xff] }
 0x3a1   :  { %2414 = vmatmul.f32.gmra.mxu0 %v8874_v24  ;;  %v6966_v43 = vand.u32 4294901760, %v1727_v59  ;;  %v2719_v31 = vand.u32 4294901760, %v2718_v42  ;;  %v2725_v42 = vand.u32 4294901760, %v2724_v44  ;;  %v2736_v44 = vsub.f32 %v6994_v55, %v8643_v60 }
 0x3a2   :  { %v8645_v33 = vand.u32 4294901760, %v7008_v20 }
 0x3a3   :  { %v6983_v23 = vsub.f32 %v1727_v59, %v6966_v43  ;;  %3002 = vmatpush.msrb.mxu1 %v6966_v43  ;;  %2551 = vmatpush.msra.mxu2 %v6966_v43  ;;  %v2737_v60 = vand.u32 4294901760, %v2736_v44  ;;  %v1721_v44 = vld [vmem:[%s8477_s4 + $0x28] sm:$0xff] }
 0x3a4   :  { %2720 = vmatpush.msra.mxu3 %v2719_v31  ;;  %v1723_v31 = vld [vmem:[%s8477_s4 + $0x38] sm:$0xff]  ;;  %v2742_v51 = vsub.f32 %v7008_v20, %v8645_v33  ;;  %v2748_v33 = vsub.f32 %v7025_v39, %v8646_v54  ;;  %v7058_v49 = vand.u32 4294901760, %v1721_v44 }
 0x3a5   :  { %v6972_v9 = vpop.f32.mrf.mxu1  ;;  %v8641_v59 = vand.u32 4294901760, %v6983_v23  ;;  %2878 = vmatpush.msrb.mxu0 %v6983_v23  ;;  %3004 = vmatpush.msrb.mxu1 %v6978_v17  ;;  %v7027_v13 = vand.u32 4294901760, %v1723_v31 }
 0x3a6   :  { %8901 = vst [vmem:[#allocation88_spill] sm:$0xff] %v6972_v9  ;;  %v6980_v25 = vpop.f32.mrf.mxu0  ;;  %2726 = vmatpush.msra.mxu3 %v2725_v42  ;;  %2553 = vmatpush.msra.mxu2 %v6978_v17  ;;  %v1722_v42 = vld [vmem:[%s8477_s4 + $0x30] sm:$0xff]  ;;  %v2743_v50 = vand.u32 4294901760, %v2742_v51  ;;  %v1720_v51 = vld [vmem:[%s8477_s4 + $0x20] sm:$0xff]  ;;  %v2749_v54 = vand.u32 4294901760, %v2748_v33  ;;  %v7073_v8 = vsub.f32 %v1721_v44, %v7058_v49  ;;  %v1719_v33 = vld [vmem:[%s8477_s4 + $0x18] sm:$0xff] }
 0x3a7   :  { %8902 = vst [vmem:[#allocation95_spill] sm:$0xff] %v6980_v25  ;;  %2881 = vmatpush.msrb.mxu0 %v6994_v55  ;;  %3006 = vmatpush.msrb.mxu1 %v6996_v3  ;;  %v7042_v34 = vsub.f32 %v1723_v31, %v7027_v13  ;;  %v7048_v58 = vand.u32 4294901760, %v1722_v42  ;;  %v7089_v44 = vand.u32 4294901760, %v1719_v33 }
 0x3a8   :  { %2511 = vmatmul.f32.gmra.mxu1 %v8874_v24  ;;  %v2730_v24 = vsub.f32 %v6983_v23, %v8641_v59  ;;  %2555 = vmatpush.msra.mxu2 %v6996_v3  ;;  %v8906_v40 = vand.u32 4294901760, %v7073_v8 }
 0x3a9   :  { %2418 = vmatmul.f32.gmra.mxu0 %v8878_v28  ;;  %v8649_v31 = vand.u32 4294901760, %v7042_v34  ;;  %3008 = vmatpush.msrb.mxu1 %v7010_v21  ;;  %v7107_v46 = vsub.f32 %v1719_v33, %v7089_v44 }
 0x3aa   :  { %v2731_v59 = vand.u32 4294901760, %v2730_v24  ;;  %2884 = vmatpush.msrb.mxu0 %v7008_v20  ;;  %2557 = vmatpush.msra.mxu2 %v7010_v21  ;;  %v2766_v57 = vsub.f32 %v7073_v8, %v8906_v40  ;;  %v1717_v40 = vld [vmem:[%s8477_s4 + $0x8] sm:$0xff] }
 0x3ab   :  { %v2754_v45 = vsub.f32 %v7042_v34, %v8649_v31  ;;  %3010 = vmatpush.msrb.mxu1 %v7027_v13  ;;  %v8652_v25 = vand.u32 4294901760, %v7107_v46 }
 0x3ac   :  { %2732 = vmatpush.msra.mxu3 %v2731_v59  ;;  %2887 = vmatpush.msrb.mxu0 %v7025_v39  ;;  %v7063_v59 = vsub.f32 %v1722_v42, %v7048_v58 }
 0x3ad   :  { %v7035_v4 = vpop.f32.mrf.mxu1  ;;  %3012 = vmatpush.msrb.mxu1 %v7048_v58  ;;  %2559 = vmatpush.msra.mxu2 %v7027_v13 }
 0x3ae   :  { %8903 = vst [vmem:[#allocation97_spill] sm:$0xff] %v7035_v4  ;;  %v7045_v24 = vpop.f32.mrf.mxu0  ;;  %2738 = vmatpush.msra.mxu3 %v2737_v60  ;;  %v7076_v60 = vand.u32 4294901760, %v1720_v51  ;;  %v8650_v42 = vand.u32 4294901760, %v7063_v59  ;;  %2890 = vmatpush.msrb.mxu0 %v7042_v34 }
 0x3af   :  { %8904 = vst [vmem:[#allocation71_spill] sm:$0xff] %v7045_v24  ;;  %3014 = vmatpush.msrb.mxu1 %v7058_v49  ;;  %2561 = vmatpush.msra.mxu2 %v7048_v58 }
 0x3b0   :  { %2515 = vmatmul.f32.gmra.mxu1 %v8878_v28  ;;  %2744 = vmatpush.msra.mxu3 %v2743_v50  ;;  %v2755_v28 = vand.u32 4294901760, %v2754_v45  ;;  %v7085_v31 = vsub.f32 %v1720_v51, %v7076_v60  ;;  %v2760_v50 = vsub.f32 %v7063_v59, %v8650_v42  ;;  %v1718_v45 = vld [vmem:[%s8477_s4 + $0x10] sm:$0xff] }
 0x3b1   :  { %2422 = vmatmul.f32.gmra.mxu0 %v8882_v6  ;;  %v7111_v42 = vand.u32 4294901760, %v1718_v45  ;;  %3016 = vmatpush.msrb.mxu1 %v7076_v60 }
 0x3b2   :  { %2750 = vmatpush.msra.mxu3 %v2749_v54  ;;  %2893 = vmatpush.msrb.mxu0 %v7063_v59  ;;  %v2761_v4 = vand.u32 4294901760, %v2760_v50  ;;  %v2767_v54 = vand.u32 4294901760, %v2766_v57  ;;  %v8908_v33 = vand.u32 4294901760, %v7085_v31  ;;  %v1716_v57 = vld [vmem:[%s8477_s4] sm:$0xff]  ;;  %v7134_v50 = vpop.f32.mrf.mxu3 }
 0x3b3   :  { %v7124_v9 = vsub.f32 %v1718_v45, %v7111_v42  ;;  %2563 = vmatpush.msra.mxu2 %v7058_v49  ;;  %v2778_v45 = vsub.f32 %v7107_v46, %v8652_v25  ;;  %3018 = vmatpush.msrb.mxu1 %v7089_v44 }
 0x3b4   :  { %2756 = vmatpush.msra.mxu3 %v2755_v28  ;;  %2896 = vmatpush.msrb.mxu0 %v7073_v8  ;;  %v7129_v28 = vand.u32 4294901760, %v1717_v40 }
 0x3b5   :  { %v7100_v51 = vpop.f32.mrf.mxu1  ;;  %v2779_v1 = vand.u32 4294901760, %v2778_v45  ;;  %2565 = vmatpush.msra.mxu2 %v7076_v60  ;;  %3020 = vmatpush.msrb.mxu1 %v7111_v42 }
 0x3b6   :  { %8905 = vst [vmem:[#allocation74_spill] sm:$0xff] %v7100_v51  ;;  %v7113_v24 = vpop.f32.mrf.mxu0  ;;  %v2772_v51 = vsub.f32 %v7085_v31, %v8908_v33  ;;  %2762 = vmatpush.msra.mxu3 %v2761_v4  ;;  %v7142_v4 = vand.u32 4294901760, %v1716_v57  ;;  %2899 = vmatpush.msrb.mxu0 %v7085_v31 }
 0x3b7   :  { %8907 = vst [vmem:[#allocation85_spill] sm:$0xff] %v7113_v24  ;;  %v8653_v24 = vand.u32 4294901760, %v7124_v9  ;;  %2567 = vmatpush.msra.mxu2 %v7089_v44  ;;  %3022 = vmatpush.msrb.mxu1 %v7129_v28 }
 0x3b8   :  { %2519 = vmatmul.f32.gmra.mxu1 %v8882_v6  ;;  %v2773_v33 = vand.u32 4294901760, %v2772_v51  ;;  %2768 = vmatpush.msra.mxu3 %v2767_v54  ;;  %v7146_v6 = vsub.f32 %v1717_v40, %v7129_v28  ;;  %v7153_v25 = vsub.f32 %v1716_v57, %v7142_v4 }
 0x3b9   :  { %2426 = vmatmul.f32.gmra.mxu0 %v8886_v26  ;;  %v2784_v51 = vsub.f32 %v7124_v9, %v8653_v24  ;;  %2569 = vmatpush.msra.mxu2 %v7111_v42 }
 0x3ba   :  { %2774 = vmatpush.msra.mxu3 %v2773_v33  ;;  %2902 = vmatpush.msrb.mxu0 %v7107_v46  ;;  %v8654_v54 = vand.u32 4294901760, %v7146_v6  ;;  %v8655_v45 = vand.u32 4294901760, %v7153_v25  ;;  %v7169_v33 = vpop.f32.mrf.mxu2 }
 0x3bb   :  { %v2785_v40 = vand.u32 4294901760, %v2784_v51  ;;  %3024 = vmatpush.msrb.mxu1 %v7142_v4  ;;  %2571 = vmatpush.msra.mxu2 %v7129_v28 }
 0x3bc   :  { %2780 = vmatpush.msra.mxu3 %v2779_v1  ;;  %v2790_v57 = vsub.f32 %v7146_v6, %v8654_v54  ;;  %2905 = vmatpush.msrb.mxu0 %v7124_v9  ;;  %v2796_v51 = vsub.f32 %v7153_v25, %v8655_v45  ;;  %v2226_v54 = vpop.f32.mrf.mxu3 }
 0x3bd   :  { %v7158_v30 = vpop.f32.mrf.mxu1  ;;  %2573 = vmatpush.msra.mxu2 %v7142_v4 }
 0x3be   :  { %v7163_v24 = vpop.f32.mrf.mxu0  ;;  %2786 = vmatpush.msra.mxu3 %v2785_v40  ;;  %v2791_v1 = vand.u32 4294901760, %v2790_v57  ;;  %2908 = vmatpush.msrb.mxu0 %v7146_v6  ;;  %v8910_v40 = vand.u32 4294901760, %v6917_v29  ;;  %v8913_v29 = vand.u32 4294901760, %v6962_v32  ;;  %v1993_v32 = vadd.f32 %v6858_v10, %v6854_v37 }
 0x3bf   :  { %8909 = vst [vmem:[#allocation93_spill] sm:$0xff] %v7163_v24  ;;  %v2797_v24 = vand.u32 4294901760, %v2796_v51  ;;  %v8911_v51 = vand.u32 4294901760, %v6930_v2 }
 0x3c0   :  { %2523 = vmatmul.f32.gmra.mxu1 %v8886_v26  ;;  %2792 = vmatpush.msra.mxu3 %v2791_v1 }
 0x3c1   :  { %2430 = vmatmul.f32.gmra.mxu0 %v8890_v12  ;;  %3125 = vmatpush.msrb.mxu2 %v8910_v40  ;;  %v8914_v40 = vand.u32 4294901760, %v6983_v23  ;;  %v8917_v23 = vand.u32 4294901760, %v7025_v39 }
 0x3c2   :  { %2798 = vmatpush.msra.mxu3 %v2797_v24  ;;  %2911 = vmatpush.msrb.mxu0 %v7153_v25  ;;  %v2116_v1 = vpop.f32.mrf.mxu2  ;;  %v8912_v24 = vand.u32 4294901760, %v6947_v41  ;;  %v8915_v41 = vand.u32 4294901760, %v6994_v55  ;;  %v2107_v55 = vadd.f32 %v7098_v11, %v1993_v32  ;;  %v8920_v11 = vand.u32 4294901760, %v7073_v8 }
 0x3c3   :  { %3129 = vmatpush.msrb.mxu2 %v8911_v51  ;;  %v8922_v51 = vand.u32 4294901760, %v7107_v46  ;;  %v8924_v46 = vand.u32 4294901760, %v7146_v6 }
 0x3c4   :  { %3252 = vmatpush.msrb.mxu3 %v6909_v62  ;;  %v2232_v62 = vpop.f32.mrf.mxu3  ;;  %v2221_v39 = vadd.f32 %v7134_v50, %v2107_v55 }
 0x3c5   :  { %v7182_v45 = vpop.f32.mrf.mxu1  ;;  %3133 = vmatpush.msrb.mxu2 %v8912_v24 }
 0x3c6   :  { %v7187_v57 = vpop.f32.mrf.mxu0  ;;  %3254 = vmatpush.msrb.mxu3 %v6919_v56 }
 0x3c7   :  { %3137 = vmatpush.msrb.mxu2 %v8913_v29 }
 0x3c8   :  { %2527 = vmatmul.f32.gmra.mxu1 %v8890_v12  ;;  %3256 = vmatpush.msrb.mxu3 %v6933_v35 }
 0x3c9   :  { %2434 = vmatmul.f32.gmra.mxu0 %v8894_v15  ;;  %3141 = vmatpush.msrb.mxu2 %v8914_v40 }
 0x3ca   :  { %3258 = vmatpush.msrb.mxu3 %v6949_v52  ;;  %v2121_v52 = vpop.f32.mrf.mxu2 }
 0x3cb   :  { %3145 = vmatpush.msrb.mxu2 %v8915_v41 }
 0x3cc   :  { %3260 = vmatpush.msrb.mxu3 %v6966_v43  ;;  %v8916_v43 = vand.u32 4294901760, %v7008_v20  ;;  %v2238_v10 = vpop.f32.mrf.mxu3 }
 0x3cd   :  { %v7200_v56 = vpop.f32.mrf.mxu1 }
 0x3ce   :  { %v7203_v2 = vpop.f32.mrf.mxu0  ;;  %3262 = vmatpush.msrb.mxu3 %v6978_v17  ;;  %3149 = vmatpush.msrb.mxu2 %v8916_v43 }
 0x3d0   :  { %2531 = vmatmul.f32.gmra.mxu1 %v8894_v15  ;;  %3264 = vmatpush.msrb.mxu3 %v6996_v3  ;;  %v8918_v3 = vand.u32 4294901760, %v7042_v34 }
 0x3d1   :  { %2438 = vmatmul.f32.gmra.mxu0 %v8898_v53  ;;  %3153 = vmatpush.msrb.mxu2 %v8917_v23 }
 0x3d2   :  { %3266 = vmatpush.msrb.mxu3 %v7010_v21  ;;  %v8919_v21 = vand.u32 4294901760, %v7063_v59  ;;  %v2126_v20 = vpop.f32.mrf.mxu2 }
 0x3d3   :  { %3157 = vmatpush.msrb.mxu2 %v8918_v3 }
 0x3d4   :  { %3268 = vmatpush.msrb.mxu3 %v7027_v13  ;;  %v1997_v13 = vadd.f32 %v6864_v19, %v6860_v36  ;;  %v8923_v36 = vand.u32 4294901760, %v7124_v9  ;;  %v2244_v19 = vpop.f32.mrf.mxu3  ;;  %v8925_v9 = vand.u32 4294901760, %v7153_v25 }
 0x3d5   :  { %v7220_v17 = vpop.f32.mrf.mxu1  ;;  %3161 = vmatpush.msrb.mxu2 %v8919_v21 }
 0x3d6   :  { %v2379_v35 = vpop.f32.mrf.mxu0  ;;  %3270 = vmatpush.msrb.mxu3 %v7048_v58  ;;  %v8921_v58 = vand.u32 4294901760, %v7085_v31 }
 0x3d7   :  { %3165 = vmatpush.msrb.mxu2 %v8920_v11  ;;  %v2380_v34 = vadd.f32 %v2379_v35, %v2221_v39 }
 0x3d8   :  { %2535 = vmatmul.f32.gmra.mxu1 %v8898_v53  ;;  %3272 = vmatpush.msrb.mxu3 %v7058_v49  ;;  %v2112_v49 = vadd.f32 %v7169_v33, %v1997_v13 }
 0x3d9   :  { %3169 = vmatpush.msrb.mxu2 %v8921_v58 }
 0x3da   :  { %3274 = vmatpush.msrb.mxu3 %v7076_v60  ;;  %v2227_v31 = vadd.f32 %v2226_v54, %v2112_v49  ;;  %v2001_v60 = vadd.f32 %v6870_v7, %v6866_v18  ;;  %v2131_v7 = vpop.f32.mrf.mxu2 }
 0x3db   :  { %3173 = vmatpush.msrb.mxu2 %v8922_v51 }
 0x3dc   :  { %3276 = vmatpush.msrb.mxu3 %v7089_v44  ;;  %v2117_v54 = vadd.f32 %v2116_v1, %v2001_v60  ;;  %v2250_v25 = vpop.f32.mrf.mxu3 }
 0x3dd   :  { %v2476_v37 = vpop.f32.mrf.mxu1  ;;  %3177 = vmatpush.msrb.mxu2 %v8923_v36 }
 0x3de   :  { %v2383_v59 = vpop.f32.mrf.mxu0  ;;  %v2477_v50 = vadd.f32 %v2476_v37, %v2380_v34  ;;  %3278 = vmatpush.msrb.mxu3 %v7111_v42  ;;  %v2233_v6 = vadd.f32 %v2232_v62, %v2117_v54 }
 0x3df   :  { %3181 = vmatpush.msrb.mxu2 %v8924_v46  ;;  %v2384_v42 = vadd.f32 %v2383_v59, %v2227_v31 }
 0x3e0   :  { %v7244_v8 = vand.u32 4294901760, %v2477_v50  ;;  %3280 = vmatpush.msrb.mxu3 %v7129_v28 }
 0x3e1   :  { %3185 = vmatpush.msrb.mxu2 %v8925_v9 }
 0x3e2   :  { %v2575_v44 = vsub.f32 %v2477_v50, %v7244_v8  ;;  %2800 = vmatmul.f32.vlgmr.msra.gmra.mxu3 %v7244_v8  ;;  %v2136_v13 = vpop.f32.mrf.mxu2 }
 0x3e3   :  { %3282 = vmatpush.msrb.mxu3 %v7142_v4  ;;  %v2005_v4 = vadd.f32 %v6876_v16, %v6872_v14  ;;  %v2009_v14 = vadd.f32 %v6882_v38, %v6878_v63  ;;  %v2013_v38 = vadd.f32 %v6888_v0, %v6884_v61  ;;  %v2017_v61 = vadd.f32 %v6894_v48, %v6890_v5 }
 0x3e4   :  { %v2576_v33 = vand.u32 4294901760, %v2575_v44  ;;  %2914 = vmatmul.f32.vlgmr.msrb.gmra.mxu0 %v2575_v44  ;;  %v2256_v58 = vpop.f32.mrf.mxu3  ;;  %v2021_v5 = vadd.f32 %v6900_v27, %v6896_v47  ;;  %v8926_v27 = vld [vmem:[#allocation70_spill] sm:$0xff] }
 0x3e5   :  { %v2480_v28 = vpop.f32.mrf.mxu1  ;;  %v2122_v55 = vadd.f32 %v2121_v52, %v2005_v4  ;;  %v2127_v49 = vadd.f32 %v2126_v20, %v2009_v14  ;;  %v2137_v4 = vadd.f32 %v2136_v13, %v2017_v61  ;;  %v2025_v47 = vadd.f32 %v8926_v27, %v6902_v22  ;;  %v8932_v27 = vld [vmem:[#allocation74_spill] sm:$0xff] }
 0x3e6   :  { %v2577_v24 = vsub.f32 %v2575_v44, %v2576_v33  ;;  %v2387_v29 = vpop.f32.mrf.mxu0  ;;  %v2481_v18 = vadd.f32 %v2480_v28, %v2384_v42  ;;  %3028 = vmatmul.f32.vlgmr.msrb.gmra.mxu1 %v2576_v33  ;;  %v2132_v42 = vadd.f32 %v2131_v7, %v2013_v38 }
 0x3e7   :  { %v2388_v43 = vadd.f32 %v2387_v29, %v2233_v6  ;;  %v2239_v16 = vadd.f32 %v2238_v10, %v2122_v55  ;;  %v2245_v31 = vadd.f32 %v2244_v19, %v2127_v49  ;;  %v2257_v48 = vadd.f32 %v2256_v58, %v2137_v4 }
 0x3e8   :  { %v2578_v40 = vand.u32 4294901760, %v2577_v24  ;;  %v7258_v41 = vand.u32 4294901760, %v2481_v18  ;;  %v2251_v0 = vadd.f32 %v2250_v25, %v2132_v42  ;;  %v8927_v42 = vld [vmem:[#allocation79_spill] sm:$0xff] }
 0x3ea   :  { %v2583_v32 = vsub.f32 %v2481_v18, %v7258_v41  ;;  %2579 = vmatmul.f32.vlgmr.msra.gmra.mxu2 %v2578_v40  ;;  %2804 = vmatmul.f32.gmra.mxu3 %v7258_v41  ;;  %v2141_v60 = vpop.f32.mrf.mxu2 }
 0x3eb   :  { %v2142_v13 = vadd.f32 %v2141_v60, %v2021_v5 }
 0x3ec   :  { %2919 = vmatmul.f32.gmra.mxu0 %v2583_v32  ;;  %v2584_v1 = vand.u32 4294901760, %v2583_v32  ;;  %v2262_v54 = vpop.f32.mrf.mxu3 }
 0x3ed   :  { %v2484_v23 = vpop.f32.mrf.mxu1 }
 0x3ee   :  { %v2391_v35 = vpop.f32.mrf.mxu0  ;;  %v2485_v3 = vadd.f32 %v2484_v23, %v2388_v43  ;;  %3034 = vmatmul.f32.gmra.mxu1 %v2584_v1  ;;  %v2585_v21 = vsub.f32 %v2583_v32, %v2584_v1 }
 0x3ef   :  { %v2392_v34 = vadd.f32 %v2391_v35, %v2239_v16 }
 0x3f0   :  { %v7264_v39 = vand.u32 4294901760, %v2485_v3  ;;  %v2586_v62 = vand.u32 4294901760, %v2585_v21 }
 0x3f2   :  { %v2591_v11 = vsub.f32 %v2485_v3, %v7264_v39  ;;  %2587 = vmatmul.f32.gmra.mxu2 %v2586_v62  ;;  %2808 = vmatmul.f32.gmra.mxu3 %v7264_v39  ;;  %v2146_v40 = vpop.f32.mrf.mxu2 }
 0x3f4   :  { %2924 = vmatmul.f32.gmra.mxu0 %v2591_v11  ;;  %v2592_v52 = vand.u32 4294901760, %v2591_v11  ;;  %v2268_v55 = vpop.f32.mrf.mxu3 }
 0x3f5   :  { %v2488_v37 = vpop.f32.mrf.mxu1 }
 0x3f6   :  { %v2395_v59 = vpop.f32.mrf.mxu0  ;;  %v2489_v50 = vadd.f32 %v2488_v37, %v2392_v34  ;;  %3040 = vmatmul.f32.gmra.mxu1 %v2592_v52  ;;  %v2593_v51 = vsub.f32 %v2591_v11, %v2592_v52  ;;  %v2263_v37 = vadd.f32 %v2262_v54, %v2142_v13 }
 0x3f7   :  { %v2396_v44 = vadd.f32 %v2395_v59, %v2245_v31  ;;  %v2147_v31 = vadd.f32 %v2146_v40, %v2025_v47 }
 0x3f8   :  { %v7270_v36 = vand.u32 4294901760, %v2489_v50  ;;  %v2594_v10 = vand.u32 4294901760, %v2593_v51 }
 0x3f9   :  { %v2269_v22 = vadd.f32 %v2268_v55, %v2147_v31 }
 0x3fa   :  { %v2599_v63 = vsub.f32 %v2489_v50, %v7270_v36  ;;  %2595 = vmatmul.f32.gmra.mxu2 %v2594_v10  ;;  %2812 = vmatmul.f32.gmra.mxu3 %v7270_v36  ;;  %v2151_v34 = vpop.f32.mrf.mxu2 }
 0x3fc   :  { %2929 = vmatmul.f32.gmra.mxu0 %v2599_v63  ;;  %v2600_v20 = vand.u32 4294901760, %v2599_v63  ;;  %v2274_v59 = vpop.f32.mrf.mxu3 }
 0x3fd   :  { %v2492_v46 = vpop.f32.mrf.mxu1 }
 0x3fe   :  { %v2399_v33 = vpop.f32.mrf.mxu0  ;;  %v2493_v9 = vadd.f32 %v2492_v46, %v2396_v44  ;;  %3046 = vmatmul.f32.gmra.mxu1 %v2600_v20  ;;  %v2601_v28 = vsub.f32 %v2599_v63, %v2600_v20 }
 0x3ff   :  { %v2400_v18 = vadd.f32 %v2399_v33, %v2251_v0  ;;  %v8928_v33 = vld [vmem:[#allocation88_spill] sm:$0xff] }
 0x400   :  { %v7276_v19 = vand.u32 4294901760, %v2493_v9  ;;  %v2602_v24 = vand.u32 4294901760, %v2601_v28 }
 0x402   :  { %v2607_v29 = vsub.f32 %v2493_v9, %v7276_v19  ;;  %2603 = vmatmul.f32.gmra.mxu2 %v2602_v24  ;;  %2816 = vmatmul.f32.gmra.mxu3 %v7276_v19  ;;  %v2156_v46 = vpop.f32.mrf.mxu2  ;;  %v2029_v9 = vadd.f32 %v8928_v33, %v8927_v42  ;;  %v8933_v33 = vld [vmem:[#allocation85_spill] sm:$0xff] }
 0x404   :  { %2934 = vmatmul.f32.gmra.mxu0 %v2607_v29  ;;  %v2608_v7 = vand.u32 4294901760, %v2607_v29  ;;  %v2280_v0 = vpop.f32.mrf.mxu3 }
 0x405   :  { %v2496_v6 = vpop.f32.mrf.mxu1 }
 0x406   :  { %v2403_v32 = vpop.f32.mrf.mxu0  ;;  %v2497_v43 = vadd.f32 %v2496_v6, %v2400_v18  ;;  %3052 = vmatmul.f32.gmra.mxu1 %v2608_v7  ;;  %v2609_v1 = vsub.f32 %v2607_v29, %v2608_v7  ;;  %v2152_v29 = vadd.f32 %v2151_v34, %v2029_v9  ;;  %v2041_v9 = vadd.f32 %v7158_v30, %v8933_v33  ;;  %v8934_v30 = vld [vmem:[#allocation93_spill] sm:$0xff] }
 0x407   :  { %v2404_v3 = vadd.f32 %v2403_v32, %v2257_v48 }
 0x408   :  { %v7282_v23 = vand.u32 4294901760, %v2497_v43  ;;  %v2610_v25 = vand.u32 4294901760, %v2609_v1  ;;  %v2275_v32 = vadd.f32 %v2274_v59, %v2152_v29  ;;  %v8930_v1 = vld [vmem:[#allocation97_spill] sm:$0xff] }
 0x40a   :  { %v2615_v35 = vsub.f32 %v2497_v43, %v7282_v23  ;;  %2611 = vmatmul.f32.gmra.mxu2 %v2610_v25  ;;  %2820 = vmatmul.f32.gmra.mxu3 %v7282_v23  ;;  %v8929_v43 = vld [vmem:[#allocation95_spill] sm:$0xff]  ;;  %v2161_v48 = vpop.f32.mrf.mxu2 }
 0x40b   :  { %v2033_v25 = vadd.f32 %v8930_v1, %v8929_v43  ;;  %v2045_v1 = vadd.f32 %v7182_v45, %v8934_v30 }
 0x40c   :  { %2939 = vmatmul.f32.gmra.mxu0 %v2615_v35  ;;  %v2616_v21 = vand.u32 4294901760, %v2615_v35 }
 0x40d   :  { %v2500_v62 = vpop.f32.mrf.mxu1 }
 0x40e   :  { %v2407_v16 = vpop.f32.mrf.mxu0  ;;  %v2501_v14 = vadd.f32 %v2500_v62, %v2404_v3  ;;  %3058 = vmatmul.f32.gmra.mxu1 %v2616_v21  ;;  %v2617_v11 = vsub.f32 %v2615_v35, %v2616_v21  ;;  %v2157_v21 = vadd.f32 %v2156_v46, %v2033_v25 }
 0x40f   :  { %v2408_v50 = vadd.f32 %v2407_v16, %v2263_v37  ;;  %v8931_v37 = vld [vmem:[#allocation71_spill] sm:$0xff] }
 0x410   :  { %v7288_v52 = vand.u32 4294901760, %v2501_v14  ;;  %v2618_v58 = vand.u32 4294901760, %v2617_v11  ;;  %v2037_v47 = vadd.f32 %v8932_v27, %v8931_v37 }
 0x412   :  { %v2623_v49 = vsub.f32 %v2501_v14, %v7288_v52  ;;  %2619 = vmatmul.f32.gmra.mxu2 %v2618_v58  ;;  %2824 = vmatmul.f32.gmra.mxu3 %v7288_v52  ;;  %v2286_v14 = vpop.f32.mrf.mxu3  ;;  %v2281_v58 = vadd.f32 %v2280_v0, %v2157_v21  ;;  %v2162_v31 = vadd.f32 %v2161_v48, %v2037_v47 }
 0x414   :  { %2944 = vmatmul.f32.gmra.mxu0 %v2623_v49  ;;  %v2624_v51 = vand.u32 4294901760, %v2623_v49  ;;  %v2287_v42 = vadd.f32 %v2286_v14, %v2162_v31 }
 0x415   :  { %v2504_v10 = vpop.f32.mrf.mxu1 }
 0x416   :  { %v2411_v38 = vpop.f32.mrf.mxu0  ;;  %v2505_v63 = vadd.f32 %v2504_v10, %v2408_v50  ;;  %3064 = vmatmul.f32.gmra.mxu1 %v2624_v51  ;;  %v2625_v60 = vsub.f32 %v2623_v49, %v2624_v51  ;;  %v2166_v51 = vpop.f32.mrf.mxu2 }
 0x417   :  { %v2412_v54 = vadd.f32 %v2411_v38, %v2269_v22 }
 0x418   :  { %v7294_v44 = vand.u32 4294901760, %v2505_v63  ;;  %v2626_v20 = vand.u32 4294901760, %v2625_v60 }
 0x41a   :  { %v2631_v28 = vsub.f32 %v2505_v63, %v7294_v44  ;;  %2627 = vmatmul.f32.gmra.mxu2 %v2626_v20  ;;  %2828 = vmatmul.f32.gmra.mxu3 %v7294_v44  ;;  %v2292_v22 = vpop.f32.mrf.mxu3 }
 0x41c   :  { %2949 = vmatmul.f32.gmra.mxu0 %v2631_v28  ;;  %v2632_v24 = vand.u32 4294901760, %v2631_v28 }
 0x41d   :  { %v2508_v61 = vpop.f32.mrf.mxu1 }
 0x41e   :  { %v2415_v18 = vpop.f32.mrf.mxu0  ;;  %v2509_v7 = vadd.f32 %v2508_v61, %v2412_v54  ;;  %3070 = vmatmul.f32.gmra.mxu1 %v2632_v24  ;;  %v2633_v40 = vsub.f32 %v2631_v28, %v2632_v24  ;;  %v2167_v61 = vadd.f32 %v2166_v51, %v2041_v9 }
 0x41f   :  { %v2416_v5 = vadd.f32 %v2415_v18, %v2275_v32 }
 0x420   :  { %v7300_v6 = vand.u32 4294901760, %v2509_v7  ;;  %v2634_v4 = vand.u32 4294901760, %v2633_v40  ;;  %v2171_v40 = vpop.f32.mrf.mxu2  ;;  %v2293_v43 = vadd.f32 %v2292_v22, %v2167_v61 }
 0x422   :  { %v2639_v55 = vsub.f32 %v2509_v7, %v7300_v6  ;;  %2635 = vmatmul.f32.gmra.mxu2 %v2634_v4  ;;  %2832 = vmatmul.f32.gmra.mxu3 %v7300_v6 }
 0x424   :  { %2954 = vmatmul.f32.gmra.mxu0 %v2639_v55  ;;  %v2640_v35 = vand.u32 4294901760, %v2639_v55 }
 0x425   :  { %v2512_v3 = vpop.f32.mrf.mxu1 }
 0x426   :  { %v2419_v62 = vpop.f32.mrf.mxu0  ;;  %v2513_v13 = vadd.f32 %v2512_v3, %v2416_v5  ;;  %3076 = vmatmul.f32.gmra.mxu1 %v2640_v35  ;;  %v2641_v16 = vsub.f32 %v2639_v55, %v2640_v35  ;;  %v2298_v55 = vpop.f32.mrf.mxu3  ;;  %v2172_v3 = vadd.f32 %v2171_v40, %v2045_v1 }
 0x427   :  { %v2420_v59 = vadd.f32 %v2419_v62, %v2281_v58  ;;  %v2049_v58 = vadd.f32 %v7200_v56, %v7187_v57  ;;  %v2053_v57 = vadd.f32 %v7220_v17, %v7203_v2 }
 0x428   :  { %v7306_v11 = vand.u32 4294901760, %v2513_v13  ;;  %v2642_v34 = vand.u32 4294901760, %v2641_v16  ;;  %v2299_v45 = vadd.f32 %v2298_v55, %v2172_v3  ;;  %v7350_v3 = vld [vmem:[%s8478_s5] ss:$0 sm:$0xff] }
 0x42a   :  { %v2647_v49 = vsub.f32 %v2513_v13, %v7306_v11  ;;  %2643 = vmatmul.f32.gmra.mxu2 %v2642_v34  ;;  %2836 = vmatmul.f32.gmra.mxu3 %v7306_v11  ;;  %v2176_v34 = vpop.f32.mrf.mxu2 }
 0x42c   :  { %2959 = vmatmul.f32.gmra.mxu0 %v2647_v49  ;;  %v2648_v50 = vand.u32 4294901760, %v2647_v49 }
 0x42d   :  { %v2516_v10 = vpop.f32.mrf.mxu1 }
 0x42e   :  { %v2423_v38 = vpop.f32.mrf.mxu0  ;;  %v2517_v63 = vadd.f32 %v2516_v10, %v2420_v59  ;;  %3082 = vmatmul.f32.gmra.mxu1 %v2648_v50  ;;  %v2649_v60 = vsub.f32 %v2647_v49, %v2648_v50  ;;  %v2304_v49 = vpop.f32.mrf.mxu3  ;;  %v2177_v50 = vadd.f32 %v2176_v34, %v2049_v58 }
 0x42f   :  { %v2424_v54 = vadd.f32 %v2423_v38, %v2287_v42 }
 0x430   :  { %v7312_v20 = vand.u32 4294901760, %v2517_v63  ;;  %v2650_v46 = vand.u32 4294901760, %v2649_v60  ;;  %v2305_v60 = vadd.f32 %v2304_v49, %v2177_v50 }
 0x432   :  { %v2655_v28 = vsub.f32 %v2517_v63, %v7312_v20  ;;  %2651 = vmatmul.f32.gmra.mxu2 %v2650_v46  ;;  %2840 = vmatmul.f32.gmra.mxu3 %v7312_v20  ;;  %v2181_v46 = vpop.f32.mrf.mxu2 }
 0x433   :  { %v2182_v9 = vadd.f32 %v2181_v46, %v2053_v57 }
 0x434   :  { %2964 = vmatmul.f32.gmra.mxu0 %v2655_v28  ;;  %v2656_v24 = vand.u32 4294901760, %v2655_v28 }
 0x435   :  { %v2520_v0 = vpop.f32.mrf.mxu1 }
 0x436   :  { %v2427_v29 = vpop.f32.mrf.mxu0  ;;  %v2521_v18 = vadd.f32 %v2520_v0, %v2424_v54  ;;  %3088 = vmatmul.f32.gmra.mxu1 %v2656_v24  ;;  %v2657_v7 = vsub.f32 %v2655_v28, %v2656_v24  ;;  %v2310_v24 = vpop.f32.mrf.mxu3 }
 0x437   :  { %v2428_v48 = vadd.f32 %v2427_v29, %v2293_v43  ;;  %v2311_v2 = vadd.f32 %v2310_v24, %v2182_v9 }
 0x438   :  { %v7318_v4 = vand.u32 4294901760, %v2521_v18  ;;  %v2658_v32 = vand.u32 4294901760, %v2657_v7 }
 0x43a   :  { %v2663_v25 = vsub.f32 %v2521_v18, %v7318_v4  ;;  %2659 = vmatmul.f32.gmra.mxu2 %v2658_v32  ;;  %2844 = vmatmul.f32.gmra.mxu3 %v7318_v4 }
 0x43c   :  { %2969 = vmatmul.f32.gmra.mxu0 %v2663_v25  ;;  %v2664_v5 = vand.u32 4294901760, %v2663_v25 }
 0x43d   :  { %v2524_v35 = vpop.f32.mrf.mxu1 }
 0x43e   :  { %v2431_v21 = vpop.f32.mrf.mxu0  ;;  %v2525_v62 = vadd.f32 %v2524_v35, %v2428_v48  ;;  %3094 = vmatmul.f32.gmra.mxu1 %v2664_v5  ;;  %v2665_v13 = vsub.f32 %v2663_v25, %v2664_v5 }
 0x43f   :  { %v2432_v27 = vadd.f32 %v2431_v21, %v2299_v45 }
 0x440   :  { %v7324_v16 = vand.u32 4294901760, %v2525_v62  ;;  %v2666_v14 = vand.u32 4294901760, %v2665_v13 }
 0x442   :  { %v2671_v37 = vsub.f32 %v2525_v62, %v7324_v16  ;;  %2667 = vmatmul.f32.gmra.mxu2 %v2666_v14  ;;  %2848 = vmatmul.f32.gmra.mxu3 %v7324_v16 }
 0x444   :  { %2974 = vmatmul.f32.gmra.mxu0 %v2671_v37  ;;  %v2672_v47 = vand.u32 4294901760, %v2671_v37 }
 0x445   :  { %v2528_v59 = vpop.f32.mrf.mxu1 }
 0x446   :  { %v2529_v51 = vadd.f32 %v2528_v59, %v2432_v27  ;;  %3100 = vmatmul.f32.gmra.mxu1 %v2672_v47  ;;  %v2673_v10 = vsub.f32 %v2671_v37, %v2672_v47  ;;  %v2435_v31 = vpop.f32.mrf.mxu0 }
 0x447   :  { %v2436_v22 = vadd.f32 %v2435_v31, %v2305_v60 }
 0x448   :  { %v7330_v38 = vand.u32 4294901760, %v2529_v51  ;;  %v2674_v63 = vand.u32 4294901760, %v2673_v10 }
 0x44a   :  { %v2679_v56 = vsub.f32 %v2529_v51, %v7330_v38  ;;  %2675 = vmatmul.f32.gmra.mxu2 %v2674_v63  ;;  %2852 = vmatmul.f32.gmra.mxu3 %v7330_v38 }
 0x44c   :  { %2979 = vmatmul.f32.gmra.mxu0 %v2679_v56  ;;  %v2680_v42 = vand.u32 4294901760, %v2679_v56 }
 0x44d   :  { %v2532_v33 = vpop.f32.mrf.mxu1 }
 0x44e   :  { %v2533_v28 = vadd.f32 %v2532_v33, %v2436_v22  ;;  %3106 = vmatmul.f32.gmra.mxu1 %v2680_v42  ;;  %v2681_v54 = vsub.f32 %v2679_v56, %v2680_v42  ;;  %v2439_v29 = vpop.f32.mrf.mxu0 }
 0x44f   :  { %v2440_v18 = vadd.f32 %v2439_v29, %v2311_v2  ;;  %v3377_v2 = vld [vmem:[%s8479_s6 + $0x68] sm:$0xff] }
 0x450   :  { %v7336_v0 = vand.u32 4294901760, %v2533_v28  ;;  %v2682_v61 = vand.u32 4294901760, %v2681_v54 }
 0x452   :  { %v2687_v17 = vsub.f32 %v2533_v28, %v7336_v0  ;;  %2683 = vmatmul.f32.gmra.mxu2 %v2682_v61  ;;  %2856 = vmatmul.f32.gmra.mxu3 %v7336_v0  ;;  %v3378_v61 = vld [vmem:[%s8479_s6 + $0x70] sm:$0xff] }
 0x454   :  { %2984 = vmatmul.f32.gmra.mxu0 %v2687_v17  ;;  %v2688_v7 = vand.u32 4294901760, %v2687_v17 }
 0x455   :  { %v2536_v40 = vpop.f32.mrf.mxu1 }
 0x456   :  { %v2537_v32 = vadd.f32 %v2536_v40, %v2440_v18  ;;  %3112 = vmatmul.f32.gmra.mxu1 %v2688_v7  ;;  %v2689_v43 = vsub.f32 %v2687_v17, %v2688_v7  ;;  %v7423_v7 = vand.u32 4294901760, %v3377_v2 }
 0x458   :  { %v7340_v30 = vand.u32 4294901760, %v2537_v32  ;;  %v2690_v1 = vand.u32 4294901760, %v2689_v43 }
 0x45a   :  { %v2695_v25 = vsub.f32 %v2537_v32, %v7340_v30  ;;  %2691 = vmatmul.f32.gmra.mxu2 %v2690_v1  ;;  %2860 = vmatmul.f32.gmra.mxu3 %v7340_v30 }
 0x45c   :  { %2989 = vmatmul.f32.gmra.mxu0 %v2695_v25  ;;  %v2696_v55 = vand.u32 4294901760, %v2695_v25 }
 0x45e   :  { %3118 = vmatmul.f32.gmra.mxu1 %v2696_v55  ;;  %v2697_v48 = vsub.f32 %v2695_v25, %v2696_v55  ;;  %v7439_v25 = vsub.f32 %v3377_v2, %v7423_v7 }
 0x460   :  { %v2698_v5 = vand.u32 4294901760, %v2697_v48  ;;  %v3375_v48 = vld [vmem:[%s8479_s6 + $0x58] sm:$0xff] }
 0x462   :  { %2699 = vmatmul.f32.gmra.mxu2 %v2698_v5  ;;  %3284 = vmatmul.f32.vlgmr.msrb.gmra.mxu3 %v7244_v8 }
 0x465   :  { %v2801_v35 = vpop.f32.mrf.mxu3 }
 0x46a   :  { %3187 = vmatmul.f32.vlgmr.msrb.gmra.mxu2 %v7244_v8  ;;  %3288 = vmatmul.f32.gmra.mxu3 %v7258_v41 }
 0x46d   :  { %v2580_v21 = vpop.f32.mrf.mxu2  ;;  %v2805_v62 = vpop.f32.mrf.mxu3 }
 0x46e   :  { %v2581_v13 = vadd.f32 %v7350_v3, %v2580_v21  ;;  %v8662_v21 = vand.u32 4294901760, %v7439_v25 }
 0x470   :  { %v7353_v14 = vadd.f32 %v2801_v35, %v2581_v13  ;;  %v7458_v13 = vand.u32 4294901760, %v3375_v48 }
 0x472   :  { %3191 = vmatmul.f32.gmra.mxu2 %v7258_v41  ;;  %3292 = vmatmul.f32.gmra.mxu3 %v7264_v39 }
 0x475   :  { %v2588_v34 = vpop.f32.mrf.mxu2  ;;  %v2809_v45 = vpop.f32.mrf.mxu3 }
 0x476   :  { %v2589_v8 = vadd.f32 %v7350_v3, %v2588_v34  ;;  %v3374_v34 = vld [vmem:[%s8479_s6 + $0x50] sm:$0xff] }
 0x478   :  { %v7358_v58 = vadd.f32 %v2805_v62, %v2589_v8  ;;  %v3557_v8 = vsub.f32 %v7439_v25, %v8662_v21 }
 0x47a   :  { %3195 = vmatmul.f32.gmra.mxu2 %v7264_v39  ;;  %3296 = vmatmul.f32.gmra.mxu3 %v7270_v36 }
 0x47d   :  { %v2596_v37 = vpop.f32.mrf.mxu2  ;;  %v2813_v27 = vpop.f32.mrf.mxu3 }
 0x47e   :  { %v2597_v47 = vadd.f32 %v7350_v3, %v2596_v37 }
 0x480   :  { %v7363_v49 = vadd.f32 %v2809_v45, %v2597_v47  ;;  %v7474_v47 = vsub.f32 %v3375_v48, %v7458_v13  ;;  %v3370_v48 = vld [vmem:[%s8479_s6 + $0x30] sm:$0xff] }
 0x482   :  { %3199 = vmatmul.f32.gmra.mxu2 %v7270_v36  ;;  %3300 = vmatmul.f32.gmra.mxu3 %v7276_v19 }
 0x485   :  { %v2604_v41 = vpop.f32.mrf.mxu2  ;;  %v2817_v59 = vpop.f32.mrf.mxu3 }
 0x486   :  { %v2605_v50 = vadd.f32 %v7350_v3, %v2604_v41  ;;  %v3373_v41 = vld [vmem:[%s8479_s6 + $0x48] sm:$0xff] }
 0x488   :  { %v7368_v51 = vadd.f32 %v2813_v27, %v2605_v50  ;;  %v7469_v27 = vand.u32 4294901760, %v3374_v34 }
 0x48a   :  { %3203 = vmatmul.f32.gmra.mxu2 %v7276_v19  ;;  %3304 = vmatmul.f32.gmra.mxu3 %v7282_v23 }
 0x48d   :  { %v2612_v39 = vpop.f32.mrf.mxu2  ;;  %v2821_v10 = vpop.f32.mrf.mxu3 }
 0x48e   :  { %v2613_v31 = vadd.f32 %v7350_v3, %v2612_v39  ;;  %v7483_v39 = vsub.f32 %v3374_v34, %v7469_v27 }
 0x490   :  { %v7373_v63 = vadd.f32 %v2817_v59, %v2613_v31  ;;  %v3558_v59 = vand.u32 4294901760, %v3557_v8  ;;  %v3372_v31 = vld [vmem:[%s8479_s6 + $0x40] sm:$0xff]  ;;  %v7538_v8 = vand.u32 4294901760, %v3370_v48 }
 0x492   :  { %3207 = vmatmul.f32.gmra.mxu2 %v7282_v23  ;;  %3308 = vmatmul.f32.gmra.mxu3 %v7288_v52 }
 0x495   :  { %v2620_v36 = vpop.f32.mrf.mxu2  ;;  %v2825_v60 = vpop.f32.mrf.mxu3 }
 0x496   :  { %v2621_v57 = vadd.f32 %v7350_v3, %v2620_v36 }
 0x498   :  { %v7378_v56 = vadd.f32 %v2821_v10, %v2621_v57  ;;  %v7485_v10 = vand.u32 4294901760, %v3373_v41 }
 0x49a   :  { %3211 = vmatmul.f32.gmra.mxu2 %v7288_v52  ;;  %3312 = vmatmul.f32.gmra.mxu3 %v7294_v44 }
 0x49d   :  { %v2628_v19 = vpop.f32.mrf.mxu2  ;;  %v2829_v46 = vpop.f32.mrf.mxu3 }
 0x49e   :  { %v2629_v22 = vadd.f32 %v7350_v3, %v2628_v19  ;;  %v8659_v19 = vand.u32 4294901760, %v7483_v39 }
 0x4a0   :  { %v7383_v42 = vadd.f32 %v2825_v60, %v2629_v22  ;;  %v7502_v22 = vand.u32 4294901760, %v3372_v31 }
 0x4a2   :  { %3215 = vmatmul.f32.gmra.mxu2 %v7294_v44  ;;  %3316 = vmatmul.f32.gmra.mxu3 %v7300_v6  ;;  %v3379_v44 = vld [vmem:[%s8479_s6 + $0x78] sm:$0xff]  ;;  %v7518_v2 = vsub.f32 %v3372_v31, %v7502_v22 }
 0x4a3   :  { %v7401_v24 = vand.u32 4294901760, %v3379_v44 }
 0x4a4   :  { %v8656_v34 = vand.u32 4294901760, %v7518_v2 }
 0x4a5   :  { %v2636_v23 = vpop.f32.mrf.mxu2  ;;  %v7387_v33 = vpop.f32.mrf.mxu3  ;;  %v7407_v29 = vsub.f32 %v3379_v44, %v7401_v24  ;;  %3833 = vmatpush.msra.mxu3 %v7401_v24  ;;  %3382 = vmatpush.msra.mxu0 %v7401_v24  ;;  %v3575_v44 = vsub.f32 %v7483_v39, %v8659_v19 }
 0x4a6   :  { %v2637_v9 = vadd.f32 %v7350_v3, %v2636_v23 }
 0x4a7   :  { %v8666_v17 = vand.u32 4294901760, %v7407_v29  ;;  %3705 = vmatpush.msra.mxu2 %v7407_v29 }
 0x4a8   :  { %v7390_v28 = vadd.f32 %v2829_v46, %v2637_v9  ;;  %v7500_v46 = vsub.f32 %v3373_v41, %v7485_v10  ;;  %v3371_v9 = vld [vmem:[%s8479_s6 + $0x38] sm:$0xff]  ;;  %v3369_v41 = vld [vmem:[%s8479_s6 + $0x28] sm:$0xff] }
 0x4a9   :  { %v3545_v43 = vsub.f32 %v7407_v29, %v8666_v17 }
 0x4aa   :  { %3219 = vmatmul.f32.gmra.mxu2 %v7300_v6  ;;  %3320 = vmatmul.f32.gmra.mxu3 %v7306_v11  ;;  %v7409_v6 = vand.u32 4294901760, %v3378_v61 }
 0x4ab   :  { %v3546_v5 = vand.u32 4294901760, %v3545_v43 }
 0x4ac   :  { %v7420_v18 = vsub.f32 %v3378_v61, %v7409_v6  ;;  %3835 = vmatpush.msra.mxu3 %v7409_v6  ;;  %3384 = vmatpush.msra.mxu0 %v7409_v6  ;;  %v8657_v61 = vand.u32 4294901760, %v7500_v46 }
 0x4ad   :  { %v7394_v52 = vpop.f32.mrf.mxu2  ;;  %v7396_v54 = vpop.f32.mrf.mxu3  ;;  %3547 = vmatpush.msra.mxu1 %v3546_v5  ;;  %v3576_v5 = vand.u32 4294901760, %v3575_v44 }
 0x4ae   :  { %v8664_v1 = vand.u32 4294901760, %v7420_v18  ;;  %3708 = vmatpush.msra.mxu2 %v7420_v18  ;;  %3837 = vmatpush.msra.mxu3 %v7423_v7 }
 0x4af   :  { %3386 = vmatpush.msra.mxu0 %v7423_v7 }
 0x4b0   :  { %v3551_v35 = vsub.f32 %v7420_v18, %v8664_v1  ;;  %3711 = vmatpush.msra.mxu2 %v7439_v25 }
 0x4b2   :  { %3223 = vmatmul.f32.gmra.mxu2 %v7306_v11  ;;  %3324 = vmatmul.f32.gmra.mxu3 %v7312_v20  ;;  %v3376_v11 = vld [vmem:[%s8479_s6 + $0x60] sm:$0xff]  ;;  %v3552_v45 = vand.u32 4294901760, %v3551_v35  ;;  %v3581_v35 = vsub.f32 %v7500_v46, %v8657_v61 }
 0x4b3   :  { %v7442_v55 = vand.u32 4294901760, %v3376_v11 }
 0x4b4   :  { %3553 = vmatpush.msra.mxu1 %v3552_v45 }
 0x4b5   :  { %v7430_v40 = vpop.f32.mrf.mxu2  ;;  %v7432_v32 = vpop.f32.mrf.mxu3  ;;  %v7454_v62 = vsub.f32 %v3376_v11, %v7442_v55  ;;  %3839 = vmatpush.msra.mxu3 %v7442_v55  ;;  %3388 = vmatpush.msra.mxu0 %v7442_v55  ;;  %v7520_v11 = vand.u32 4294901760, %v3371_v9 }
 0x4b6   :  { %3559 = vmatpush.msra.mxu1 %v3558_v59  ;;  %v3582_v59 = vand.u32 4294901760, %v3581_v35 }
 0x4b7   :  { %v8661_v37 = vand.u32 4294901760, %v7454_v62  ;;  %3714 = vmatpush.msra.mxu2 %v7454_v62  ;;  %3841 = vmatpush.msra.mxu3 %v7458_v13  ;;  %v7533_v45 = vsub.f32 %v3371_v9, %v7520_v11 }
 0x4b8   :  { %3390 = vmatpush.msra.mxu0 %v7458_v13 }
 0x4b9   :  { %v3563_v50 = vsub.f32 %v7454_v62, %v8661_v37  ;;  %3717 = vmatpush.msra.mxu2 %v7474_v47  ;;  %3843 = vmatpush.msra.mxu3 %v7469_v27  ;;  %v8658_v31 = vand.u32 4294901760, %v7533_v45 }
 0x4ba   :  { %3227 = vmatmul.f32.gmra.mxu2 %v7312_v20  ;;  %3328 = vmatmul.f32.gmra.mxu3 %v7318_v4  ;;  %v8660_v20 = vand.u32 4294901760, %v7474_v47 }
 0x4bb   :  { %v3564_v57 = vand.u32 4294901760, %v3563_v50  ;;  %3720 = vmatpush.msra.mxu2 %v7483_v39  ;;  %3392 = vmatpush.msra.mxu0 %v7469_v27  ;;  %v3587_v50 = vsub.f32 %v7518_v2, %v8656_v34  ;;  %v3593_v35 = vsub.f32 %v7533_v45, %v8658_v31 }
 0x4bc   :  { %v3569_v23 = vsub.f32 %v7474_v47, %v8660_v20  ;;  %3845 = vmatpush.msra.mxu3 %v7485_v10  ;;  %v7584_v20 = vpop.f32.mrf.mxu0 }
 0x4bd   :  { %v7494_v36 = vpop.f32.mrf.mxu2  ;;  %v7496_v60 = vpop.f32.mrf.mxu3  ;;  %3565 = vmatpush.msra.mxu1 %v3564_v57  ;;  %3723 = vmatpush.msra.mxu2 %v7500_v46  ;;  %v7548_v57 = vand.u32 4294901760, %v3369_v41 }
 0x4be   :  { %8935 = vst [vmem:[#allocation96_spill] sm:$0xff] %v7496_v60  ;;  %v3570_v43 = vand.u32 4294901760, %v3569_v23  ;;  %3394 = vmatpush.msra.mxu0 %v7485_v10  ;;  %3847 = vmatpush.msra.mxu3 %v7502_v22  ;;  %v3368_v23 = vld [vmem:[%s8479_s6 + $0x20] sm:$0xff] }
 0x4bf   :  { %3726 = vmatpush.msra.mxu2 %v7518_v2  ;;  %v7569_v34 = vand.u32 4294901760, %v3368_v23 }
 0x4c0   :  { %3571 = vmatpush.msra.mxu1 %v3570_v43  ;;  %3849 = vmatpush.msra.mxu3 %v7520_v11  ;;  %v3588_v43 = vand.u32 4294901760, %v3587_v50  ;;  %v3594_v50 = vand.u32 4294901760, %v3593_v35 }
 0x4c1   :  { %3396 = vmatpush.msra.mxu0 %v7502_v22  ;;  %3729 = vmatpush.msra.mxu2 %v7533_v45 }
 0x4c2   :  { %3231 = vmatmul.f32.gmra.mxu2 %v7318_v4  ;;  %3332 = vmatmul.f32.gmra.mxu3 %v7324_v16  ;;  %v7551_v4 = vsub.f32 %v3370_v48, %v7538_v8  ;;  %v7567_v48 = vsub.f32 %v3369_v41, %v7548_v57  ;;  %v7580_v41 = vsub.f32 %v3368_v23, %v7569_v34 }
 0x4c3   :  { %3577 = vmatpush.msra.mxu1 %v3576_v5  ;;  %3851 = vmatpush.msra.mxu3 %v7538_v8  ;;  %v3367_v5 = vld [vmem:[%s8479_s6 + $0x18] sm:$0xff] }
 0x4c4   :  { %v8663_v61 = vand.u32 4294901760, %v7551_v4  ;;  %3398 = vmatpush.msra.mxu0 %v7520_v11  ;;  %v8665_v31 = vand.u32 4294901760, %v7567_v48  ;;  %3732 = vmatpush.msra.mxu2 %v7551_v4  ;;  %v7582_v19 = vand.u32 4294901760, %v3367_v5  ;;  %v8668_v35 = vand.u32 4294901760, %v7580_v41 }
 0x4c5   :  { %v7558_v9 = vpop.f32.mrf.mxu2  ;;  %v7560_v44 = vpop.f32.mrf.mxu3  ;;  %3583 = vmatpush.msra.mxu1 %v3582_v59  ;;  %3853 = vmatpush.msra.mxu3 %v7548_v57  ;;  %v3366_v59 = vld [vmem:[%s8479_s6 + $0x10] sm:$0xff] }
 0x4c6   :  { %8936 = vst [vmem:[#allocation69_spill] sm:$0xff] %v7560_v44  ;;  %v3599_v37 = vsub.f32 %v7551_v4, %v8663_v61  ;;  %3400 = vmatpush.msra.mxu0 %v7538_v8  ;;  %v3605_v23 = vsub.f32 %v7567_v48, %v8665_v31  ;;  %3735 = vmatpush.msra.mxu2 %v7567_v48  ;;  %v7602_v61 = vand.u32 4294901760, %v3366_v59 }
 0x4c7   :  { %3589 = vmatpush.msra.mxu1 %v3588_v43  ;;  %v7600_v21 = vsub.f32 %v3367_v5, %v7582_v19  ;;  %v3365_v43 = vld [vmem:[%s8479_s6 + $0x8] sm:$0xff]  ;;  %v3611_v17 = vsub.f32 %v7580_v41, %v8668_v35  ;;  %3855 = vmatpush.msra.mxu3 %v7569_v34 }
 0x4c8   :  { %v3600_v1 = vand.u32 4294901760, %v3599_v37  ;;  %v3606_v31 = vand.u32 4294901760, %v3605_v23  ;;  %3738 = vmatpush.msra.mxu2 %v7580_v41  ;;  %v7615_v53 = vsub.f32 %v3366_v59, %v7602_v61  ;;  %3402 = vmatpush.msra.mxu0 %v7548_v57  ;;  %v7621_v37 = vand.u32 4294901760, %v3365_v43 }
 0x4c9   :  { %3595 = vmatpush.msra.mxu1 %v3594_v50  ;;  %v3364_v50 = vld [vmem:[%s8479_s6] sm:$0xff]  ;;  %v3612_v5 = vand.u32 4294901760, %v3611_v17  ;;  %v8939_v59 = vand.u32 4294901760, %v7600_v21  ;;  %3857 = vmatpush.msra.mxu3 %v7582_v19 }
 0x4ca   :  { %3235 = vmatmul.f32.gmra.mxu2 %v7324_v16  ;;  %3336 = vmatmul.f32.gmra.mxu3 %v7330_v38  ;;  %v7617_v16 = vpop.f32.mrf.mxu1  ;;  %v8672_v12 = vand.u32 4294901760, %v7615_v53  ;;  %v7635_v26 = vand.u32 4294901760, %v3364_v50  ;;  %v7638_v44 = vsub.f32 %v3365_v43, %v7621_v37 }
 0x4cb   :  { %3601 = vmatpush.msra.mxu1 %v3600_v1  ;;  %v3617_v15 = vsub.f32 %v7600_v21, %v8939_v59  ;;  %3741 = vmatpush.msra.mxu2 %v7600_v21 }
 0x4cc   :  { %3404 = vmatpush.msra.mxu0 %v7569_v34  ;;  %v3623_v17 = vsub.f32 %v7615_v53, %v8672_v12  ;;  %v7647_v59 = vsub.f32 %v3364_v50, %v7635_v26  ;;  %3859 = vmatpush.msra.mxu3 %v7602_v61 }
 0x4cd   :  { %v7626_v23 = vpop.f32.mrf.mxu2  ;;  %v7628_v35 = vpop.f32.mrf.mxu3  ;;  %3607 = vmatpush.msra.mxu1 %v3606_v31  ;;  %v3618_v1 = vand.u32 4294901760, %v3617_v15  ;;  %3744 = vmatpush.msra.mxu2 %v7615_v53 }
 0x4ce   :  { %8937 = vst [vmem:[#allocation73_spill] sm:$0xff] %v7626_v23  ;;  %3406 = vmatpush.msra.mxu0 %v7582_v19  ;;  %v3624_v43 = vand.u32 4294901760, %v3623_v17  ;;  %v8673_v31 = vand.u32 4294901760, %v7647_v59  ;;  %v2920_v15 = vpop.f32.mrf.mxu0  ;;  %3861 = vmatpush.msra.mxu3 %v7621_v37 }
 0x4cf   :  { %8938 = vst [vmem:[#allocation80_spill] sm:$0xff] %v7628_v35  ;;  %v3628_v35 = vand.u32 4294901760, %v7638_v44  ;;  %3613 = vmatpush.msra.mxu1 %v3612_v5  ;;  %3747 = vmatpush.msra.mxu2 %v7638_v44 }
 0x4d0   :  { %v3635_v12 = vsub.f32 %v7647_v59, %v8673_v31  ;;  %3408 = vmatpush.msra.mxu0 %v7602_v61  ;;  %3863 = vmatpush.msra.mxu3 %v7635_v26 }
 0x4d1   :  { %v3629_v50 = vsub.f32 %v7638_v44, %v3628_v35  ;;  %3619 = vmatpush.msra.mxu1 %v3618_v1  ;;  %3750 = vmatpush.msra.mxu2 %v7647_v59  ;;  %v8940_v1 = vand.u32 4294901760, %v7407_v29 }
 0x4d2   :  { %3239 = vmatmul.f32.gmra.mxu2 %v7330_v38  ;;  %3340 = vmatmul.f32.gmra.mxu3 %v7336_v0  ;;  %v3636_v23 = vand.u32 4294901760, %v3635_v12  ;;  %v3035_v60 = vpop.f32.mrf.mxu1  ;;  %v8941_v12 = vand.u32 4294901760, %v7420_v18 }
 0x4d3   :  { %v3630_v5 = vand.u32 4294901760, %v3629_v50  ;;  %3625 = vmatpush.msra.mxu1 %v3624_v43  ;;  %3410 = vmatpush.msra.mxu0 %v7621_v37 }
 0x4d5   :  { %v7665_v17 = vpop.f32.mrf.mxu2  ;;  %v7667_v38 = vpop.f32.mrf.mxu3  ;;  %3631 = vmatpush.msra.mxu1 %v3630_v5  ;;  %3412 = vmatpush.msra.mxu0 %v7635_v26 }
 0x4d6   :  { %v2925_v43 = vpop.f32.mrf.mxu0 }
 0x4d7   :  { %3637 = vmatpush.msra.mxu1 %v3636_v23  ;;  %3964 = vmatpush.msrb.mxu0 %v8940_v1  ;;  %v8942_v23 = vand.u32 4294901760, %v7439_v25 }
 0x4d9   :  { %4091 = vmatpush.msrb.mxu1 %v7401_v24  ;;  %3968 = vmatpush.msrb.mxu0 %v8941_v12  ;;  %v8944_v24 = vand.u32 4294901760, %v7474_v47 }
 0x4da   :  { %3243 = vmatmul.f32.gmra.mxu2 %v7336_v0  ;;  %3344 = vmatmul.f32.gmra.mxu3 %v7340_v30  ;;  %v8943_v0 = vand.u32 4294901760, %v7454_v62  ;;  %v3041_v29 = vpop.f32.mrf.mxu1 }
 0x4db   :  { %4093 = vmatpush.msrb.mxu1 %v7409_v6  ;;  %3972 = vmatpush.msrb.mxu0 %v8942_v23  ;;  %v8945_v6 = vand.u32 4294901760, %v7483_v39 }
 0x4dd   :  { %v7679_v50 = vpop.f32.mrf.mxu2  ;;  %v7681_v31 = vpop.f32.mrf.mxu3  ;;  %4095 = vmatpush.msrb.mxu1 %v7423_v7  ;;  %3976 = vmatpush.msrb.mxu0 %v8943_v0  ;;  %v8946_v7 = vand.u32 4294901760, %v7500_v46 }
 0x4de   :  { %v2930_v62 = vpop.f32.mrf.mxu0 }
 0x4df   :  { %4097 = vmatpush.msrb.mxu1 %v7442_v55  ;;  %3980 = vmatpush.msrb.mxu0 %v8944_v24  ;;  %v8947_v55 = vand.u32 4294901760, %v7518_v2  ;;  %v8950_v2 = vand.u32 4294901760, %v7567_v48 }
 0x4e1   :  { %4099 = vmatpush.msrb.mxu1 %v7458_v13  ;;  %3984 = vmatpush.msrb.mxu0 %v8945_v6  ;;  %v8948_v13 = vand.u32 4294901760, %v7533_v45  ;;  %v2921_v45 = vadd.f32 %v2920_v15, %v7358_v58 }
 0x4e2   :  { %3247 = vmatmul.f32.gmra.mxu2 %v7340_v30  ;;  %v2916_v30 = vadd.f32 %v7584_v20, %v7353_v14  ;;  %v3047_v47 = vpop.f32.mrf.mxu1  ;;  %v8951_v20 = vand.u32 4294901760, %v7580_v41 }
 0x4e3   :  { %4101 = vmatpush.msrb.mxu1 %v7469_v27  ;;  %3988 = vmatpush.msrb.mxu0 %v8946_v7  ;;  %v8949_v27 = vand.u32 4294901760, %v7551_v4  ;;  %v8952_v4 = vand.u32 4294901760, %v7600_v21  ;;  %v3036_v41 = vadd.f32 %v3035_v60, %v2921_v45  ;;  %v2926_v60 = vadd.f32 %v2925_v43, %v7363_v49 }
 0x4e4   :  { %v3030_v39 = vadd.f32 %v7617_v16, %v2916_v30  ;;  %v2931_v43 = vadd.f32 %v2930_v62, %v7368_v51 }
 0x4e5   :  { %v7696_v18 = vpop.f32.mrf.mxu2  ;;  %v3285_v25 = vpop.f32.mrf.mxu3  ;;  %4103 = vmatpush.msrb.mxu1 %v7485_v10  ;;  %3992 = vmatpush.msrb.mxu0 %v8947_v55  ;;  %v3042_v23 = vadd.f32 %v3041_v29, %v2926_v60 }
 0x4e6   :  { %v3048_v29 = vadd.f32 %v3047_v47, %v2931_v43 }
 0x4e7   :  { %4105 = vmatpush.msrb.mxu1 %v7502_v22  ;;  %3996 = vmatpush.msrb.mxu0 %v8948_v13  ;;  %v2935_v22 = vpop.f32.mrf.mxu0 }
 0x4e8   :  { %v2936_v62 = vadd.f32 %v2935_v22, %v7373_v63 }
 0x4e9   :  { %4107 = vmatpush.msrb.mxu1 %v7520_v11  ;;  %4000 = vmatpush.msrb.mxu0 %v8949_v27 }
 0x4ea   :  { %v3053_v48 = vpop.f32.mrf.mxu1 }
 0x4eb   :  { %4109 = vmatpush.msrb.mxu1 %v7538_v8  ;;  %4004 = vmatpush.msrb.mxu0 %v8950_v2  ;;  %v8953_v8 = vand.u32 4294901760, %v7615_v53  ;;  %v8954_v53 = vand.u32 4294901760, %v7647_v59  ;;  %v3054_v47 = vadd.f32 %v3053_v48, %v2936_v62 }
 0x4ed   :  { %v3188_v10 = vpop.f32.mrf.mxu2  ;;  %v3289_v46 = vpop.f32.mrf.mxu3  ;;  %4111 = vmatpush.msrb.mxu1 %v7548_v57  ;;  %4008 = vmatpush.msrb.mxu0 %v8951_v20 }
 0x4ee   :  { %v3189_v14 = vadd.f32 %v3188_v10, %v3030_v39 }
 0x4ef   :  { %4113 = vmatpush.msrb.mxu1 %v7569_v34  ;;  %4012 = vmatpush.msrb.mxu0 %v8952_v4 }
 0x4f0   :  { %v3286_v11 = vadd.f32 %v3285_v25, %v3189_v14 }
 0x4f1   :  { %4115 = vmatpush.msrb.mxu1 %v7582_v19  ;;  %4016 = vmatpush.msrb.mxu0 %v8953_v8 }
 0x4f2   :  { %v3348_v16 = vmax.f32 %v3286_v11, 0.0  ;;  %v3059_v24 = vpop.f32.mrf.mxu1 }
 0x4f3   :  { %4117 = vmatpush.msrb.mxu1 %v7602_v61  ;;  %4020 = vmatpush.msrb.mxu0 %v3628_v35  ;;  %v2940_v61 = vpop.f32.mrf.mxu0 }
 0x4f4   :  { %v7726_v57 = vand.u32 4294901760, %v3348_v16  ;;  %v2941_v63 = vadd.f32 %v2940_v61, %v7378_v56 }
 0x4f5   :  { %v3192_v5 = vpop.f32.mrf.mxu2  ;;  %v3293_v1 = vpop.f32.mrf.mxu3  ;;  %4119 = vmatpush.msrb.mxu1 %v7621_v37  ;;  %4024 = vmatpush.msrb.mxu0 %v8954_v53 }
 0x4f6   :  { %v3414_v58 = vsub.f32 %v3348_v16, %v7726_v57  ;;  %v3193_v21 = vadd.f32 %v3192_v5, %v3036_v41  ;;  %3639 = vmatmul.f32.vlgmr.msra.gmra.mxu1 %v7726_v57 }
 0x4f7   :  { %4121 = vmatpush.msrb.mxu1 %v7635_v26 }
 0x4f8   :  { %v3415_v19 = vand.u32 4294901760, %v3414_v58  ;;  %v3290_v34 = vadd.f32 %v3289_v46, %v3193_v21  ;;  %3753 = vmatmul.f32.vlgmr.msra.gmra.mxu2 %v3414_v58 }
 0x4fa   :  { %v3416_v44 = vsub.f32 %v3414_v58, %v3415_v19  ;;  %v3349_v35 = vmax.f32 %v3290_v34, 0.0  ;;  %3867 = vmatmul.f32.vlgmr.msra.gmra.mxu3 %v3415_v19  ;;  %v3065_v2 = vpop.f32.mrf.mxu1  ;;  %v3060_v34 = vadd.f32 %v3059_v24, %v2941_v63 }
 0x4fb   :  { %v2945_v55 = vpop.f32.mrf.mxu0 }
 0x4fc   :  { %v3417_v15 = vand.u32 4294901760, %v3416_v44  ;;  %v7738_v12 = vand.u32 4294901760, %v3349_v35  ;;  %v2946_v61 = vadd.f32 %v2945_v55, %v7383_v42 }
 0x4fd   :  { %v3196_v0 = vpop.f32.mrf.mxu2  ;;  %v3297_v37 = vpop.f32.mrf.mxu3 }
 0x4fe   :  { %v3197_v59 = vadd.f32 %v3196_v0, %v3042_v23  ;;  %3418 = vmatmul.f32.vlgmr.msra.gmra.mxu0 %v3417_v15  ;;  %3643 = vmatmul.f32.gmra.mxu1 %v7738_v12  ;;  %v3422_v6 = vsub.f32 %v3349_v35, %v7738_v12 }
 0x500   :  { %v3294_v49 = vadd.f32 %v3293_v1, %v3197_v59  ;;  %3758 = vmatmul.f32.gmra.mxu2 %v3422_v6  ;;  %v3423_v26 = vand.u32 4294901760, %v3422_v6 }
 0x502   :  { %v3350_v25 = vmax.f32 %v3294_v49, 0.0  ;;  %3873 = vmatmul.f32.gmra.mxu3 %v3423_v26  ;;  %v3424_v7 = vsub.f32 %v3422_v6, %v3423_v26  ;;  %v3071_v22 = vpop.f32.mrf.mxu1  ;;  %v3066_v26 = vadd.f32 %v3065_v2, %v2946_v61 }
 0x503   :  { %v2950_v41 = vpop.f32.mrf.mxu0 }
 0x504   :  { %v7743_v30 = vand.u32 4294901760, %v3350_v25  ;;  %v3425_v13 = vand.u32 4294901760, %v3424_v7 }
 0x505   :  { %v3200_v27 = vpop.f32.mrf.mxu2  ;;  %v3301_v39 = vpop.f32.mrf.mxu3 }
 0x506   :  { %v3201_v10 = vadd.f32 %v3200_v27, %v3048_v29  ;;  %3426 = vmatmul.f32.gmra.mxu0 %v3425_v13  ;;  %3647 = vmatmul.f32.gmra.mxu1 %v7743_v30  ;;  %v3430_v46 = vsub.f32 %v3350_v25, %v7743_v30  ;;  %v2645_v27 = vadd.f32 %v7350_v3, %v7394_v52 }
 0x508   :  { %v3298_v14 = vadd.f32 %v3297_v37, %v3201_v10  ;;  %3763 = vmatmul.f32.gmra.mxu2 %v3430_v46  ;;  %v3431_v51 = vand.u32 4294901760, %v3430_v46 }
 0x50a   :  { %v3351_v20 = vmax.f32 %v3298_v14, 0.0  ;;  %3879 = vmatmul.f32.gmra.mxu3 %v3431_v51  ;;  %v3432_v11 = vsub.f32 %v3430_v46, %v3431_v51  ;;  %v3077_v49 = vpop.f32.mrf.mxu1  ;;  %v2834_v14 = vadd.f32 %v7387_v33, %v2645_v27 }
 0x50b   :  { %v2955_v0 = vpop.f32.mrf.mxu0 }
 0x50c   :  { %v7748_v45 = vand.u32 4294901760, %v3351_v20  ;;  %v3433_v4 = vand.u32 4294901760, %v3432_v11  ;;  %v2956_v33 = vadd.f32 %v2955_v0, %v2834_v14 }
 0x50d   :  { %v3204_v16 = vpop.f32.mrf.mxu2  ;;  %v3305_v8 = vpop.f32.mrf.mxu3 }
 0x50e   :  { %v3205_v5 = vadd.f32 %v3204_v16, %v3054_v47  ;;  %3434 = vmatmul.f32.gmra.mxu0 %v3433_v4  ;;  %3651 = vmatmul.f32.gmra.mxu1 %v7748_v45  ;;  %v3438_v1 = vsub.f32 %v3351_v20, %v7748_v45 }
 0x510   :  { %v3302_v58 = vadd.f32 %v3301_v39, %v3205_v5  ;;  %3768 = vmatmul.f32.gmra.mxu2 %v3438_v1  ;;  %v3439_v21 = vand.u32 4294901760, %v3438_v1  ;;  %v2951_v39 = vadd.f32 %v2950_v41, %v7390_v28  ;;  %v2653_v28 = vadd.f32 %v7350_v3, %v7430_v40 }
 0x512   :  { %v3352_v53 = vmax.f32 %v3302_v58, 0.0  ;;  %3885 = vmatmul.f32.gmra.mxu3 %v3439_v21  ;;  %v3440_v19 = vsub.f32 %v3438_v1, %v3439_v21  ;;  %v3072_v62 = vadd.f32 %v3071_v22, %v2951_v39  ;;  %v3083_v16 = vpop.f32.mrf.mxu1  ;;  %v2838_v21 = vadd.f32 %v7396_v54, %v2653_v28  ;;  %v8955_v39 = vld [vmem:[#allocation96_spill] sm:$0xff] }
 0x513   :  { %v2960_v10 = vpop.f32.mrf.mxu0  ;;  %v3078_v22 = vadd.f32 %v3077_v49, %v2956_v33 }
 0x514   :  { %v7753_v48 = vand.u32 4294901760, %v3352_v53  ;;  %v3441_v60 = vand.u32 4294901760, %v3440_v19 }
 0x515   :  { %v3208_v44 = vpop.f32.mrf.mxu2  ;;  %v3309_v35 = vpop.f32.mrf.mxu3 }
 0x516   :  { %v3209_v15 = vadd.f32 %v3208_v44, %v3060_v34  ;;  %3442 = vmatmul.f32.gmra.mxu0 %v3441_v60  ;;  %3655 = vmatmul.f32.gmra.mxu1 %v7753_v48  ;;  %v3446_v23 = vsub.f32 %v3352_v53, %v7753_v48  ;;  %v2661_v44 = vadd.f32 %v7350_v3, %v7494_v36 }
 0x518   :  { %v3306_v37 = vadd.f32 %v3305_v8, %v3209_v15  ;;  %3773 = vmatmul.f32.gmra.mxu2 %v3446_v23  ;;  %v3447_v56 = vand.u32 4294901760, %v3446_v23 }
 0x51a   :  { %v3353_v59 = vmax.f32 %v3306_v37, 0.0  ;;  %3891 = vmatmul.f32.gmra.mxu3 %v3447_v56  ;;  %v3448_v6 = vsub.f32 %v3446_v23, %v3447_v56  ;;  %v2961_v23 = vadd.f32 %v2960_v10, %v2838_v21  ;;  %v3089_v54 = vpop.f32.mrf.mxu1  ;;  %v2842_v56 = vadd.f32 %v7432_v32, %v2661_v44 }
 0x51b   :  { %v2965_v58 = vpop.f32.mrf.mxu0 }
 0x51c   :  { %v7758_v24 = vand.u32 4294901760, %v3353_v59  ;;  %v3449_v43 = vand.u32 4294901760, %v3448_v6  ;;  %v2966_v32 = vadd.f32 %v2965_v58, %v2842_v56  ;;  %v8958_v56 = vld [vmem:[#allocation80_spill] sm:$0xff] }
 0x51d   :  { %v3212_v25 = vpop.f32.mrf.mxu2  ;;  %v3313_v7 = vpop.f32.mrf.mxu3 }
 0x51e   :  { %v3213_v29 = vadd.f32 %v3212_v25, %v3066_v26  ;;  %3450 = vmatmul.f32.gmra.mxu0 %v3449_v43  ;;  %3659 = vmatmul.f32.gmra.mxu1 %v7758_v24  ;;  %v3454_v13 = vsub.f32 %v3353_v59, %v7758_v24  ;;  %v3084_v59 = vadd.f32 %v3083_v16, %v2961_v23 }
 0x520   :  { %v3310_v42 = vadd.f32 %v3309_v35, %v3213_v29  ;;  %3778 = vmatmul.f32.gmra.mxu2 %v3454_v13  ;;  %v3455_v55 = vand.u32 4294901760, %v3454_v13 }
 0x522   :  { %v3354_v46 = vmax.f32 %v3310_v42, 0.0  ;;  %3897 = vmatmul.f32.gmra.mxu3 %v3455_v55  ;;  %v3456_v2 = vsub.f32 %v3454_v13, %v3455_v55  ;;  %v3095_v55 = vpop.f32.mrf.mxu1 }
 0x523   :  { %v2970_v25 = vpop.f32.mrf.mxu0 }
 0x524   :  { %v7766_v51 = vand.u32 4294901760, %v3354_v46  ;;  %v3457_v20 = vand.u32 4294901760, %v3456_v2  ;;  %v3090_v2 = vadd.f32 %v3089_v54, %v2966_v32 }
 0x525   :  { %v3216_v11 = vpop.f32.mrf.mxu2  ;;  %v3317_v47 = vpop.f32.mrf.mxu3 }
 0x526   :  { %v3217_v4 = vadd.f32 %v3216_v11, %v3072_v62  ;;  %3458 = vmatmul.f32.gmra.mxu0 %v3457_v20  ;;  %3663 = vmatmul.f32.gmra.mxu1 %v7766_v51  ;;  %v3462_v52 = vsub.f32 %v3354_v46, %v7766_v51 }
 0x528   :  { %v3314_v8 = vadd.f32 %v3313_v7, %v3217_v4  ;;  %3783 = vmatmul.f32.gmra.mxu2 %v3462_v52  ;;  %v3463_v41 = vand.u32 4294901760, %v3462_v52  ;;  %v2669_v7 = vadd.f32 %v7350_v3, %v7558_v9 }
 0x52a   :  { %v3355_v5 = vmax.f32 %v3314_v8, 0.0  ;;  %3903 = vmatmul.f32.gmra.mxu3 %v3463_v41  ;;  %v3464_v1 = vsub.f32 %v3462_v52, %v3463_v41  ;;  %v2846_v10 = vadd.f32 %v8955_v39, %v2669_v7  ;;  %v2693_v7 = vadd.f32 %v7350_v3, %v7679_v50  ;;  %v5128_v50 = vld [vmem:[%s8478_s5] ss:$0 sm:$0xff] }
 0x52b   :  { %v2975_v8 = vpop.f32.mrf.mxu0 }
 0x52c   :  { %v7773_v63 = vand.u32 4294901760, %v3355_v5  ;;  %v3465_v53 = vand.u32 4294901760, %v3464_v1  ;;  %v2971_v28 = vadd.f32 %v2970_v25, %v2846_v10  ;;  %v2858_v39 = vadd.f32 %v7667_v38, %v2693_v7 }
 0x52d   :  { %v3220_v19 = vpop.f32.mrf.mxu2  ;;  %v3321_v34 = vpop.f32.mrf.mxu3 }
 0x52e   :  { %v3221_v60 = vadd.f32 %v3220_v19, %v3078_v22  ;;  %3466 = vmatmul.f32.gmra.mxu0 %v3465_v53  ;;  %3667 = vmatmul.f32.gmra.mxu1 %v7773_v63  ;;  %v3470_v40 = vsub.f32 %v3355_v5, %v7773_v63  ;;  %v8957_v5 = vld [vmem:[#allocation69_spill] sm:$0xff]  ;;  %v3096_v21 = vadd.f32 %v3095_v55, %v2971_v28  ;;  %v3101_v53 = vpop.f32.mrf.mxu1 }
 0x530   :  { %v3318_v35 = vadd.f32 %v3317_v47, %v3221_v60  ;;  %3788 = vmatmul.f32.gmra.mxu2 %v3470_v40  ;;  %v3471_v15 = vand.u32 4294901760, %v3470_v40  ;;  %v8956_v47 = vld [vmem:[#allocation73_spill] sm:$0xff] }
 0x531   :  { %v2677_v4 = vadd.f32 %v7350_v3, %v8956_v47 }
 0x532   :  { %v3356_v0 = vmax.f32 %v3318_v35, 0.0  ;;  %3909 = vmatmul.f32.gmra.mxu3 %v3471_v15  ;;  %v3472_v37 = vsub.f32 %v3470_v40, %v3471_v15  ;;  %v2685_v40 = vadd.f32 %v7350_v3, %v7665_v17 }
 0x533   :  { %v2850_v1 = vadd.f32 %v8957_v5, %v2677_v4 }
 0x534   :  { %v7780_v61 = vand.u32 4294901760, %v3356_v0  ;;  %v3473_v6 = vand.u32 4294901760, %v3472_v37  ;;  %v2980_v37 = vpop.f32.mrf.mxu0 }
 0x535   :  { %v3224_v49 = vpop.f32.mrf.mxu2  ;;  %v3325_v26 = vpop.f32.mrf.mxu3  ;;  %v2976_v15 = vadd.f32 %v2975_v8, %v2850_v1 }
 0x536   :  { %v3225_v43 = vadd.f32 %v3224_v49, %v3084_v59  ;;  %3474 = vmatmul.f32.gmra.mxu0 %v3473_v6  ;;  %3671 = vmatmul.f32.gmra.mxu1 %v7780_v61  ;;  %v3478_v36 = vsub.f32 %v3356_v0, %v7780_v61  ;;  %v2854_v59 = vadd.f32 %v8958_v56, %v2685_v40  ;;  %v3107_v25 = vpop.f32.mrf.mxu1 }
 0x537   :  { %v3102_v49 = vadd.f32 %v3101_v53, %v2976_v15 }
 0x538   :  { %v3322_v29 = vadd.f32 %v3321_v34, %v3225_v43  ;;  %3793 = vmatmul.f32.gmra.mxu2 %v3478_v36  ;;  %v3479_v13 = vand.u32 4294901760, %v3478_v36  ;;  %v2981_v32 = vadd.f32 %v2980_v37, %v2854_v59 }
 0x53a   :  { %v3357_v27 = vmax.f32 %v3322_v29, 0.0  ;;  %3915 = vmatmul.f32.gmra.mxu3 %v3479_v13  ;;  %v3480_v42 = vsub.f32 %v3478_v36, %v3479_v13 }
 0x53c   :  { %v7787_v46 = vand.u32 4294901760, %v3357_v27  ;;  %v3481_v14 = vand.u32 4294901760, %v3480_v42 }
 0x53d   :  { %v3228_v62 = vpop.f32.mrf.mxu2  ;;  %v3329_v11 = vpop.f32.mrf.mxu3 }
 0x53e   :  { %v3229_v20 = vadd.f32 %v3228_v62, %v3090_v2  ;;  %3482 = vmatmul.f32.gmra.mxu0 %v3481_v14  ;;  %3675 = vmatmul.f32.gmra.mxu1 %v7787_v46  ;;  %v3486_v9 = vsub.f32 %v3357_v27, %v7787_v46  ;;  %v3108_v2 = vadd.f32 %v3107_v25, %v2981_v32  ;;  %v2985_v62 = vpop.f32.mrf.mxu0 }
 0x53f   :  { %v2986_v4 = vadd.f32 %v2985_v62, %v2858_v39 }
 0x540   :  { %v3326_v52 = vadd.f32 %v3325_v26, %v3229_v20  ;;  %3798 = vmatmul.f32.gmra.mxu2 %v3486_v9  ;;  %v3487_v16 = vand.u32 4294901760, %v3486_v9 }
 0x542   :  { %v3358_v41 = vmax.f32 %v3326_v52, 0.0  ;;  %3921 = vmatmul.f32.gmra.mxu3 %v3487_v16  ;;  %v3488_v33 = vsub.f32 %v3486_v9, %v3487_v16  ;;  %v3113_v52 = vpop.f32.mrf.mxu1 }
 0x544   :  { %v7794_v58 = vand.u32 4294901760, %v3358_v41  ;;  %v3489_v22 = vand.u32 4294901760, %v3488_v33  ;;  %v3114_v33 = vadd.f32 %v3113_v52, %v2986_v4 }
 0x545   :  { %v3232_v19 = vpop.f32.mrf.mxu2  ;;  %v3333_v23 = vpop.f32.mrf.mxu3 }
 0x546   :  { %v3233_v34 = vadd.f32 %v3232_v19, %v3096_v21  ;;  %3490 = vmatmul.f32.gmra.mxu0 %v3489_v22  ;;  %3679 = vmatmul.f32.gmra.mxu1 %v7794_v58  ;;  %v3494_v60 = vsub.f32 %v3358_v41, %v7794_v58  ;;  %v2990_v53 = vpop.f32.mrf.mxu0 }
 0x548   :  { %v3330_v44 = vadd.f32 %v3329_v11, %v3233_v34  ;;  %3803 = vmatmul.f32.gmra.mxu2 %v3494_v60  ;;  %v3495_v35 = vand.u32 4294901760, %v3494_v60  ;;  %v2701_v11 = vadd.f32 %v5128_v50, %v7696_v18 }
 0x54a   :  { %v3359_v54 = vmax.f32 %v3330_v44, 0.0  ;;  %3927 = vmatmul.f32.gmra.mxu3 %v3495_v35  ;;  %v3496_v0 = vsub.f32 %v3494_v60, %v3495_v35  ;;  %v2862_v8 = vadd.f32 %v7681_v31, %v2701_v11  ;;  %v3119_v44 = vpop.f32.mrf.mxu1 }
 0x54c   :  { %v7801_v6 = vand.u32 4294901760, %v3359_v54  ;;  %v3497_v26 = vand.u32 4294901760, %v3496_v0  ;;  %v2991_v60 = vadd.f32 %v2990_v53, %v2862_v8 }
 0x54d   :  { %v3236_v43 = vpop.f32.mrf.mxu2  ;;  %v3337_v55 = vpop.f32.mrf.mxu3 }
 0x54e   :  { %v3237_v36 = vadd.f32 %v3236_v43, %v3102_v49  ;;  %3498 = vmatmul.f32.gmra.mxu0 %v3497_v26  ;;  %3683 = vmatmul.f32.gmra.mxu1 %v7801_v6  ;;  %v3502_v17 = vsub.f32 %v3359_v54, %v7801_v6  ;;  %v3120_v15 = vadd.f32 %v3119_v44, %v2991_v60 }
 0x550   :  { %v3334_v29 = vadd.f32 %v3333_v23, %v3237_v36  ;;  %3808 = vmatmul.f32.gmra.mxu2 %v3502_v17  ;;  %v3503_v13 = vand.u32 4294901760, %v3502_v17 }
 0x552   :  { %v3360_v27 = vmax.f32 %v3334_v29, 0.0  ;;  %3933 = vmatmul.f32.gmra.mxu3 %v3503_v13  ;;  %v3504_v42 = vsub.f32 %v3502_v17, %v3503_v13 }
 0x554   :  { %v7808_v10 = vand.u32 4294901760, %v3360_v27  ;;  %v3505_v14 = vand.u32 4294901760, %v3504_v42 }
 0x555   :  { %v3240_v20 = vpop.f32.mrf.mxu2  ;;  %v3341_v1 = vpop.f32.mrf.mxu3 }
 0x556   :  { %v3241_v9 = vadd.f32 %v3240_v20, %v3108_v2  ;;  %3506 = vmatmul.f32.gmra.mxu0 %v3505_v14  ;;  %3687 = vmatmul.f32.gmra.mxu1 %v7808_v10  ;;  %v3510_v3 = vsub.f32 %v3360_v27, %v7808_v10 }
 0x558   :  { %v3338_v47 = vadd.f32 %v3337_v55, %v3241_v9  ;;  %3813 = vmatmul.f32.gmra.mxu2 %v3510_v3  ;;  %v3511_v38 = vand.u32 4294901760, %v3510_v3 }
 0x55a   :  { %v3361_v16 = vmax.f32 %v3338_v47, 0.0  ;;  %3939 = vmatmul.f32.gmra.mxu3 %v3511_v38  ;;  %v3512_v28 = vsub.f32 %v3510_v3, %v3511_v38 }
 0x55c   :  { %v7817_v41 = vand.u32 4294901760, %v3361_v16  ;;  %v3513_v5 = vand.u32 4294901760, %v3512_v28 }
 0x55d   :  { %v3244_v21 = vpop.f32.mrf.mxu2  ;;  %v3345_v56 = vpop.f32.mrf.mxu3 }
 0x55e   :  { %v3245_v22 = vadd.f32 %v3244_v21, %v3114_v33  ;;  %3514 = vmatmul.f32.gmra.mxu0 %v3513_v5  ;;  %3691 = vmatmul.f32.gmra.mxu1 %v7817_v41  ;;  %v3518_v18 = vsub.f32 %v3361_v16, %v7817_v41 }
 0x560   :  { %v3342_v19 = vadd.f32 %v3341_v1, %v3245_v22  ;;  %3818 = vmatmul.f32.gmra.mxu2 %v3518_v18  ;;  %v3519_v34 = vand.u32 4294901760, %v3518_v18 }
 0x562   :  { %v3362_v40 = vmax.f32 %v3342_v19, 0.0  ;;  %3945 = vmatmul.f32.gmra.mxu3 %v3519_v34  ;;  %v3520_v31 = vsub.f32 %v3518_v18, %v3519_v34 }
 0x564   :  { %v7821_v35 = vand.u32 4294901760, %v3362_v40  ;;  %v3521_v23 = vand.u32 4294901760, %v3520_v31 }
 0x565   :  { %v3248_v54 = vpop.f32.mrf.mxu2 }
 0x566   :  { %v3249_v0 = vadd.f32 %v3248_v54, %v3120_v15  ;;  %3522 = vmatmul.f32.gmra.mxu0 %v3521_v23  ;;  %3695 = vmatmul.f32.gmra.mxu1 %v7821_v35  ;;  %v3526_v37 = vsub.f32 %v3362_v40, %v7821_v35 }
 0x568   :  { %v3346_v59 = vadd.f32 %v3345_v56, %v3249_v0  ;;  %3823 = vmatmul.f32.gmra.mxu2 %v3526_v37  ;;  %v3527_v49 = vand.u32 4294901760, %v3526_v37 }
 0x56a   :  { %v3363_v26 = vmax.f32 %v3346_v59, 0.0  ;;  %3951 = vmatmul.f32.gmra.mxu3 %v3527_v49  ;;  %v3528_v43 = vsub.f32 %v3526_v37, %v3527_v49 }
 0x56c   :  { %v7825_v36 = vand.u32 4294901760, %v3363_v26  ;;  %v3529_v17 = vand.u32 4294901760, %v3528_v43 }
 0x56e   :  { %3530 = vmatmul.f32.gmra.mxu0 %v3529_v17  ;;  %3699 = vmatmul.f32.gmra.mxu1 %v7825_v36  ;;  %v3534_v25 = vsub.f32 %v3363_v26, %v7825_v36 }
 0x570   :  { %3828 = vmatmul.f32.gmra.mxu2 %v3534_v25  ;;  %v3535_v7 = vand.u32 4294901760, %v3534_v25 }
 0x572   :  { %3957 = vmatmul.f32.gmra.mxu3 %v3535_v7  ;;  %v3536_v29 = vsub.f32 %v3534_v25, %v3535_v7 }
 0x573   :  { %v7829_v13 = vpop.f32.mrf.mxu1 }
 0x574   :  { %v3537_v32 = vand.u32 4294901760, %v3536_v29 }
 0x576   :  { %3538 = vmatmul.f32.gmra.mxu0 %v3537_v32  ;;  %4123 = vmatmul.f32.vlgmr.msrb.gmra.mxu1 %v7726_v57 }
 0x57b   :  { %v7832_v27 = vpop.f32.mrf.mxu0  ;;  %v7834_v42 = vpop.f32.mrf.mxu1 }
 0x57c   :  { %v7902_v52 = vpop.f32.mrf.mxu2 }
 0x57e   :  { %4026 = vmatmul.f32.vlgmr.msrb.gmra.mxu0 %v7726_v57  ;;  %4127 = vmatmul.f32.gmra.mxu1 %v7738_v12 }
 0x583   :  { %v7838_v55 = vpop.f32.mrf.mxu0  ;;  %v7840_v39 = vpop.f32.mrf.mxu1 }
 0x584   :  { %8959 = vst [vmem:[#allocation91_spill] sm:$0xff] %v7840_v39 }
 0x586   :  { %4030 = vmatmul.f32.gmra.mxu0 %v7738_v12  ;;  %4131 = vmatmul.f32.gmra.mxu1 %v7743_v30 }
 0x58b   :  { %v7844_v2 = vpop.f32.mrf.mxu0  ;;  %v7846_v14 = vpop.f32.mrf.mxu1 }
 0x58c   :  { %8960 = vst [vmem:[#allocation94_spill] sm:$0xff] %v7844_v2 }
 0x58e   :  { %4034 = vmatmul.f32.gmra.mxu0 %v7743_v30  ;;  %4135 = vmatmul.f32.gmra.mxu1 %v7748_v45 }
 0x593   :  { %v7850_v62 = vpop.f32.mrf.mxu0  ;;  %v7852_v57 = vpop.f32.mrf.mxu1 }
 0x596   :  { %4038 = vmatmul.f32.gmra.mxu0 %v7748_v45  ;;  %4139 = vmatmul.f32.gmra.mxu1 %v7753_v48 }
 0x59b   :  { %v7856_v20 = vpop.f32.mrf.mxu0  ;;  %v7858_v12 = vpop.f32.mrf.mxu1 }
 0x59e   :  { %4042 = vmatmul.f32.gmra.mxu0 %v7753_v48  ;;  %4143 = vmatmul.f32.gmra.mxu1 %v7758_v24 }
 0x5a3   :  { %v7862_v9 = vpop.f32.mrf.mxu0  ;;  %v7864_v30 = vpop.f32.mrf.mxu1 }
 0x5a6   :  { %4046 = vmatmul.f32.gmra.mxu0 %v7758_v24  ;;  %4147 = vmatmul.f32.gmra.mxu1 %v7766_v51 }
 0x5ab   :  { %v7868_v3 = vpop.f32.mrf.mxu0  ;;  %v7870_v45 = vpop.f32.mrf.mxu1 }
 0x5ae   :  { %4050 = vmatmul.f32.gmra.mxu0 %v7766_v51  ;;  %4151 = vmatmul.f32.gmra.mxu1 %v7773_v63 }
 0x5b3   :  { %v7874_v50 = vpop.f32.mrf.mxu0  ;;  %v7876_v48 = vpop.f32.mrf.mxu1 }
 0x5b6   :  { %4054 = vmatmul.f32.gmra.mxu0 %v7773_v63  ;;  %4155 = vmatmul.f32.gmra.mxu1 %v7780_v61 }
 0x5bb   :  { %v7880_v11 = vpop.f32.mrf.mxu0  ;;  %v7882_v24 = vpop.f32.mrf.mxu1 }
 0x5be   :  { %4058 = vmatmul.f32.gmra.mxu0 %v7780_v61  ;;  %4159 = vmatmul.f32.gmra.mxu1 %v7787_v46 }
 0x5c3   :  { %v7886_v47 = vpop.f32.mrf.mxu0  ;;  %v7888_v51 = vpop.f32.mrf.mxu1 }
 0x5c6   :  { %4062 = vmatmul.f32.gmra.mxu0 %v7787_v46  ;;  %4163 = vmatmul.f32.gmra.mxu1 %v7794_v58  ;;  %v7906_v46 = vpop.f32.mrf.mxu3 }
 0x5c7   :  { %8961 = vst [vmem:[#allocation77_spill] sm:$0xff] %v7906_v46 }
 0x5cb   :  { %v7892_v38 = vpop.f32.mrf.mxu0  ;;  %v7894_v63 = vpop.f32.mrf.mxu1 }
 0x5ce   :  { %4066 = vmatmul.f32.gmra.mxu0 %v7794_v58  ;;  %4167 = vmatmul.f32.gmra.mxu1 %v7801_v6  ;;  %v7914_v58 = vpop.f32.mrf.mxu2  ;;  %v7920_v5 = vpop.f32.mrf.mxu3 }
 0x5cf   :  { %8962 = vst [vmem:[#allocation89_spill] sm:$0xff] %v7914_v58 }
 0x5d0   :  { %8963 = vst [vmem:[#allocation92_spill] sm:$0xff] %v7920_v5 }
 0x5d3   :  { %v7898_v4 = vpop.f32.mrf.mxu0  ;;  %v7900_v61 = vpop.f32.mrf.mxu1 }
 0x5d6   :  { %4070 = vmatmul.f32.gmra.mxu0 %v7801_v6  ;;  %4171 = vmatmul.f32.gmra.mxu1 %v7808_v10  ;;  %v7924_v6 = vpop.f32.mrf.mxu2 }
 0x5d7   :  { %8964 = vst [vmem:[#allocation72_spill] sm:$0xff] %v7924_v6 }
 0x5db   :  { %v7908_v16 = vpop.f32.mrf.mxu0  ;;  %v7910_v28 = vpop.f32.mrf.mxu1 }
 0x5de   :  { %4074 = vmatmul.f32.gmra.mxu0 %v7808_v10  ;;  %4175 = vmatmul.f32.gmra.mxu1 %v7817_v41  ;;  %v7928_v10 = vpop.f32.mrf.mxu3  ;;  %v7936_v53 = vpop.f32.mrf.mxu2 }
 0x5df   :  { %8965 = vst [vmem:[#allocation86_spill] sm:$0xff] %v7928_v10 }
 0x5e0   :  { %8967 = vst [vmem:[#allocation83_spill] sm:$0xff] %v7936_v53  ;;  %v3685_v53 = vadd.f32 %v7894_v63, %v7898_v4 }
 0x5e3   :  { %v7916_v8 = vpop.f32.mrf.mxu0  ;;  %v7918_v33 = vpop.f32.mrf.mxu1 }
 0x5e6   :  { %4078 = vmatmul.f32.gmra.mxu0 %v7817_v41  ;;  %4179 = vmatmul.f32.gmra.mxu1 %v7821_v35  ;;  %v7939_v41 = vpop.f32.mrf.mxu3  ;;  %v7945_v60 = vpop.f32.mrf.mxu2 }
 0x5e7   :  { %8968 = vst [vmem:[#allocation87_spill] sm:$0xff] %v7939_v41 }
 0x5e8   :  { %8971 = vst [vmem:[#allocation76_spill] sm:$0xff] %v7945_v60 }
 0x5eb   :  { %v3531_v1 = vpop.f32.mrf.mxu0  ;;  %v7926_v21 = vpop.f32.mrf.mxu1 }
 0x5ee   :  { %4082 = vmatmul.f32.gmra.mxu0 %v7821_v35  ;;  %4183 = vmatmul.f32.gmra.mxu1 %v7825_v36  ;;  %v7947_v40 = vpop.f32.mrf.mxu3  ;;  %v7953_v35 = vpop.f32.mrf.mxu2 }
 0x5ef   :  { %8972 = vst [vmem:[#allocation82_spill] sm:$0xff] %v7947_v40 }
 0x5f3   :  { %v7932_v22 = vpop.f32.mrf.mxu0  ;;  %v7934_v18 = vpop.f32.mrf.mxu1 }
 0x5f4   :  { %8966 = vst [vmem:[#allocation90_spill] sm:$0xff] %v7934_v18  ;;  %v3701_v39 = vadd.f32 %v7926_v21, %v7932_v22  ;;  %v3665_v21 = vadd.f32 %v7864_v30, %v7868_v3 }
 0x5f6   :  { %4086 = vmatmul.f32.gmra.mxu0 %v7825_v36  ;;  %v7959_v54 = vpop.f32.mrf.mxu3  ;;  %v7961_v0 = vpop.f32.mrf.mxu2 }
 0x5f7   :  { %8977 = vst [vmem:[#allocation88_spill] sm:$0xff] %v7959_v54 }
 0x5fb   :  { %v7941_v19 = vpop.f32.mrf.mxu0  ;;  %v7943_v34 = vpop.f32.mrf.mxu1 }
 0x5fc   :  { %8969 = vst [vmem:[#allocation81_spill] sm:$0xff] %v7941_v19 }
 0x5fd   :  { %8970 = vst [vmem:[#allocation84_spill] sm:$0xff] %v7943_v34 }
 0x5fe   :  { %v7967_v59 = vpop.f32.mrf.mxu3  ;;  %v7973_v43 = vpop.f32.mrf.mxu2 }
 0x5ff   :  { %8980 = vst [vmem:[#allocation71_spill] sm:$0xff] %v7967_v59  ;;  %v3681_v59 = vadd.f32 %v7888_v51, %v7892_v38 }
 0x603   :  { %v7949_v31 = vpop.f32.mrf.mxu0  ;;  %v7951_v44 = vpop.f32.mrf.mxu1 }
 0x604   :  { %8973 = vst [vmem:[#allocation78_spill] sm:$0xff] %v7949_v31 }
 0x605   :  { %8974 = vst [vmem:[#allocation75_spill] sm:$0xff] %v7951_v44  ;;  %v3673_v44 = vadd.f32 %v7876_v48, %v7880_v11 }
 0x606   :  { %v7975_v36 = vpop.f32.mrf.mxu3  ;;  %v3794_v7 = vpop.f32.mrf.mxu2 }
 0x607   :  { %v3795_v46 = vadd.f32 %v3794_v7, %v3673_v44 }
 0x60b   :  { %v7955_v15 = vpop.f32.mrf.mxu0  ;;  %v7957_v23 = vpop.f32.mrf.mxu1 }
 0x60c   :  { %8975 = vst [vmem:[#allocation70_spill] sm:$0xff] %v7955_v15 }
 0x60d   :  { %8976 = vst [vmem:[#allocation79_spill] sm:$0xff] %v7957_v23 }
 0x60e   :  { %v3916_v29 = vpop.f32.mrf.mxu3  ;;  %v3799_v34 = vpop.f32.mrf.mxu2 }
 0x613   :  { %v7963_v37 = vpop.f32.mrf.mxu0  ;;  %v7965_v56 = vpop.f32.mrf.mxu1 }
 0x614   :  { %8978 = vst [vmem:[#allocation95_spill] sm:$0xff] %v7963_v37 }
 0x615   :  { %8979 = vst [vmem:[#allocation97_spill] sm:$0xff] %v7965_v56  ;;  %v3917_v56 = vadd.f32 %v3916_v29, %v3795_v46 }
 0x616   :  { %v3922_v31 = vpop.f32.mrf.mxu3  ;;  %v3804_v15 = vpop.f32.mrf.mxu2 }
 0x617   :  { %v3805_v2 = vadd.f32 %v3804_v15, %v3681_v59  ;;  %v3653_v59 = vadd.f32 %v7846_v14, %v7850_v62 }
 0x61b   :  { %v7969_v49 = vpop.f32.mrf.mxu0  ;;  %v7971_v26 = vpop.f32.mrf.mxu1 }
 0x61c   :  { %8981 = vst [vmem:[#allocation74_spill] sm:$0xff] %v7969_v49 }
 0x61d   :  { %8982 = vst [vmem:[#allocation85_spill] sm:$0xff] %v7971_v26 }
 0x623   :  { %v7977_v17 = vpop.f32.mrf.mxu0  ;;  %v7979_v25 = vpop.f32.mrf.mxu1 }
 0x624   :  { %8983 = vst [vmem:[#allocation93_spill] sm:$0xff] %v7977_v17 }
 0x625   :  { %8984 = vst [vmem:[#allocation96_spill] sm:$0xff] %v7979_v25  ;;  %v3928_v25 = vpop.f32.mrf.mxu3 }
 0x626   :  { %v3929_v22 = vadd.f32 %v3928_v25, %v3805_v2  ;;  %v3785_v2 = vadd.f32 %v7961_v0, %v3665_v21  ;;  %v8991_v25 = vld [vmem:[#allocation91_spill] sm:$0xff] }
 0x62b   :  { %v7981_v32 = vpop.f32.mrf.mxu0  ;;  %v7983_v18 = vpop.f32.mrf.mxu1 }
 0x62c   :  { %8985 = vst [vmem:[#allocation73_spill] sm:$0xff] %v7981_v32 }
 0x62d   :  { %8986 = vst [vmem:[#allocation69_spill] sm:$0xff] %v7983_v18  ;;  %v3809_v18 = vpop.f32.mrf.mxu2  ;;  %v3934_v17 = vpop.f32.mrf.mxu3 }
 0x633   :  { %v7987_v19 = vpop.f32.mrf.mxu0  ;;  %v4156_v23 = vpop.f32.mrf.mxu1 }
 0x634   :  { %8987 = vst [vmem:[#allocation80_spill] sm:$0xff] %v7987_v19 }
 0x635   :  { %v3814_v40 = vpop.f32.mrf.mxu2  ;;  %v3940_v6 = vpop.f32.mrf.mxu3 }
 0x63b   :  { %v4059_v5 = vpop.f32.mrf.mxu0  ;;  %v7989_v26 = vpop.f32.mrf.mxu1  ;;  %v8994_v62 = vld [vmem:[#allocation80_spill] sm:$0xff] }
 0x63c   :  { %8988 = vst [vmem:[#allocation98_spill] sm:$0xff] %v7989_v26  ;;  %v4060_v37 = vadd.f32 %v4059_v5, %v3917_v56  ;;  %v3693_v5 = vadd.f32 %v7910_v28, %v7916_v8  ;;  %v3677_v28 = vadd.f32 %v7882_v24, %v7886_v47  ;;  %v3810_v8 = vadd.f32 %v3809_v18, %v3685_v53 }
 0x63d   :  { %v3819_v46 = vpop.f32.mrf.mxu2  ;;  %v3946_v29 = vpop.f32.mrf.mxu3  ;;  %v3661_v53 = vadd.f32 %v7858_v12, %v7862_v9 }
 0x63e   :  { %v7991_v10 = vadd.f32 %v4156_v23, %v4060_v37  ;;  %v3697_v23 = vadd.f32 %v7918_v33, %v3531_v1  ;;  %v3820_v58 = vadd.f32 %v3819_v46, %v3693_v5  ;;  %v3669_v5 = vadd.f32 %v7870_v45, %v7874_v50 }
 0x63f   :  { %v3800_v51 = vadd.f32 %v3799_v34, %v3677_v28  ;;  %v8998_v28 = vld [vmem:[#allocation88_spill] sm:$0xff] }
 0x640   :  { %8989 = vst [vmem:[#allocation99_spill] sm:$0xff] %v7991_v10  ;;  %v3689_v10 = vadd.f32 %v7900_v61, %v7908_v16  ;;  %v3947_v33 = vadd.f32 %v3946_v29, %v3820_v58  ;;  %v3641_v58 = vadd.f32 %v7829_v13, %v7832_v27  ;;  %v3790_v45 = vadd.f32 %v7973_v43, %v3669_v5  ;;  %v8996_v29 = vld [vmem:[#allocation89_spill] sm:$0xff] }
 0x641   :  { %v3923_v50 = vadd.f32 %v3922_v31, %v3800_v51  ;;  %v3657_v27 = vadd.f32 %v7852_v57, %v7856_v20  ;;  %v9001_v51 = vld [vmem:[#allocation82_spill] sm:$0xff] }
 0x642   :  { %v3815_v60 = vadd.f32 %v3814_v40, %v3689_v10  ;;  %v3935_v10 = vadd.f32 %v3934_v17, %v3810_v8  ;;  %v8020_v13 = vadd.f32 %v7902_v52, %v3641_v58  ;;  %v3780_v52 = vadd.f32 %v7953_v35, %v3661_v53  ;;  %v8990_v17 = vld [vmem:[#allocation94_spill] sm:$0xff] }
 0x643   :  { %v4063_v49 = vpop.f32.mrf.mxu0  ;;  %v7993_v41 = vpop.f32.mrf.mxu1 }
 0x644   :  { %v3941_v63 = vadd.f32 %v3940_v6, %v3815_v60  ;;  %v4064_v3 = vadd.f32 %v4063_v49, %v3923_v50  ;;  %v3899_v8 = vadd.f32 %v8998_v28, %v3780_v52  ;;  %v9010_v52 = vld [vmem:[#allocation85_spill] sm:$0xff]  ;;  %v9015_v28 = vld [vmem:[#allocation78_spill] sm:$0xff] }
 0x645   :  { %v3824_v37 = vpop.f32.mrf.mxu2  ;;  %v3952_v19 = vpop.f32.mrf.mxu3 }
 0x646   :  { %v3825_v26 = vadd.f32 %v3824_v37, %v3697_v23  ;;  %v8997_v37 = vld [vmem:[#allocation83_spill] sm:$0xff] }
 0x648   :  { %v3953_v1 = vadd.f32 %v3952_v19, %v3825_v26  ;;  %v3911_v26 = vadd.f32 %v7975_v36, %v3790_v45  ;;  %v9005_v45 = vld [vmem:[#allocation74_spill] sm:$0xff] }
 0x64a   :  { %v4056_v35 = vadd.f32 %v8994_v62, %v3911_v26 }
 0x64b   :  { %v4067_v48 = vpop.f32.mrf.mxu0  ;;  %v4168_v11 = vpop.f32.mrf.mxu1 }
 0x64d   :  { %v3829_v38 = vpop.f32.mrf.mxu2  ;;  %v3958_v19 = vpop.f32.mrf.mxu3 }
 0x64e   :  { %v3830_v40 = vadd.f32 %v3829_v38, %v3701_v39  ;;  %v4068_v39 = vadd.f32 %v4067_v48, %v3929_v22  ;;  %v8993_v48 = vld [vmem:[#allocation71_spill] sm:$0xff] }
 0x64f   :  { %v3905_v14 = vadd.f32 %v8993_v48, %v3785_v2 }
 0x650   :  { %v3959_v34 = vadd.f32 %v3958_v19, %v3830_v40  ;;  %v4165_v57 = vadd.f32 %v7993_v41, %v4068_v39  ;;  %v9006_v19 = vld [vmem:[#allocation96_spill] sm:$0xff]  ;;  %v9007_v39 = vld [vmem:[#allocation99_spill] sm:$0xff] }
 0x653   :  { %v4071_v32 = vpop.f32.mrf.mxu0  ;;  %v4172_v44 = vpop.f32.mrf.mxu1 }
 0x654   :  { %v4072_v18 = vadd.f32 %v4071_v32, %v3935_v10  ;;  %v3649_v32 = vadd.f32 %v8991_v25, %v8990_v17  ;;  %v9002_v10 = vld [vmem:[#allocation93_spill] sm:$0xff] }
 0x655   :  { %v4048_v40 = vadd.f32 %v9002_v10, %v3899_v8  ;;  %v9017_v10 = vld [vmem:[#allocation81_spill] sm:$0xff] }
 0x656   :  { %v4169_v12 = vadd.f32 %v4168_v11, %v4072_v18  ;;  %v8995_v11 = vld [vmem:[#allocation98_spill] sm:$0xff] }
 0x657   :  { %v4161_v36 = vadd.f32 %v8995_v11, %v4064_v3  ;;  %v4145_v26 = vadd.f32 %v9010_v52, %v4048_v40 }
 0x659   :  { %v8071_v58 = vand.u32 4294901760, %v4161_v36 }
 0x65b   :  { %v4075_v7 = vpop.f32.mrf.mxu0  ;;  %v4176_v54 = vpop.f32.mrf.mxu1  ;;  %v8111_v17 = vsub.f32 %v4161_v36, %v8071_v58 }
 0x65c   :  { %v4076_v24 = vadd.f32 %v4075_v7, %v3941_v63 }
 0x65e   :  { %v4173_v60 = vadd.f32 %v4172_v44, %v4076_v24  ;;  %v8045_v44 = vand.u32 4294901760, %v4169_v12  ;;  %v9003_v24 = vld [vmem:[#allocation69_spill] sm:$0xff] }
 0x660   :  { %v8034_v20 = vand.u32 4294901760, %v4173_v60  ;;  %v8077_v22 = vsub.f32 %v4169_v12, %v8045_v44  ;;  %v9008_v12 = vld [vmem:[#allocation86_spill] sm:$0xff] }
 0x662   :  { %v8064_v63 = vsub.f32 %v4173_v60, %v8034_v20  ;;  %v8084_v60 = vand.u32 4294901760, %v9007_v39  ;;  %v4377_v25 = vand.u32 4294901760, %v8077_v22 }
 0x663   :  { %v4079_v56 = vpop.f32.mrf.mxu0  ;;  %v4180_v61 = vpop.f32.mrf.mxu1 }
 0x664   :  { %v4080_v4 = vadd.f32 %v4079_v56, %v3947_v33  ;;  %v3770_v56 = vadd.f32 %v8997_v37, %v3653_v59  ;;  %v8999_v33 = vld [vmem:[#allocation73_spill] sm:$0xff]  ;;  %v4371_v3 = vand.u32 4294901760, %v8064_v63 }
 0x665   :  { %v9014_v37 = vld [vmem:[#allocation77_spill] sm:$0xff] }
 0x666   :  { %v4177_v6 = vadd.f32 %v4176_v54, %v4080_v4  ;;  %v3645_v54 = vadd.f32 %v7834_v42, %v7838_v55  ;;  %v8992_v42 = vld [vmem:[#allocation76_spill] sm:$0xff]  ;;  %v4372_v36 = vsub.f32 %v8064_v63, %v4371_v3 }
 0x667   :  { %v3775_v55 = vadd.f32 %v8992_v42, %v3657_v27 }
 0x668   :  { %v8025_v9 = vand.u32 4294901760, %v4177_v6  ;;  %v3760_v23 = vadd.f32 %v8996_v29, %v3645_v54  ;;  %v9009_v54 = vld [vmem:[#allocation95_spill] sm:$0xff]  ;;  %v8126_v29 = vsub.f32 %v9007_v39, %v8084_v60  ;;  %v9019_v39 = vld [vmem:[#allocation84_spill] sm:$0xff] }
 0x669   :  { %v3893_v38 = vadd.f32 %v9001_v51, %v3775_v55  ;;  %v9012_v55 = vld [vmem:[#allocation70_spill] sm:$0xff]  ;;  %v4378_v51 = vsub.f32 %v8077_v22, %v4377_v25 }
 0x66a   :  { %v8050_v7 = vsub.f32 %v4177_v6, %v8025_v9  ;;  %v9004_v6 = vld [vmem:[#allocation87_spill] sm:$0xff] }
 0x66b   :  { %v4083_v16 = vpop.f32.mrf.mxu0  ;;  %v4184_v43 = vpop.f32.mrf.mxu1  ;;  %v3887_v53 = vadd.f32 %v9004_v6, %v3770_v56  ;;  %v4044_v50 = vadd.f32 %v9005_v45, %v3893_v38  ;;  %v3869_v56 = vadd.f32 %v9014_v37, %v8020_v13  ;;  %v4389_v38 = vand.u32 4294901760, %v8111_v17 }
 0x66c   :  { %v4084_v46 = vadd.f32 %v4083_v16, %v3953_v1  ;;  %v4052_v1 = vadd.f32 %v8999_v33, %v3905_v14  ;;  %v4365_v18 = vand.u32 4294901760, %v8050_v7  ;;  %v9013_v14 = vld [vmem:[#allocation97_spill] sm:$0xff]  ;;  %v9016_v33 = vld [vmem:[#allocation79_spill] sm:$0xff]  ;;  %v4373_v45 = vand.u32 4294901760, %v4372_v36 }
 0x66d   :  { %v4040_v59 = vadd.f32 %v9009_v54, %v3887_v53  ;;  %v4141_v62 = vadd.f32 %v9013_v14, %v4044_v50  ;;  %v4028_v40 = vadd.f32 %v9017_v10, %v3869_v56 }
 0x66e   :  { %v4181_v47 = vadd.f32 %v4180_v61, %v4084_v46  ;;  %v8056_v61 = vand.u32 4294901760, %v4165_v57  ;;  %v9000_v46 = vld [vmem:[#allocation72_spill] sm:$0xff] }
 0x66f   :  { %v3765_v5 = vadd.f32 %v9000_v46, %v3649_v32  ;;  %v9011_v32 = vld [vmem:[#allocation92_spill] sm:$0xff]  ;;  %v8133_v46 = vand.u32 4294901760, %v4145_v26  ;;  %v8147_v53 = vand.u32 4294901760, %v4141_v62 }
 0x670   :  { %v8017_v15 = vand.u32 4294901760, %v4181_v47  ;;  %v3875_v42 = vadd.f32 %v9011_v32, %v3760_v23 }
 0x672   :  { %v8037_v49 = vsub.f32 %v4181_v47, %v8017_v15  ;;  %v4153_v47 = vadd.f32 %v9003_v24, %v4056_v35  ;;  %v4032_v8 = vadd.f32 %v9015_v28, %v3875_v42  ;;  %v9018_v24 = vld [vmem:[#allocation75_spill] sm:$0xff] }
 0x673   :  { %v4087_v30 = vpop.f32.mrf.mxu0 }
 0x674   :  { %v4088_v31 = vadd.f32 %v4087_v30, %v3959_v34  ;;  %v4359_v4 = vand.u32 4294901760, %v8037_v49  ;;  %v4149_v34 = vadd.f32 %v9006_v19, %v4052_v1  ;;  %v8096_v30 = vsub.f32 %v4165_v57, %v8056_v61 }
 0x675   :  { %v4366_v57 = vsub.f32 %v8050_v7, %v4365_v18  ;;  %v4137_v1 = vadd.f32 %v9016_v33, %v4040_v59  ;;  %v4395_v19 = vand.u32 4294901760, %v8126_v29  ;;  %v9020_v59 = vld [vmem:[#allocation90_spill] sm:$0xff] }
 0x676   :  { %v4185_v0 = vadd.f32 %v4184_v43, %v4088_v31  ;;  %v4360_v2 = vsub.f32 %v8037_v49, %v4359_v4  ;;  %v3881_v31 = vadd.f32 %v9008_v12, %v3765_v5  ;;  %v8102_v43 = vand.u32 4294901760, %v4153_v47 }
 0x677   :  { %v8117_v35 = vand.u32 4294901760, %v4149_v34  ;;  %v4383_v23 = vand.u32 4294901760, %v8096_v30  ;;  %v4367_v5 = vand.u32 4294901760, %v4366_v57  ;;  %v4379_v12 = vand.u32 4294901760, %v4378_v51 }
 0x678   :  { %v8047_v41 = vand.u32 4294901760, %v4185_v0  ;;  %v4036_v48 = vadd.f32 %v9012_v55, %v3881_v31  ;;  %v4361_v11 = vand.u32 4294901760, %v4360_v2  ;;  %v8142_v13 = vsub.f32 %v4153_v47, %v8102_v43 }
 0x679   :  { %v4384_v47 = vsub.f32 %v8096_v30, %v4383_v23  ;;  %v8156_v50 = vsub.f32 %v4149_v34, %v8117_v35  ;;  %v8160_v2 = vand.u32 4294901760, %v4137_v1  ;;  %v4390_v31 = vsub.f32 %v8111_v17, %v4389_v38 }
 0x67a   :  { %v8059_v16 = vsub.f32 %v4185_v0, %v8047_v41  ;;  %4191 = vmatpush.msrb.mxu2 %v8047_v41  ;;  %4642 = vmatpush.msra.mxu1 %v8047_v41  ;;  %v4133_v6 = vadd.f32 %v9018_v24, %v4036_v48  ;;  %v8169_v34 = vsub.f32 %v4145_v26, %v8133_v46  ;;  %v4401_v54 = vand.u32 4294901760, %v8142_v13 }
 0x67b   :  { %v4125_v52 = vadd.f32 %v9020_v59, %v4028_v40  ;;  %v4385_v57 = vand.u32 4294901760, %v4384_v47  ;;  %v4396_v32 = vsub.f32 %v8126_v29, %v4395_v19  ;;  %v8182_v26 = vsub.f32 %v4141_v62, %v8147_v53 }
 0x67c   :  { %v4353_v21 = vand.u32 4294901760, %v8059_v16  ;;  %4193 = vmatpush.msrb.mxu2 %v8017_v15  ;;  %4514 = vmatpush.msra.mxu0 %v8059_v16  ;;  %v4407_v42 = vand.u32 4294901760, %v8156_v50  ;;  %v4391_v48 = vand.u32 4294901760, %v4390_v31  ;;  %v4402_v14 = vsub.f32 %v8142_v13, %v4401_v54 }
 0x67d   :  { %4644 = vmatpush.msra.mxu1 %v8017_v15  ;;  %v4413_v62 = vand.u32 4294901760, %v8169_v34  ;;  %v8197_v36 = vand.u32 4294901760, %v4125_v52  ;;  %v4397_v37 = vand.u32 4294901760, %v4396_v32 }
 0x67e   :  { %4195 = vmatpush.msrb.mxu2 %v8025_v9  ;;  %4517 = vmatpush.msra.mxu0 %v8037_v49  ;;  %v4354_v27 = vsub.f32 %v8059_v16, %v4353_v21  ;;  %v4408_v56 = vsub.f32 %v8156_v50, %v4407_v42  ;;  %v4403_v33 = vand.u32 4294901760, %v4402_v14  ;;  %v9024_v16 = vld [vmem:[#allocation5_spill] sm:$0xff] }
 0x67f   :  { %4646 = vmatpush.msra.mxu1 %v8025_v9  ;;  %v8226_v24 = vsub.f32 %v4125_v52, %v8197_v36  ;;  %v9026_v49 = vld [vmem:[#allocation9_spill] sm:$0xff] }
 0x680   :  { %4197 = vmatpush.msrb.mxu2 %v8034_v20  ;;  %4520 = vmatpush.msra.mxu0 %v8050_v7  ;;  %v4355_v0 = vand.u32 4294901760, %v4354_v27  ;;  %v4129_v27 = vadd.f32 %v9019_v39, %v4032_v8  ;;  %v4419_v8 = vand.u32 4294901760, %v8182_v26  ;;  %v4409_v10 = vand.u32 4294901760, %v4408_v56  ;;  %v9023_v56 = vld [vmem:[#allocation7_spill] sm:$0xff] }
 0x681   :  { %4648 = vmatpush.msra.mxu1 %v8034_v20  ;;  %v4443_v31 = vand.u32 4294901760, %v8226_v24  ;;  %v9027_v7 = vld [vmem:[#allocation11_spill] sm:$0xff] }
 0x682   :  { %4199 = vmatpush.msrb.mxu2 %v8045_v44  ;;  %4356 = vmatpush.msrb.mxu3 %v4355_v0  ;;  %v8173_v0 = vand.u32 4294901760, %v4133_v6  ;;  %v8185_v55 = vand.u32 4294901760, %v4129_v27  ;;  %v4420_v40 = vsub.f32 %v8182_v26, %v4419_v8 }
 0x683   :  { %4523 = vmatpush.msra.mxu0 %v8064_v63  ;;  %4650 = vmatpush.msra.mxu1 %v8045_v44  ;;  %v9034_v63 = vld [vmem:[#allocation17_spill] sm:$0xff] }
 0x684   :  { %4201 = vmatpush.msrb.mxu2 %v8056_v61  ;;  %4362 = vmatpush.msrb.mxu3 %v4361_v11  ;;  %v8194_v11 = vsub.f32 %v4137_v1, %v8160_v2  ;;  %v8206_v28 = vsub.f32 %v4133_v6, %v8173_v0  ;;  %v4414_v1 = vsub.f32 %v8169_v34, %v4413_v62 }
 0x685   :  { %4526 = vmatpush.msra.mxu0 %v8077_v22  ;;  %4652 = vmatpush.msra.mxu1 %v8056_v61  ;;  %v9037_v22 = vld [vmem:[#allocation26_spill] sm:$0xff] }
 0x686   :  { %4203 = vmatpush.msrb.mxu2 %v8071_v58  ;;  %4368 = vmatpush.msrb.mxu3 %v4367_v5  ;;  %v8216_v5 = vsub.f32 %v4129_v27, %v8185_v55  ;;  %v4425_v51 = vand.u32 4294901760, %v8194_v11  ;;  %v4431_v6 = vand.u32 4294901760, %v8206_v28  ;;  %v4421_v27 = vand.u32 4294901760, %v4420_v40  ;;  %v9070_v40 = vld [vmem:[#allocation53_spill] sm:$0xff] }
 0x687   :  { %4529 = vmatpush.msra.mxu0 %v8096_v30  ;;  %4654 = vmatpush.msra.mxu1 %v8071_v58  ;;  %v9040_v30 = vld [vmem:[#allocation20_spill] sm:$0xff] }
 0x688   :  { %4205 = vmatpush.msrb.mxu2 %v8084_v60  ;;  %4374 = vmatpush.msrb.mxu3 %v4373_v45  ;;  %v4415_v45 = vand.u32 4294901760, %v4414_v1  ;;  %v4426_v47 = vsub.f32 %v8194_v11, %v4425_v51  ;;  %v4437_v39 = vand.u32 4294901760, %v8216_v5  ;;  %v9066_v1 = vld [vmem:[#allocation49_spill] sm:$0xff] }
 0x689   :  { %4532 = vmatpush.msra.mxu0 %v8111_v17  ;;  %4656 = vmatpush.msra.mxu1 %v8084_v60  ;;  %v9043_v17 = vld [vmem:[#allocation27_spill] sm:$0xff] }
 0x68a   :  { %4207 = vmatpush.msrb.mxu2 %v8102_v43  ;;  %4380 = vmatpush.msrb.mxu3 %v4379_v12  ;;  %v4432_v12 = vsub.f32 %v8206_v28, %v4431_v6  ;;  %v4427_v59 = vand.u32 4294901760, %v4426_v47  ;;  %v4438_v52 = vsub.f32 %v8216_v5, %v4437_v39  ;;  %v9074_v47 = vld [vmem:[#allocation57_spill] sm:$0xff] }
 0x68b   :  { %4535 = vmatpush.msra.mxu0 %v8126_v29  ;;  %4658 = vmatpush.msra.mxu1 %v8102_v43  ;;  %v9046_v29 = vld [vmem:[#allocation29_spill] sm:$0xff] }
 0x68c   :  { %4209 = vmatpush.msrb.mxu2 %v8117_v35  ;;  %4386 = vmatpush.msrb.mxu3 %v4385_v57  ;;  %v9021_v57 = vld [vmem:[#allocation10_spill] sm:$0xff]  ;;  %v4433_v32 = vand.u32 4294901760, %v4432_v12  ;;  %v4439_v14 = vand.u32 4294901760, %v4438_v52  ;;  %v9080_v52 = vld [vmem:[#allocation60_spill] sm:$0xff] }
 0x68d   :  { %4538 = vmatpush.msra.mxu0 %v8142_v13  ;;  %4660 = vmatpush.msra.mxu1 %v8117_v35  ;;  %v9049_v13 = vld [vmem:[#allocation38_spill] sm:$0xff] }
 0x68e   :  { %4211 = vmatpush.msrb.mxu2 %v8133_v46  ;;  %4392 = vmatpush.msrb.mxu3 %v4391_v48  ;;  %v4444_v48 = vsub.f32 %v8226_v24, %v4443_v31  ;;  %v9077_v12 = vld [vmem:[#allocation66_spill] sm:$0xff] }
 0x68f   :  { %4541 = vmatpush.msra.mxu0 %v8156_v50  ;;  %4662 = vmatpush.msra.mxu1 %v8133_v46  ;;  %v9052_v50 = vld [vmem:[#allocation32_spill] sm:$0xff] }
 0x690   :  { %4213 = vmatpush.msrb.mxu2 %v8147_v53  ;;  %4398 = vmatpush.msrb.mxu3 %v4397_v37  ;;  %v9022_v37 = vld [vmem:[#allocation6_spill] sm:$0xff] }
 0x691   :  { %4544 = vmatpush.msra.mxu0 %v8169_v34  ;;  %4664 = vmatpush.msra.mxu1 %v8147_v53  ;;  %v9055_v34 = vld [vmem:[#allocation39_spill] sm:$0xff] }
 0x692   :  { %4215 = vmatpush.msrb.mxu2 %v8160_v2  ;;  %4404 = vmatpush.msrb.mxu3 %v4403_v33  ;;  %v4445_v33 = vand.u32 4294901760, %v4444_v48  ;;  %v9083_v48 = vld [vmem:[#allocation67_spill] sm:$0xff] }
 0x693   :  { %4547 = vmatpush.msra.mxu0 %v8182_v26  ;;  %4666 = vmatpush.msra.mxu1 %v8160_v2  ;;  %v9058_v26 = vld [vmem:[#allocation41_spill] sm:$0xff] }
 0x694   :  { %4217 = vmatpush.msrb.mxu2 %v8173_v0  ;;  %4410 = vmatpush.msrb.mxu3 %v4409_v10  ;;  %v9069_v10 = vld [vmem:[#allocation58_spill] sm:$0xff] }
 0x695   :  { %4550 = vmatpush.msra.mxu0 %v8194_v11  ;;  %4668 = vmatpush.msra.mxu1 %v8173_v0  ;;  %v9061_v11 = vld [vmem:[#allocation50_spill] sm:$0xff] }
 0x696   :  { %4219 = vmatpush.msrb.mxu2 %v8185_v55  ;;  %4416 = vmatpush.msrb.mxu3 %v4415_v45  ;;  %v9073_v45 = vld [vmem:[#allocation62_spill] sm:$0xff] }
 0x697   :  { %4553 = vmatpush.msra.mxu0 %v8206_v28  ;;  %4670 = vmatpush.msra.mxu1 %v8185_v55  ;;  %v9064_v28 = vld [vmem:[#allocation44_spill] sm:$0xff] }
 0x698   :  { %4221 = vmatpush.msrb.mxu2 %v8197_v36  ;;  %4422 = vmatpush.msrb.mxu3 %v4421_v27  ;;  %v9076_v27 = vld [vmem:[#allocation56_spill] sm:$0xff] }
 0x699   :  { %4556 = vmatpush.msra.mxu0 %v8216_v5  ;;  %4672 = vmatpush.msra.mxu1 %v8197_v36  ;;  %v9067_v5 = vld [vmem:[#allocation51_spill] sm:$0xff] }
 0x69a   :  { %4227 = vmatmul.f32.vlgmr.msrb.gmra.mxu2 %v9021_v57  ;;  %4428 = vmatpush.msrb.mxu3 %v4427_v59  ;;  %v9079_v59 = vld [vmem:[#allocation63_spill] sm:$0xff]  ;;  %v9081_v57 = vld [vmem:[#allocation68_spill] sm:$0xff] }
 0x69b   :  { %4773 = vmatpush.msra.mxu2 %v4353_v21  ;;  %4559 = vmatpush.msra.mxu0 %v8226_v24  ;;  %v9025_v21 = vld [vmem:[#allocation14_spill] sm:$0xff]  ;;  %v9071_v24 = vld [vmem:[#allocation55_spill] sm:$0xff] }
 0x69c   :  { %4434 = vmatpush.msrb.mxu3 %v4433_v32  ;;  %4562 = vmatmul.f32.vlgmr.msra.gmra.mxu0 %v9022_v37  ;;  %v9082_v32 = vld [vmem:[#allocation65_spill] sm:$0xff] }
 0x69d   :  { %4777 = vmatpush.msra.mxu2 %v4359_v4  ;;  %4676 = vmatmul.f32.vlgmr.msra.gmra.mxu1 %v9023_v56  ;;  %v9035_v4 = vld [vmem:[#allocation19_spill] sm:$0xff]  ;;  %v8367_v56 = vld [vmem:[%s8480_s7] ss:$0 sm:$0xff] }
 0x69e   :  { %4440 = vmatpush.msrb.mxu3 %v4439_v14  ;;  %v9084_v14 = vld [vmem:[#allocation64_spill] sm:$0xff] }
 0x69f   :  { %4781 = vmatpush.msra.mxu2 %v4365_v18  ;;  %v9038_v18 = vld [vmem:[#allocation21_spill] sm:$0xff] }
 0x6a0   :  { %4446 = vmatpush.msrb.mxu3 %v4445_v33 }
 0x6a1   :  { %4785 = vmatpush.msra.mxu2 %v4371_v3  ;;  %4448 = vmatmul.f32.vlgmr.msrb.gmra.mxu3 %v9024_v16  ;;  %v9041_v3 = vld [vmem:[#allocation30_spill] sm:$0xff] }
 0x6a2   :  { %4235 = vmatmul.f32.gmra.mxu2 %v9025_v21  ;;  %4900 = vmatpush.msra.mxu3 %v8047_v41  ;;  %v9028_v41 = vld [vmem:[#allocation8_spill] sm:$0xff] }
 0x6a3   :  { %4789 = vmatpush.msra.mxu2 %v4377_v25  ;;  %v9044_v25 = vld [vmem:[#allocation24_spill] sm:$0xff] }
 0x6a4   :  { %4902 = vmatpush.msra.mxu3 %v8017_v15  ;;  %4567 = vmatmul.f32.gmra.mxu0 %v9026_v49  ;;  %v9029_v15 = vld [vmem:[#allocation18_spill] sm:$0xff] }
 0x6a5   :  { %4793 = vmatpush.msra.mxu2 %v4383_v23  ;;  %4682 = vmatmul.f32.gmra.mxu1 %v9027_v7  ;;  %v9047_v23 = vld [vmem:[#allocation31_spill] sm:$0xff] }
 0x6a6   :  { %4904 = vmatpush.msra.mxu3 %v8025_v9  ;;  %v9030_v9 = vld [vmem:[#allocation13_spill] sm:$0xff] }
 0x6a7   :  { %4797 = vmatpush.msra.mxu2 %v4389_v38  ;;  %v9050_v38 = vld [vmem:[#allocation33_spill] sm:$0xff] }
 0x6a8   :  { %4906 = vmatpush.msra.mxu3 %v8034_v20  ;;  %v9031_v20 = vld [vmem:[#allocation15_spill] sm:$0xff] }
 0x6a9   :  { %4801 = vmatpush.msra.mxu2 %v4395_v19  ;;  %4452 = vmatmul.f32.gmra.mxu3 %v9028_v41  ;;  %v9053_v19 = vld [vmem:[#allocation42_spill] sm:$0xff] }
 0x6aa   :  { %4243 = vmatmul.f32.gmra.mxu2 %v9029_v15  ;;  %4908 = vmatpush.msra.mxu3 %v8045_v44  ;;  %v9032_v44 = vld [vmem:[#allocation12_spill] sm:$0xff] }
 0x6ab   :  { %4805 = vmatpush.msra.mxu2 %v4401_v54  ;;  %v9056_v54 = vld [vmem:[#allocation36_spill] sm:$0xff] }
 0x6ac   :  { %4910 = vmatpush.msra.mxu3 %v8056_v61  ;;  %4572 = vmatmul.f32.gmra.mxu0 %v9030_v9  ;;  %v9033_v61 = vld [vmem:[#allocation22_spill] sm:$0xff] }
 0x6ad   :  { %4809 = vmatpush.msra.mxu2 %v4407_v42  ;;  %4688 = vmatmul.f32.gmra.mxu1 %v9031_v20  ;;  %v9059_v42 = vld [vmem:[#allocation43_spill] sm:$0xff] }
 0x6ae   :  { %4912 = vmatpush.msra.mxu3 %v8071_v58  ;;  %v9036_v58 = vld [vmem:[#allocation16_spill] sm:$0xff] }
 0x6af   :  { %4813 = vmatpush.msra.mxu2 %v4413_v62  ;;  %v9062_v62 = vld [vmem:[#allocation45_spill] sm:$0xff] }
 0x6b0   :  { %4914 = vmatpush.msra.mxu3 %v8084_v60  ;;  %v9039_v60 = vld [vmem:[#allocation23_spill] sm:$0xff] }
 0x6b1   :  { %4817 = vmatpush.msra.mxu2 %v4419_v8  ;;  %4456 = vmatmul.f32.gmra.mxu3 %v9032_v44  ;;  %v9065_v8 = vld [vmem:[#allocation54_spill] sm:$0xff] }
 0x6b2   :  { %4251 = vmatmul.f32.gmra.mxu2 %v9033_v61  ;;  %4916 = vmatpush.msra.mxu3 %v8102_v43  ;;  %v9042_v43 = vld [vmem:[#allocation25_spill] sm:$0xff] }
 0x6b3   :  { %4821 = vmatpush.msra.mxu2 %v4425_v51  ;;  %v9068_v51 = vld [vmem:[#allocation48_spill] sm:$0xff] }
 0x6b4   :  { %4918 = vmatpush.msra.mxu3 %v8117_v35  ;;  %4577 = vmatmul.f32.gmra.mxu0 %v9034_v63  ;;  %v9045_v35 = vld [vmem:[#allocation34_spill] sm:$0xff] }
 0x6b5   :  { %4825 = vmatpush.msra.mxu2 %v4431_v6  ;;  %4694 = vmatmul.f32.gmra.mxu1 %v9035_v4  ;;  %v9072_v6 = vld [vmem:[#allocation52_spill] sm:$0xff] }
 0x6b6   :  { %4920 = vmatpush.msra.mxu3 %v8133_v46  ;;  %v9048_v46 = vld [vmem:[#allocation28_spill] sm:$0xff] }
 0x6b7   :  { %4829 = vmatpush.msra.mxu2 %v4437_v39  ;;  %v9075_v39 = vld [vmem:[#allocation59_spill] sm:$0xff] }
 0x6b8   :  { %4922 = vmatpush.msra.mxu3 %v8147_v53  ;;  %v9051_v53 = vld [vmem:[#allocation35_spill] sm:$0xff] }
 0x6b9   :  { %4833 = vmatpush.msra.mxu2 %v4443_v31  ;;  %4460 = vmatmul.f32.gmra.mxu3 %v9036_v58  ;;  %v9078_v31 = vld [vmem:[#allocation61_spill] sm:$0xff] }
 0x6ba   :  { %4259 = vmatmul.f32.gmra.mxu2 %v9037_v22  ;;  %4924 = vmatpush.msra.mxu3 %v8160_v2  ;;  %v9054_v2 = vld [vmem:[#allocation37_spill] sm:$0xff] }
 0x6bc   :  { %4926 = vmatpush.msra.mxu3 %v8173_v0  ;;  %4582 = vmatmul.f32.gmra.mxu0 %v9038_v18  ;;  %v9057_v0 = vld [vmem:[#allocation46_spill] sm:$0xff] }
 0x6bd   :  { %4700 = vmatmul.f32.gmra.mxu1 %v9039_v60 }
 0x6be   :  { %4928 = vmatpush.msra.mxu3 %v8185_v55  ;;  %v9060_v55 = vld [vmem:[#allocation40_spill] sm:$0xff] }
 0x6c0   :  { %4930 = vmatpush.msra.mxu3 %v8197_v36  ;;  %v9063_v36 = vld [vmem:[#allocation47_spill] sm:$0xff] }
 0x6c1   :  { %4464 = vmatmul.f32.gmra.mxu3 %v9040_v30 }
 0x6c2   :  { %4267 = vmatmul.f32.gmra.mxu2 %v9041_v3 }
 0x6c4   :  { %4587 = vmatmul.f32.gmra.mxu0 %v9042_v43 }
 0x6c5   :  { %4706 = vmatmul.f32.gmra.mxu1 %v9043_v17 }
 0x6c9   :  { %4468 = vmatmul.f32.gmra.mxu3 %v9044_v25 }
 0x6ca   :  { %4275 = vmatmul.f32.gmra.mxu2 %v9045_v35 }
 0x6cc   :  { %4592 = vmatmul.f32.gmra.mxu0 %v9046_v29 }
 0x6cd   :  { %4712 = vmatmul.f32.gmra.mxu1 %v9047_v23 }
 0x6d1   :  { %4472 = vmatmul.f32.gmra.mxu3 %v9048_v46 }
 0x6d2   :  { %4283 = vmatmul.f32.gmra.mxu2 %v9049_v13 }
 0x6d4   :  { %4597 = vmatmul.f32.gmra.mxu0 %v9050_v38 }
 0x6d5   :  { %4718 = vmatmul.f32.gmra.mxu1 %v9051_v53 }
 0x6d9   :  { %4476 = vmatmul.f32.gmra.mxu3 %v9052_v50 }
 0x6da   :  { %4291 = vmatmul.f32.gmra.mxu2 %v9053_v19 }
 0x6dc   :  { %4602 = vmatmul.f32.gmra.mxu0 %v9054_v2 }
 0x6dd   :  { %4724 = vmatmul.f32.gmra.mxu1 %v9055_v34 }
 0x6e1   :  { %4480 = vmatmul.f32.gmra.mxu3 %v9056_v54 }
 0x6e2   :  { %4299 = vmatmul.f32.gmra.mxu2 %v9057_v0 }
 0x6e4   :  { %4607 = vmatmul.f32.gmra.mxu0 %v9058_v26 }
 0x6e5   :  { %4730 = vmatmul.f32.gmra.mxu1 %v9059_v42 }
 0x6e9   :  { %4484 = vmatmul.f32.gmra.mxu3 %v9060_v55 }
 0x6ea   :  { %4307 = vmatmul.f32.gmra.mxu2 %v9061_v11 }
 0x6ec   :  { %4612 = vmatmul.f32.gmra.mxu0 %v9062_v62 }
 0x6ed   :  { %4736 = vmatmul.f32.gmra.mxu1 %v9063_v36 }
 0x6f1   :  { %4488 = vmatmul.f32.gmra.mxu3 %v9064_v28 }
 0x6f2   :  { %4315 = vmatmul.f32.gmra.mxu2 %v9065_v8 }
 0x6f4   :  { %4617 = vmatmul.f32.gmra.mxu0 %v9066_v1 }
 0x6f5   :  { %4742 = vmatmul.f32.gmra.mxu1 %v9067_v5 }
 0x6f9   :  { %4492 = vmatmul.f32.gmra.mxu3 %v9068_v51 }
 0x6fa   :  { %4323 = vmatmul.f32.gmra.mxu2 %v9069_v10 }
 0x6fc   :  { %4622 = vmatmul.f32.gmra.mxu0 %v9070_v40 }
 0x6fd   :  { %4748 = vmatmul.f32.gmra.mxu1 %v9071_v24 }
 0x701   :  { %4496 = vmatmul.f32.gmra.mxu3 %v9072_v6 }
 0x702   :  { %4331 = vmatmul.f32.gmra.mxu2 %v9073_v45 }
 0x704   :  { %4627 = vmatmul.f32.gmra.mxu0 %v9074_v47 }
 0x705   :  { %4754 = vmatmul.f32.gmra.mxu1 %v9075_v39 }
 0x709   :  { %4500 = vmatmul.f32.gmra.mxu3 %v9076_v27 }
 0x70a   :  { %4339 = vmatmul.f32.gmra.mxu2 %v9077_v12 }
 0x70c   :  { %4632 = vmatmul.f32.gmra.mxu0 %v9078_v31 }
 0x70d   :  { %4760 = vmatmul.f32.gmra.mxu1 %v9079_v59 }
 0x711   :  { %4504 = vmatmul.f32.gmra.mxu3 %v9080_v52 }
 0x712   :  { %4347 = vmatmul.f32.gmra.mxu2 %v9081_v57 }
 0x714   :  { %4637 = vmatmul.f32.gmra.mxu0 %v9082_v32 }
 0x715   :  { %4766 = vmatmul.f32.gmra.mxu1 %v9083_v48 }
 0x719   :  { %4508 = vmatmul.f32.gmra.mxu3 %v9084_v14  ;;  %v4563_v37 = vpop.f32.mrf.mxu0 }
 0x71a   :  { %4835 = vmatmul.f32.vlgmr.msra.gmra.mxu2 %v9024_v16  ;;  %v4677_v21 = vpop.f32.mrf.mxu1 }
 0x71d   :  { %v4228_v33 = vpop.f32.mrf.mxu2 }
 0x71e   :  { %v4229_v49 = vadd.f32 %v8367_v56, %v4228_v33 }
 0x721   :  { %4932 = vmatmul.f32.vlgmr.msra.gmra.mxu3 %v9024_v16  ;;  %v4568_v20 = vpop.f32.mrf.mxu0 }
 0x722   :  { %4839 = vmatmul.f32.gmra.mxu2 %v9028_v41  ;;  %v4683_v63 = vpop.f32.mrf.mxu1 }
 0x724   :  { %v4449_v7 = vpop.f32.mrf.mxu3 }
 0x725   :  { %v4236_v15 = vpop.f32.mrf.mxu2  ;;  %v4450_v9 = vadd.f32 %v4449_v7, %v4229_v49 }
 0x726   :  { %v4237_v4 = vadd.f32 %v8367_v56, %v4236_v15 }
 0x727   :  { %v4564_v61 = vadd.f32 %v4563_v37, %v4450_v9 }
 0x729   :  { %4936 = vmatmul.f32.gmra.mxu3 %v9028_v41  ;;  %v8374_v22 = vadd.f32 %v4677_v21, %v4564_v61  ;;  %v4573_v43 = vpop.f32.mrf.mxu0 }
 0x72a   :  { %4843 = vmatmul.f32.gmra.mxu2 %v9032_v44  ;;  %v4689_v29 = vpop.f32.mrf.mxu1 }
 0x72c   :  { %v4453_v18 = vpop.f32.mrf.mxu3 }
 0x72d   :  { %v4244_v60 = vpop.f32.mrf.mxu2  ;;  %v4454_v3 = vadd.f32 %v4453_v18, %v4237_v4 }
 0x72e   :  { %v4245_v17 = vadd.f32 %v8367_v56, %v4244_v60 }
 0x72f   :  { %v4569_v16 = vadd.f32 %v4568_v20, %v4454_v3 }
 0x731   :  { %4940 = vmatmul.f32.gmra.mxu3 %v9032_v44  ;;  %v8379_v35 = vadd.f32 %v4683_v63, %v4569_v16  ;;  %v4578_v2 = vpop.f32.mrf.mxu0 }
 0x732   :  { %4847 = vmatmul.f32.gmra.mxu2 %v9036_v58  ;;  %v4695_v44 = vpop.f32.mrf.mxu1 }
 0x734   :  { %v4457_v23 = vpop.f32.mrf.mxu3 }
 0x735   :  { %v4252_v41 = vpop.f32.mrf.mxu2  ;;  %v4458_v13 = vadd.f32 %v4457_v23, %v4245_v17 }
 0x736   :  { %v4253_v53 = vadd.f32 %v8367_v56, %v4252_v41 }
 0x737   :  { %v4574_v38 = vadd.f32 %v4573_v43, %v4458_v13 }
 0x739   :  { %4944 = vmatmul.f32.gmra.mxu3 %v9036_v58  ;;  %v8384_v19 = vadd.f32 %v4689_v29, %v4574_v38  ;;  %v4583_v58 = vpop.f32.mrf.mxu0 }
 0x73a   :  { %4851 = vmatmul.f32.gmra.mxu2 %v9040_v30  ;;  %v4701_v5 = vpop.f32.mrf.mxu1 }
 0x73c   :  { %v4461_v34 = vpop.f32.mrf.mxu3 }
 0x73d   :  { %v4260_v0 = vpop.f32.mrf.mxu2  ;;  %v4462_v26 = vadd.f32 %v4461_v34, %v4253_v53 }
 0x73e   :  { %v4261_v11 = vadd.f32 %v8367_v56, %v4260_v0 }
 0x73f   :  { %v4579_v42 = vadd.f32 %v4578_v2, %v4462_v26 }
 0x741   :  { %4948 = vmatmul.f32.gmra.mxu3 %v9040_v30  ;;  %v8389_v62 = vadd.f32 %v4695_v44, %v4579_v42 }
 0x742   :  { %4855 = vmatmul.f32.gmra.mxu2 %v9044_v25 }
 0x744   :  { %v4465_v36 = vpop.f32.mrf.mxu3 }
 0x745   :  { %v4268_v8 = vpop.f32.mrf.mxu2  ;;  %v4466_v1 = vadd.f32 %v4465_v36, %v4261_v11 }
 0x746   :  { %v4269_v40 = vadd.f32 %v8367_v56, %v4268_v8  ;;  %v4588_v8 = vpop.f32.mrf.mxu0 }
 0x747   :  { %v4584_v10 = vadd.f32 %v4583_v58, %v4466_v1  ;;  %v4707_v1 = vpop.f32.mrf.mxu1 }
 0x749   :  { %4952 = vmatmul.f32.gmra.mxu3 %v9044_v25  ;;  %v8394_v24 = vadd.f32 %v4701_v5, %v4584_v10 }
 0x74a   :  { %4859 = vmatmul.f32.gmra.mxu2 %v9048_v46 }
 0x74c   :  { %v4469_v45 = vpop.f32.mrf.mxu3 }
 0x74d   :  { %v4276_v30 = vpop.f32.mrf.mxu2  ;;  %v8397_v47 = vadd.f32 %v4469_v45, %v4269_v40 }
 0x74e   :  { %v4277_v39 = vadd.f32 %v8367_v56, %v4276_v30 }
 0x751   :  { %4956 = vmatmul.f32.gmra.mxu3 %v9048_v46 }
 0x752   :  { %4863 = vmatmul.f32.gmra.mxu2 %v9052_v50 }
 0x754   :  { %v4473_v12 = vpop.f32.mrf.mxu3 }
 0x755   :  { %v4284_v31 = vpop.f32.mrf.mxu2  ;;  %v8402_v59 = vadd.f32 %v4473_v12, %v4277_v39  ;;  %v4713_v39 = vpop.f32.mrf.mxu1 }
 0x756   :  { %v4285_v25 = vadd.f32 %v8367_v56, %v4284_v31 }
 0x759   :  { %4960 = vmatmul.f32.gmra.mxu3 %v9052_v50 }
 0x75a   :  { %4867 = vmatmul.f32.gmra.mxu2 %v9056_v54 }
 0x75c   :  { %v4477_v57 = vpop.f32.mrf.mxu3 }
 0x75d   :  { %v4292_v32 = vpop.f32.mrf.mxu2  ;;  %v8407_v48 = vadd.f32 %v4477_v57, %v4285_v25 }
 0x75e   :  { %v4293_v37 = vadd.f32 %v8367_v56, %v4292_v32 }
 0x761   :  { %4964 = vmatmul.f32.gmra.mxu3 %v9056_v54 }
 0x762   :  { %4871 = vmatmul.f32.gmra.mxu2 %v9060_v55 }
 0x764   :  { %v4481_v46 = vpop.f32.mrf.mxu3 }
 0x765   :  { %v4300_v33 = vpop.f32.mrf.mxu2  ;;  %v8412_v21 = vadd.f32 %v4481_v46, %v4293_v37  ;;  %v4589_v46 = vadd.f32 %v4588_v8, %v8397_v47 }
 0x766   :  { %v4301_v49 = vadd.f32 %v8367_v56, %v4300_v33 }
 0x769   :  { %4968 = vmatmul.f32.gmra.mxu3 %v9060_v55 }
 0x76a   :  { %4875 = vmatmul.f32.gmra.mxu2 %v9064_v28 }
 0x76c   :  { %v4485_v50 = vpop.f32.mrf.mxu3 }
 0x76d   :  { %v4308_v7 = vpop.f32.mrf.mxu2  ;;  %v8417_v15 = vadd.f32 %v4485_v50, %v4301_v49  ;;  %v4719_v50 = vpop.f32.mrf.mxu1 }
 0x76e   :  { %v4309_v9 = vadd.f32 %v8367_v56, %v4308_v7 }
 0x771   :  { %4972 = vmatmul.f32.gmra.mxu3 %v9064_v28 }
 0x772   :  { %4879 = vmatmul.f32.gmra.mxu2 %v9068_v51 }
 0x774   :  { %v4489_v54 = vpop.f32.mrf.mxu3 }
 0x775   :  { %v4316_v20 = vpop.f32.mrf.mxu2  ;;  %v8422_v61 = vadd.f32 %v4489_v54, %v4309_v9 }
 0x776   :  { %v4317_v63 = vadd.f32 %v8367_v56, %v4316_v20 }
 0x779   :  { %4976 = vmatmul.f32.gmra.mxu3 %v9068_v51 }
 0x77a   :  { %4883 = vmatmul.f32.gmra.mxu2 %v9072_v6 }
 0x77c   :  { %v4493_v55 = vpop.f32.mrf.mxu3 }
 0x77d   :  { %v4324_v4 = vpop.f32.mrf.mxu2  ;;  %v8427_v18 = vadd.f32 %v4493_v55, %v4317_v63 }
 0x77e   :  { %v4325_v60 = vadd.f32 %v8367_v56, %v4324_v4 }
 0x781   :  { %4980 = vmatmul.f32.gmra.mxu3 %v9072_v6 }
 0x782   :  { %4887 = vmatmul.f32.gmra.mxu2 %v9076_v27 }
 0x784   :  { %v4497_v28 = vpop.f32.mrf.mxu3 }
 0x785   :  { %v4332_v3 = vpop.f32.mrf.mxu2  ;;  %v8432_v16 = vadd.f32 %v4497_v28, %v4325_v60  ;;  %v4725_v28 = vpop.f32.mrf.mxu1 }
 0x786   :  { %v4333_v43 = vadd.f32 %v8367_v56, %v4332_v3 }
 0x789   :  { %4984 = vmatmul.f32.gmra.mxu3 %v9076_v27 }
 0x78a   :  { %4891 = vmatmul.f32.gmra.mxu2 %v9080_v52 }
 0x78c   :  { %v4501_v51 = vpop.f32.mrf.mxu3 }
 0x78d   :  { %v4340_v17 = vpop.f32.mrf.mxu2  ;;  %v8437_v29 = vadd.f32 %v4501_v51, %v4333_v43 }
 0x78e   :  { %v4341_v23 = vadd.f32 %v8367_v56, %v4340_v17 }
 0x791   :  { %4988 = vmatmul.f32.gmra.mxu3 %v9080_v52 }
 0x792   :  { %4895 = vmatmul.f32.gmra.mxu2 %v9084_v14 }
 0x794   :  { %v4505_v6 = vpop.f32.mrf.mxu3 }
 0x795   :  { %v4348_v41 = vpop.f32.mrf.mxu2  ;;  %v8442_v13 = vadd.f32 %v4505_v6, %v4341_v23 }
 0x796   :  { %v4349_v38 = vadd.f32 %v8367_v56, %v4348_v41 }
 0x799   :  { %4992 = vmatmul.f32.gmra.mxu3 %v9084_v14 }
 0x79c   :  { %v4509_v27 = vpop.f32.mrf.mxu3 }
 0x79d   :  { %v8446_v53 = vadd.f32 %v4509_v27, %v4349_v38  ;;  %v4836_v2 = vpop.f32.mrf.mxu2 }
 0x79e   :  { %v4837_v34 = vadd.f32 %v4836_v2, %v8374_v22  ;;  %v4593_v22 = vpop.f32.mrf.mxu0 }
 0x79f   :  { %v4594_v55 = vadd.f32 %v4593_v22, %v8402_v59 }
 0x7a1   :  { %v4714_v3 = vadd.f32 %v4713_v39, %v4594_v55 }
 0x7a4   :  { %v4933_v44 = vpop.f32.mrf.mxu3 }
 0x7a5   :  { %v4840_v0 = vpop.f32.mrf.mxu2  ;;  %v4934_v26 = vadd.f32 %v4933_v44, %v4837_v34  ;;  %v4731_v34 = vpop.f32.mrf.mxu1 }
 0x7a6   :  { %v4841_v52 = vadd.f32 %v4840_v0, %v8379_v35 }
 0x7ac   :  { %v4937_v42 = vpop.f32.mrf.mxu3 }
 0x7ad   :  { %v4844_v11 = vpop.f32.mrf.mxu2  ;;  %v4938_v36 = vadd.f32 %v4937_v42, %v4841_v52 }
 0x7ae   :  { %v4845_v58 = vadd.f32 %v4844_v11, %v8384_v19  ;;  %v4598_v19 = vpop.f32.mrf.mxu0 }
 0x7af   :  { %v5077_v56 = vadd.f32 %v4938_v36, %v4934_v26  ;;  %v4599_v47 = vadd.f32 %v4598_v19, %v8407_v48 }
 0x7b1   :  { %v4720_v27 = vadd.f32 %v4719_v50, %v4599_v47 }
 0x7b4   :  { %v4941_v14 = vpop.f32.mrf.mxu3 }
 0x7b5   :  { %v4848_v5 = vpop.f32.mrf.mxu2  ;;  %v4942_v10 = vadd.f32 %v4941_v14, %v4845_v58 }
 0x7b6   :  { %v4849_v40 = vadd.f32 %v4848_v5, %v8389_v62  ;;  %v4708_v62 = vadd.f32 %v4707_v1, %v4589_v46  ;;  %v4603_v20 = vpop.f32.mrf.mxu0 }
 0x7b7   :  { %v5063_v45 = vmul.f32 0.0, %v4942_v10  ;;  %v4604_v59 = vadd.f32 %v4603_v20, %v8412_v21 }
 0x7b9   :  { %v5078_v30 = vadd.f32 %v5077_v56, %v5063_v45  ;;  %v4726_v36 = vadd.f32 %v4725_v28, %v4604_v59  ;;  %v4737_v56 = vpop.f32.mrf.mxu1 }
 0x7bc   :  { %v4945_v12 = vpop.f32.mrf.mxu3 }
 0x7bd   :  { %v4852_v31 = vpop.f32.mrf.mxu2  ;;  %v4946_v35 = vadd.f32 %v4945_v12, %v4849_v40 }
 0x7be   :  { %v4853_v25 = vadd.f32 %v4852_v31, %v8394_v24  ;;  %v4608_v41 = vpop.f32.mrf.mxu0 }
 0x7bf   :  { %v5064_v57 = vmul.f32 0.0, %v4946_v35  ;;  %v4609_v1 = vadd.f32 %v4608_v41, %v8417_v15 }
 0x7c1   :  { %v5079_v32 = vadd.f32 %v5078_v30, %v5064_v57  ;;  %v4732_v40 = vadd.f32 %v4731_v34, %v4609_v1  ;;  %v4743_v35 = vpop.f32.mrf.mxu1 }
 0x7c4   :  { %v4949_v37 = vpop.f32.mrf.mxu3 }
 0x7c5   :  { %v4856_v33 = vpop.f32.mrf.mxu2  ;;  %v4950_v49 = vadd.f32 %v4949_v37, %v4853_v25 }
 0x7c6   :  { %v4857_v54 = vadd.f32 %v4856_v33, %v4708_v62  ;;  %v4613_v11 = vpop.f32.mrf.mxu0 }
 0x7c7   :  { %v5065_v7 = vmul.f32 0.0, %v4950_v49  ;;  %v4614_v21 = vadd.f32 %v4613_v11, %v8422_v61 }
 0x7c9   :  { %v5080_v9 = vadd.f32 %v5079_v32, %v5065_v7  ;;  %v4738_v57 = vadd.f32 %v4737_v56, %v4614_v21  ;;  %v4749_v7 = vpop.f32.mrf.mxu1 }
 0x7cc   :  { %v4953_v63 = vpop.f32.mrf.mxu3 }
 0x7cd   :  { %v4860_v4 = vpop.f32.mrf.mxu2  ;;  %v4954_v60 = vadd.f32 %v4953_v63, %v4857_v54 }
 0x7ce   :  { %v4861_v51 = vadd.f32 %v4860_v4, %v4714_v3  ;;  %v4618_v22 = vpop.f32.mrf.mxu0 }
 0x7cf   :  { %v5066_v24 = vmul.f32 0.0, %v4954_v60  ;;  %v4619_v15 = vadd.f32 %v4618_v22, %v8427_v18 }
 0x7d1   :  { %v5081_v43 = vadd.f32 %v5080_v9, %v5066_v24  ;;  %v4744_v62 = vadd.f32 %v4743_v35, %v4619_v15  ;;  %v4755_v3 = vpop.f32.mrf.mxu1 }
 0x7d4   :  { %v4957_v17 = vpop.f32.mrf.mxu3 }
 0x7d5   :  { %v4864_v23 = vpop.f32.mrf.mxu2  ;;  %v4958_v6 = vadd.f32 %v4957_v17, %v4861_v51 }
 0x7d6   :  { %v4865_v44 = vadd.f32 %v4864_v23, %v4720_v27  ;;  %v4623_v37 = vpop.f32.mrf.mxu0 }
 0x7d7   :  { %v5067_v38 = vmul.f32 0.0, %v4958_v6  ;;  %v4624_v61 = vadd.f32 %v4623_v37, %v8432_v16 }
 0x7d9   :  { %v5082_v2 = vadd.f32 %v5081_v43, %v5067_v38  ;;  %v4750_v24 = vadd.f32 %v4749_v7, %v4624_v61 }
 0x7dc   :  { %v4961_v0 = vpop.f32.mrf.mxu3 }
 0x7dd   :  { %v4868_v26 = vpop.f32.mrf.mxu2  ;;  %v4962_v52 = vadd.f32 %v4961_v0, %v4865_v44 }
 0x7de   :  { %v4869_v8 = vadd.f32 %v4868_v26, %v4726_v36  ;;  %v4628_v4 = vpop.f32.mrf.mxu0 }
 0x7df   :  { %v5068_v42 = vmul.f32 0.0, %v4962_v52  ;;  %v4629_v18 = vadd.f32 %v4628_v4, %v8437_v29 }
 0x7e1   :  { %v5083_v58 = vadd.f32 %v5082_v2, %v5068_v42  ;;  %v4756_v41 = vadd.f32 %v4755_v3, %v4629_v18  ;;  %v4761_v2 = vpop.f32.mrf.mxu1 }
 0x7e4   :  { %v4965_v48 = vpop.f32.mrf.mxu3 }
 0x7e5   :  { %v4872_v14 = vpop.f32.mrf.mxu2  ;;  %v4966_v5 = vadd.f32 %v4965_v48, %v4869_v8 }
 0x7e6   :  { %v4873_v30 = vadd.f32 %v4872_v14, %v4732_v40  ;;  %v4633_v6 = vpop.f32.mrf.mxu0 }
 0x7e7   :  { %v5069_v10 = vmul.f32 0.0, %v4966_v5  ;;  %v4634_v34 = vadd.f32 %v4633_v6, %v8442_v13 }
 0x7e9   :  { %v5084_v45 = vadd.f32 %v5083_v58, %v5069_v10  ;;  %v4762_v26 = vadd.f32 %v4761_v2, %v4634_v34  ;;  %v4767_v8 = vpop.f32.mrf.mxu1 }
 0x7ec   :  { %v4969_v39 = vpop.f32.mrf.mxu3 }
 0x7ed   :  { %v4876_v12 = vpop.f32.mrf.mxu2  ;;  %v4970_v31 = vadd.f32 %v4969_v39, %v4873_v30 }
 0x7ee   :  { %v4877_v19 = vadd.f32 %v4876_v12, %v4738_v57  ;;  %v4638_v42 = vpop.f32.mrf.mxu0 }
 0x7ef   :  { %v5070_v25 = vmul.f32 0.0, %v4970_v31  ;;  %v4639_v29 = vadd.f32 %v4638_v42, %v8446_v53  ;;  %v5099_v53 = vld [vmem:[%s8481_s8] sm:$0x1] }
 0x7f1   :  { %v5085_v32 = vadd.f32 %v5084_v45, %v5070_v25  ;;  %v4768_v1 = vadd.f32 %v4767_v8, %v4639_v29 }
 0x7f4   :  { %v4973_v46 = vpop.f32.mrf.mxu3 }
 0x7f5   :  { %v4880_v33 = vpop.f32.mrf.mxu2  ;;  %v4974_v49 = vadd.f32 %v4973_v46, %v4877_v19 }
 0x7f6   :  { %v4881_v54 = vadd.f32 %v4880_v33, %v4744_v62 }
 0x7f7   :  { %v5071_v50 = vmul.f32 0.0, %v4974_v49 }
 0x7f9   :  { %v5086_v9 = vadd.f32 %v5085_v32, %v5071_v50  ;;  %v5105_v32 = vld [vmem:[%s8482_s9] sm:$0x1] }
 0x7fc   :  { %v4977_v20 = vpop.f32.mrf.mxu3 }
 0x7fd   :  { %v4884_v63 = vpop.f32.mrf.mxu2  ;;  %v4978_v55 = vadd.f32 %v4977_v20, %v4881_v54 }
 0x7fe   :  { %v4885_v43 = vadd.f32 %v4884_v63, %v4750_v24 }
 0x7ff   :  { %v5072_v60 = vmul.f32 0.0, %v4978_v55 }
 0x801   :  { %v5087_v28 = vadd.f32 %v5086_v9, %v5072_v60 }
 0x804   :  { %v4981_v51 = vpop.f32.mrf.mxu3 }
 0x805   :  { %v4888_v17 = vpop.f32.mrf.mxu2  ;;  %v4982_v47 = vadd.f32 %v4981_v51, %v4885_v43 }
 0x806   :  { %v4889_v27 = vadd.f32 %v4888_v17, %v4756_v41 }
 0x807   :  { %v5073_v23 = vmul.f32 0.0, %v4982_v47 }
 0x809   :  { %v5088_v38 = vadd.f32 %v5087_v28, %v5073_v23 }
 0x80c   :  { %v4985_v16 = vpop.f32.mrf.mxu3 }
 0x80d   :  { %v4986_v44 = vadd.f32 %v4985_v16, %v4889_v27  ;;  %v4892_v0 = vpop.f32.mrf.mxu2 }
 0x80e   :  { %v4893_v11 = vadd.f32 %v4892_v0, %v4762_v26 }
 0x80f   :  { %v5074_v59 = vmul.f32 0.0, %v4986_v44 }
 0x811   :  { %v5089_v52 = vadd.f32 %v5088_v38, %v5074_v59 }
 0x814   :  { %v4989_v36 = vpop.f32.mrf.mxu3 }
 0x815   :  { %v4990_v58 = vadd.f32 %v4989_v36, %v4893_v11  ;;  %v4896_v48 = vpop.f32.mrf.mxu2 }
 0x816   :  { %v4897_v5 = vadd.f32 %v4896_v48, %v4768_v1 }
 0x817   :  { %v5075_v56 = vmul.f32 0.0, %v4990_v58 }
 0x819   :  { %v5090_v14 = vadd.f32 %v5089_v52, %v5075_v56 }
 0x81c   :  { %v4993_v10 = vpop.f32.mrf.mxu3 }
 0x81d   :  { %v4994_v40 = vadd.f32 %v4993_v10, %v4897_v5 }
 0x81f   :  { %v5076_v13 = vmul.f32 0.0, %v4994_v40 }
 0x821   :  { %v5091_v45 = vadd.f32 %v5090_v14, %v5076_v13 }
 0x823   :  { %v5092_v22 = vrot.slane %v5091_v45, 4 }
 0x825   :  { %v5093_v30 = vadd.f32 %v5092_v22, %v5091_v45 }
 0x827   :  { %v5094_v39 = vrot.slane %v5093_v30, 2 }
 0x829   :  { %v5095_v21 = vadd.f32 %v5094_v39, %v5093_v30 }
 0x82b   :  { %v5096_v12 = vrot.slane %v5095_v21, 1 }
 0x82d   :  { %v5097_v31 = vadd.f32 %v5096_v12, %v5095_v21 }
 0x82f   :  { %v5098_v35 = vmul.f32 0.0625, %v5097_v31 }
 0x831   :  { %v5100_v25 = vmul.f32 %v5099_v53, %v5098_v35 }
 0x833   :  { %v5102_v57 = vsel %vm5101_vm0, %v5100_v25, 0.0 }
 0x834   :  { %5103 = vadd.xlane.f32.xlu0 %v5102_v57 }
 0x8a7   :  { %v5104_v19 = vpop.xlane.xlu0 %5103 }
 0x8a8   :  { %v5106_v37 = vadd.f32 %v5105_v32, %v5104_v19 }
 0x8aa   :  { %5107 = vst [vmem:[#allocation2] sm:$0x1] %v5106_v37 }
 0x8ab   :  { %5118 = dma.vmem_to_hbm [thread:$0]  %s5114_s2, 16, %s5116_s25, [#allocation3]  }
 0x8ac   :  { %5153 = dma.done.wait [#allocation3], 16  }
 0x8ad   :  { %5154 = vsyncadd [#allocation3], 4294967280 }
 0x8ae   :  { %5123 = vsyncpa [#allocation3], 1 }

</bundles_post_ra>
